<compile_context>
chip_gen: v7x
topology: tpu7x:2x2x1
jax: 0.10.0
libtpu: 0.0.40
codegen_flags: <defaults>
</compile_context>

<pallas_src>
import functools
import math

import jax
import jax.numpy as jnp
import numpy as np
from jax.experimental import pallas as pl
from jax.experimental.pallas import tpu as pltpu


# ------------------------------ Pallas kernel ------------------------------ #

def _scm_kernel(x_ref, w1_ref, b1_ref, w2_ref, b2_ref, w3_ref, b3_ref,
                w4_ref, b4_ref, w5a_ref, w5b_ref, b5_ref, o_ref, *, TH, H, W):
    """Fused SCM forward for one (batch, row-block) tile.

    x_ref:  (1, Cin, TH+4, W+4)   row slab with a 2-px zero halo on every side.
    o_ref:  (1, Cout, TH*W)       lane-dense flattened output rows.
    1x1 weights are (Cout, Cin); 3x3 weights are (3, 3, Cout, Cin); biases are (C, 1).
    """
    rb = pl.program_id(1)
    f32 = jnp.float32
    RE, CE = TH + 2, W + 2            # grid extended by the 1-px halo the 2nd 3x3 needs
    P_ext, P = RE * CE, TH * W

    xs = x_ref[0]                     # (Cin, TH+4, W+4)
    Cin = xs.shape[0]

    def conv3x3(x3d, w_ref, rows, cols):
        # x3d: (Ci, rows+2, cols+2) -> (Co, rows*cols); 9 shifted tap matmuls on the MXU,
        # accumulated in f32.  All taps live in VMEM (no HBM im2col).
        ci, co, n = x3d.shape[0], w_ref.shape[2], rows * cols
        acc = jnp.zeros((co, n), f32)
        for dh in range(3):
            for dw in range(3):
                tap = x3d[:, dh:dh + rows, dw:dw + cols].reshape(ci, n)
                acc = acc + jnp.dot(w_ref[dh, dw], tap.astype(w_ref.dtype),
                                    preferred_element_type=f32)
        return acc

    # main[0]: 3x3 (Cin -> C1), bias, ReLU -- computed on the 1-px-extended (RE, CE) grid.
    t = jnp.maximum(conv3x3(xs, w1_ref, RE, CE) + b1_ref[...], 0.0)          # (C1, P_ext)

    # main[1]: 1x1 (C1 -> C2), bias, ReLU.
    t = jnp.maximum(jnp.dot(w2_ref[...], t.astype(w2_ref.dtype),
                            preferred_element_type=f32) + b2_ref[...], 0.0)  # (C2, P_ext)

    # main[2] zero-pads main[1]'s HxW output, so zero the halo ring (and any rows that fall
    # outside the true image when H was padded up to a tile multiple).
    C2 = t.shape[0]
    t = t.reshape(C2, RE, CE)
    row_g = rb * TH - 1 + jax.lax.broadcasted_iota(jnp.int32, (1, RE, CE), 1)
    col_g = jax.lax.broadcasted_iota(jnp.int32, (1, RE, CE), 2) - 1
    valid = (row_g >= 0) & (row_g < H) & (col_g >= 0) & (col_g < W)
    t = jnp.where(valid, t, 0.0)

    # main[2]: 3x3 (C2 -> C2), bias, ReLU -- centered TH x W grid.
    t = jnp.maximum(conv3x3(t, w3_ref, TH, W) + b3_ref[...], 0.0)            # (C2, P)

    # main[3]: 1x1 (C2 -> C4), bias, ReLU.
    t = jnp.maximum(jnp.dot(w4_ref[...], t.astype(w4_ref.dtype),
                            preferred_element_type=f32) + b4_ref[...], 0.0)  # (C4, P)

    # Final 1x1 on cat([x, main(x)], channel): concat folded into split weights; no ReLU.
    xc = xs[:, 2:2 + TH, 2:2 + W].reshape(Cin, P)
    out = (jnp.dot(w5a_ref[...], xc.astype(w5a_ref.dtype), preferred_element_type=f32)
           + jnp.dot(w5b_ref[...], t.astype(w5b_ref.dtype), preferred_element_type=f32)
           + b5_ref[...])                                                     # (Cout, P)
    o_ref[0] = out.astype(o_ref.dtype)


# -------------------------------- wrapper ---------------------------------- #

def _choose_tile_h(H, W):
    """Rows per grid step: keeps the flattened output block lane-dense (TH*W % 128 == 0 when
    tiled) and targets ~8K output pixels so all f32 intermediates stay a few MB of VMEM."""
    align = 128 // math.gcd(W, 128)
    target_rows = max(1, 8192 // max(W, 1))
    TH = max(align, (target_rows // align) * align)
    if TH >= H:
        return H          # a single block covers the whole (padded) image
    return TH


def scm_forward(x_nchw, params, *, compute_dtype=jnp.float32):
    """SCM.forward: conv1x1(cat([x, main(x)], dim=1)).  NCHW in / NCHW out.

    compute_dtype=jnp.bfloat16 halves matmul-operand HBM traffic (recommended on v5e/v6e);
    accumulation, bias and ReLU stay in float32 either way.
    """
    N, Cin, H, W = x_nchw.shape
    Cout = params["b5"].shape[0]

    TH = _choose_tile_h(H, W)
    RB = pl.cdiv(H, TH)
    H_pad = RB * TH

    # One spatial pad (2-px zero halo; the bottom is also padded to the row-tile multiple).
    xp = jnp.pad(x_nchw, ((0, 0), (0, 0), (2, 2 + H_pad - H), (2, 2)))
    if RB == 1:
        slabs = xp                                            # (N, Cin, H+4, W+4), no copy
    else:
        # Overlapping row slabs (+4 halo rows) -- ~3% duplication of the 3-channel input only.
        slabs = jnp.stack(
            [xp[:, :, rb * TH: rb * TH + TH + 4, :] for rb in range(RB)], axis=1
        ).reshape(N * RB, Cin, TH + 4, W + 4)

    f32 = jnp.float32
    # (Cout, Cin)-major weights for the channels-major matmuls; split w5 to fold the concat.
    w1 = jnp.transpose(params["w1"], (0, 1, 3, 2))            # (3, 3, C1, Cin)
    w2 = params["w2"].T                                       # (C2, C1)
    w3 = jnp.transpose(params["w3"], (0, 1, 3, 2))            # (3, 3, C2, C2)
    w4 = params["w4"].T                                       # (C4, C2)
    w5a = params["w5"][:Cin].T                                 # (Cout, Cin)   -> x part
    w5b = params["w5"][Cin:].T                                 # (Cout, C4)    -> main(x) part
    b1, b2, b3, b4, b5 = (params[k].astype(f32).reshape(-1, 1)
                          for k in ("b1", "b2", "b3", "b4", "b5"))
    if compute_dtype != jnp.float32:
        slabs = slabs.astype(compute_dtype)
        w1, w2, w3, w4, w5a, w5b = (w.astype(compute_dtype)
                                    for w in (w1, w2, w3, w4, w5a, w5b))

    def _resident(arr):
        # Full-array block with a constant index map: DMA'd once, stays resident in VMEM.
        nd = arr.ndim
        return pl.BlockSpec(arr.shape, lambda n, rb: (0,) * nd)

    kernel = functools.partial(_scm_kernel, TH=TH, H=H, W=W)
    out_flat = pl.pallas_call(
        kernel,
        out_shape=jax.ShapeDtypeStruct((N, Cout, H_pad * W), jnp.float32),
        grid_spec=pltpu.PrefetchScalarGridSpec(
            num_scalar_prefetch=0,
            grid=(N, RB),
            in_specs=[
                pl.BlockSpec((1, Cin, TH + 4, W + 4),
                             lambda n, rb: (n * RB + rb, 0, 0, 0)),
                _resident(w1), _resident(b1),
                _resident(w2), _resident(b2),
                _resident(w3), _resident(b3),
                _resident(w4), _resident(b4),
                _resident(w5a), _resident(w5b), _resident(b5),
            ],
            out_specs=pl.BlockSpec((1, Cout, TH * W), lambda n, rb: (n, 0, rb)),
        ),
        compiler_params=pltpu.CompilerParams(
            dimension_semantics=("parallel", "parallel"),
            vmem_limit_bytes=32 * 1024 * 1024),
    )(slabs, w1, b1, w2, b2, w3, b3, w4, b4, w5a, w5b, b5)

    return out_flat.reshape(N, Cout, H_pad, W)[:, :, :H, :]


# ------------------------------ params / init ------------------------------ #

def init_scm_params(key, out_plane=16, inchannel=3, dtype=jnp.float32):
    c1 = out_plane // 4
    c2 = out_plane // 2
    c4 = out_plane - inchannel
    ks = jax.random.split(key, 10)
    scale = 0.1
    return {
        # 3x3 BasicConv weights stored HWIO (kh, kw, Cin, Cout); 1x1 stored (Cin, Cout).
        "w1": scale * jax.random.normal(ks[0], (3, 3, inchannel, c1), dtype),
        "b1": scale * jax.random.normal(ks[1], (c1,), dtype),
        "w2": scale * jax.random.normal(ks[2], (c1, c2), dtype),
        "b2": scale * jax.random.normal(ks[3], (c2,), dtype),
        "w3": scale * jax.random.normal(ks[4], (3, 3, c2, c2), dtype),
        "b3": scale * jax.random.normal(ks[5], (c2,), dtype),
        "w4": scale * jax.random.normal(ks[6], (c2, c4), dtype),
        "b4": scale * jax.random.normal(ks[7], (c4,), dtype),
        "w5": scale * jax.random.normal(ks[8], (out_plane, out_plane), dtype),
        "b5": scale * jax.random.normal(ks[9], (out_plane,), dtype),
    }


# ---------------------------- pure-JAX reference ---------------------------- #

def _conv_ref(x_nhwc, w_hwio, b, relu):
    out = jax.lax.conv_general_dilated(
        x_nhwc, w_hwio, window_strides=(1, 1), padding="SAME",
        dimension_numbers=("NHWC", "HWIO", "NHWC"))
    out = out + b
    return jnp.maximum(out, 0.0) if relu else out


def scm_reference(x_nchw, p):
    x = jnp.transpose(x_nchw, (0, 2, 3, 1))
    y = _conv_ref(x, p["w1"], p["b1"], True)
    y = _conv_ref(y, p["w2"][None, None], p["b2"], True)
    y = _conv_ref(y, p["w3"], p["b3"], True)
    y = _conv_ref(y, p["w4"][None, None], p["b4"], True)
    cat = jnp.concatenate([x, y], axis=-1)
    out = _conv_ref(cat, p["w5"][None, None], p["b5"], False)
    return jnp.transpose(out, (0, 3, 1, 2))


# ----------------------------------- main ----------------------------------- #

if __name__ == "__main__":
    key = jax.random.PRNGKey(0)
    k_x, k_p = jax.random.split(key)

    N, C, H, W = 2, 3, 16, 16          # inchannel = 3 (RGB), small spatial
    out_plane = 16
    x = jax.random.normal(k_x, (N, C, H, W), jnp.float32)
    params = init_scm_params(k_p, out_plane=out_plane, inchannel=C)

    out = jax.block_until_ready(scm_forward(x, params))
    assert out.shape == (N, out_plane, H, W), out.shape

    ref = jax.block_until_ready(scm_reference(x, params))
    np.testing.assert_allclose(np.asarray(out), np.asarray(ref),
                               rtol=1e-4, atol=1e-4)

    print("KERNEL_OK")
</pallas_src>

<mosaic_0001>
module attributes {stable_mosaic.version = 11 : i64} {
  func.func @_scm_kernel(%arg0: i32, %arg1: i32, %arg2: memref<1x3x20x20xf32, #tpu.memory_space<vmem>>, %arg3: memref<3x3x4x3xf32, #tpu.memory_space<vmem>>, %arg4: memref<4x1xf32, #tpu.memory_space<vmem>>, %arg5: memref<8x4xf32, #tpu.memory_space<vmem>>, %arg6: memref<8x1xf32, #tpu.memory_space<vmem>>, %arg7: memref<3x3x8x8xf32, #tpu.memory_space<vmem>>, %arg8: memref<8x1xf32, #tpu.memory_space<vmem>>, %arg9: memref<13x8xf32, #tpu.memory_space<vmem>>, %arg10: memref<13x1xf32, #tpu.memory_space<vmem>>, %arg11: memref<16x3xf32, #tpu.memory_space<vmem>>, %arg12: memref<16x13xf32, #tpu.memory_space<vmem>>, %arg13: memref<16x1xf32, #tpu.memory_space<vmem>>, %arg14: memref<1x16x256xf32, #tpu.memory_space<vmem>>) attributes {dimension_semantics = [#tpu.dimension_semantics<parallel>, #tpu.dimension_semantics<parallel>], iteration_bounds = array<i64: 2, 1>, scalar_prefetch = 0 : i64, scratch_operands = 0 : i64, tpu.core_type = #tpu.core_type<tc>, window_params = [{transform_indices = @transform_0, window_bounds = array<i64: 1, 3, 20, 20>}, {pipeline_mode = #tpu.pipeline_mode<synchronous>, transform_indices = @transform_1, window_bounds = array<i64: 3, 3, 4, 3>}, {pipeline_mode = #tpu.pipeline_mode<synchronous>, transform_indices = @transform_2, window_bounds = array<i64: 4, 1>}, {pipeline_mode = #tpu.pipeline_mode<synchronous>, transform_indices = @transform_3, window_bounds = array<i64: 8, 4>}, {pipeline_mode = #tpu.pipeline_mode<synchronous>, transform_indices = @transform_4, window_bounds = array<i64: 8, 1>}, {pipeline_mode = #tpu.pipeline_mode<synchronous>, transform_indices = @transform_5, window_bounds = array<i64: 3, 3, 8, 8>}, {pipeline_mode = #tpu.pipeline_mode<synchronous>, transform_indices = @transform_6, window_bounds = array<i64: 8, 1>}, {pipeline_mode = #tpu.pipeline_mode<synchronous>, transform_indices = @transform_7, window_bounds = array<i64: 13, 8>}, {pipeline_mode = #tpu.pipeline_mode<synchronous>, transform_indices = @transform_8, window_bounds = array<i64: 13, 1>}, {pipeline_mode = #tpu.pipeline_mode<synchronous>, transform_indices = @transform_9, window_bounds = array<i64: 16, 3>}, {pipeline_mode = #tpu.pipeline_mode<synchronous>, transform_indices = @transform_10, window_bounds = array<i64: 16, 13>}, {pipeline_mode = #tpu.pipeline_mode<synchronous>, transform_indices = @transform_11, window_bounds = array<i64: 16, 1>}, {transform_indices = @transform_12, window_bounds = array<i64: 1, 16, 256>}]} {
    %c0 = arith.constant 0 : index
    %c0_0 = arith.constant 0 : index
    %c0_1 = arith.constant 0 : index
    %c0_2 = arith.constant 0 : index
    %0 = vector.load %arg2[%c0, %c0_0, %c0_1, %c0_2] : memref<1x3x20x20xf32, #tpu.memory_space<vmem>>, vector<1x3x20x20xf32>
    %1 = vector.shape_cast %0 : vector<1x3x20x20xf32> to vector<3x20x20xf32>
    %cst = arith.constant 0.000000e+00 : f32
    %2 = vector.broadcast %cst : f32 to vector<4x324xf32>
    %3 = vector.extract_strided_slice %1 {offsets = [0, 0, 0], sizes = [3, 18, 18], strides = [1, 1, 1]} : vector<3x20x20xf32> to vector<3x18x18xf32>
    %4 = vector.shape_cast %3 : vector<3x18x18xf32> to vector<3x324xf32>
    %c0_3 = arith.constant 0 : index
    %c0_4 = arith.constant 0 : index
    %c0_5 = arith.constant 0 : index
    %c0_6 = arith.constant 0 : index
    %5 = vector.load %arg3[%c0_3, %c0_4, %c0_5, %c0_6] : memref<3x3x4x3xf32, #tpu.memory_space<vmem>>, vector<1x1x4x3xf32>
    %6 = vector.shape_cast %5 : vector<1x1x4x3xf32> to vector<4x3xf32>
    %cst_7 = arith.constant dense<0.000000e+00> : vector<4x324xf32>
    %7 = tpu.matmul %6, %4, %cst_7 {dimension_numbers = #tpu.dot_dimension_numbers<[1], [0], [0], [1], [0, 0, 1, 1], [], []>} : vector<4x3xf32>, vector<3x324xf32>, vector<4x324xf32> -> vector<4x324xf32>
    %8 = arith.addf %2, %7 : vector<4x324xf32>
    %9 = vector.extract_strided_slice %1 {offsets = [0, 0, 1], sizes = [3, 18, 18], strides = [1, 1, 1]} : vector<3x20x20xf32> to vector<3x18x18xf32>
    %10 = vector.shape_cast %9 : vector<3x18x18xf32> to vector<3x324xf32>
    %c0_8 = arith.constant 0 : index
    %c1 = arith.constant 1 : index
    %c0_9 = arith.constant 0 : index
    %c0_10 = arith.constant 0 : index
    %11 = vector.load %arg3[%c0_8, %c1, %c0_9, %c0_10] : memref<3x3x4x3xf32, #tpu.memory_space<vmem>>, vector<1x1x4x3xf32>
    %12 = vector.shape_cast %11 : vector<1x1x4x3xf32> to vector<4x3xf32>
    %cst_11 = arith.constant dense<0.000000e+00> : vector<4x324xf32>
    %13 = tpu.matmul %12, %10, %cst_11 {dimension_numbers = #tpu.dot_dimension_numbers<[1], [0], [0], [1], [0, 0, 1, 1], [], []>} : vector<4x3xf32>, vector<3x324xf32>, vector<4x324xf32> -> vector<4x324xf32>
    %14 = arith.addf %8, %13 : vector<4x324xf32>
    %15 = vector.extract_strided_slice %1 {offsets = [0, 0, 2], sizes = [3, 18, 18], strides = [1, 1, 1]} : vector<3x20x20xf32> to vector<3x18x18xf32>
    %16 = vector.shape_cast %15 : vector<3x18x18xf32> to vector<3x324xf32>
    %c0_12 = arith.constant 0 : index
    %c2 = arith.constant 2 : index
    %c0_13 = arith.constant 0 : index
    %c0_14 = arith.constant 0 : index
    %17 = vector.load %arg3[%c0_12, %c2, %c0_13, %c0_14] : memref<3x3x4x3xf32, #tpu.memory_space<vmem>>, vector<1x1x4x3xf32>
    %18 = vector.shape_cast %17 : vector<1x1x4x3xf32> to vector<4x3xf32>
    %cst_15 = arith.constant dense<0.000000e+00> : vector<4x324xf32>
    %19 = tpu.matmul %18, %16, %cst_15 {dimension_numbers = #tpu.dot_dimension_numbers<[1], [0], [0], [1], [0, 0, 1, 1], [], []>} : vector<4x3xf32>, vector<3x324xf32>, vector<4x324xf32> -> vector<4x324xf32>
    %20 = arith.addf %14, %19 : vector<4x324xf32>
    %21 = vector.extract_strided_slice %1 {offsets = [0, 1, 0], sizes = [3, 18, 18], strides = [1, 1, 1]} : vector<3x20x20xf32> to vector<3x18x18xf32>
    %22 = vector.shape_cast %21 : vector<3x18x18xf32> to vector<3x324xf32>
    %c1_16 = arith.constant 1 : index
    %c0_17 = arith.constant 0 : index
    %c0_18 = arith.constant 0 : index
    %c0_19 = arith.constant 0 : index
    %23 = vector.load %arg3[%c1_16, %c0_17, %c0_18, %c0_19] : memref<3x3x4x3xf32, #tpu.memory_space<vmem>>, vector<1x1x4x3xf32>
    %24 = vector.shape_cast %23 : vector<1x1x4x3xf32> to vector<4x3xf32>
    %cst_20 = arith.constant dense<0.000000e+00> : vector<4x324xf32>
    %25 = tpu.matmul %24, %22, %cst_20 {dimension_numbers = #tpu.dot_dimension_numbers<[1], [0], [0], [1], [0, 0, 1, 1], [], []>} : vector<4x3xf32>, vector<3x324xf32>, vector<4x324xf32> -> vector<4x324xf32>
    %26 = arith.addf %20, %25 : vector<4x324xf32>
    %27 = vector.extract_strided_slice %1 {offsets = [0, 1, 1], sizes = [3, 18, 18], strides = [1, 1, 1]} : vector<3x20x20xf32> to vector<3x18x18xf32>
    %28 = vector.shape_cast %27 : vector<3x18x18xf32> to vector<3x324xf32>
    %c1_21 = arith.constant 1 : index
    %c1_22 = arith.constant 1 : index
    %c0_23 = arith.constant 0 : index
    %c0_24 = arith.constant 0 : index
    %29 = vector.load %arg3[%c1_21, %c1_22, %c0_23, %c0_24] : memref<3x3x4x3xf32, #tpu.memory_space<vmem>>, vector<1x1x4x3xf32>
    %30 = vector.shape_cast %29 : vector<1x1x4x3xf32> to vector<4x3xf32>
    %cst_25 = arith.constant dense<0.000000e+00> : vector<4x324xf32>
    %31 = tpu.matmul %30, %28, %cst_25 {dimension_numbers = #tpu.dot_dimension_numbers<[1], [0], [0], [1], [0, 0, 1, 1], [], []>} : vector<4x3xf32>, vector<3x324xf32>, vector<4x324xf32> -> vector<4x324xf32>
    %32 = arith.addf %26, %31 : vector<4x324xf32>
    %33 = vector.extract_strided_slice %1 {offsets = [0, 1, 2], sizes = [3, 18, 18], strides = [1, 1, 1]} : vector<3x20x20xf32> to vector<3x18x18xf32>
    %34 = vector.shape_cast %33 : vector<3x18x18xf32> to vector<3x324xf32>
    %c1_26 = arith.constant 1 : index
    %c2_27 = arith.constant 2 : index
    %c0_28 = arith.constant 0 : index
    %c0_29 = arith.constant 0 : index
    %35 = vector.load %arg3[%c1_26, %c2_27, %c0_28, %c0_29] : memref<3x3x4x3xf32, #tpu.memory_space<vmem>>, vector<1x1x4x3xf32>
    %36 = vector.shape_cast %35 : vector<1x1x4x3xf32> to vector<4x3xf32>
    %cst_30 = arith.constant dense<0.000000e+00> : vector<4x324xf32>
    %37 = tpu.matmul %36, %34, %cst_30 {dimension_numbers = #tpu.dot_dimension_numbers<[1], [0], [0], [1], [0, 0, 1, 1], [], []>} : vector<4x3xf32>, vector<3x324xf32>, vector<4x324xf32> -> vector<4x324xf32>
    %38 = arith.addf %32, %37 : vector<4x324xf32>
    %39 = vector.extract_strided_slice %1 {offsets = [0, 2, 0], sizes = [3, 18, 18], strides = [1, 1, 1]} : vector<3x20x20xf32> to vector<3x18x18xf32>
    %40 = vector.shape_cast %39 : vector<3x18x18xf32> to vector<3x324xf32>
    %c2_31 = arith.constant 2 : index
    %c0_32 = arith.constant 0 : index
    %c0_33 = arith.constant 0 : index
    %c0_34 = arith.constant 0 : index
    %41 = vector.load %arg3[%c2_31, %c0_32, %c0_33, %c0_34] : memref<3x3x4x3xf32, #tpu.memory_space<vmem>>, vector<1x1x4x3xf32>
    %42 = vector.shape_cast %41 : vector<1x1x4x3xf32> to vector<4x3xf32>
    %cst_35 = arith.constant dense<0.000000e+00> : vector<4x324xf32>
    %43 = tpu.matmul %42, %40, %cst_35 {dimension_numbers = #tpu.dot_dimension_numbers<[1], [0], [0], [1], [0, 0, 1, 1], [], []>} : vector<4x3xf32>, vector<3x324xf32>, vector<4x324xf32> -> vector<4x324xf32>
    %44 = arith.addf %38, %43 : vector<4x324xf32>
    %45 = vector.extract_strided_slice %1 {offsets = [0, 2, 1], sizes = [3, 18, 18], strides = [1, 1, 1]} : vector<3x20x20xf32> to vector<3x18x18xf32>
    %46 = vector.shape_cast %45 : vector<3x18x18xf32> to vector<3x324xf32>
    %c2_36 = arith.constant 2 : index
    %c1_37 = arith.constant 1 : index
    %c0_38 = arith.constant 0 : index
    %c0_39 = arith.constant 0 : index
    %47 = vector.load %arg3[%c2_36, %c1_37, %c0_38, %c0_39] : memref<3x3x4x3xf32, #tpu.memory_space<vmem>>, vector<1x1x4x3xf32>
    %48 = vector.shape_cast %47 : vector<1x1x4x3xf32> to vector<4x3xf32>
    %cst_40 = arith.constant dense<0.000000e+00> : vector<4x324xf32>
    %49 = tpu.matmul %48, %46, %cst_40 {dimension_numbers = #tpu.dot_dimension_numbers<[1], [0], [0], [1], [0, 0, 1, 1], [], []>} : vector<4x3xf32>, vector<3x324xf32>, vector<4x324xf32> -> vector<4x324xf32>
    %50 = arith.addf %44, %49 : vector<4x324xf32>
    %51 = vector.extract_strided_slice %1 {offsets = [0, 2, 2], sizes = [3, 18, 18], strides = [1, 1, 1]} : vector<3x20x20xf32> to vector<3x18x18xf32>
    %52 = vector.shape_cast %51 : vector<3x18x18xf32> to vector<3x324xf32>
    %c2_41 = arith.constant 2 : index
    %c2_42 = arith.constant 2 : index
    %c0_43 = arith.constant 0 : index
    %c0_44 = arith.constant 0 : index
    %53 = vector.load %arg3[%c2_41, %c2_42, %c0_43, %c0_44] : memref<3x3x4x3xf32, #tpu.memory_space<vmem>>, vector<1x1x4x3xf32>
    %54 = vector.shape_cast %53 : vector<1x1x4x3xf32> to vector<4x3xf32>
    %cst_45 = arith.constant dense<0.000000e+00> : vector<4x324xf32>
    %55 = tpu.matmul %54, %52, %cst_45 {dimension_numbers = #tpu.dot_dimension_numbers<[1], [0], [0], [1], [0, 0, 1, 1], [], []>} : vector<4x3xf32>, vector<3x324xf32>, vector<4x324xf32> -> vector<4x324xf32>
    %56 = arith.addf %50, %55 : vector<4x324xf32>
    %c0_46 = arith.constant 0 : index
    %c0_47 = arith.constant 0 : index
    %57 = vector.load %arg4[%c0_46, %c0_47] : memref<4x1xf32, #tpu.memory_space<vmem>>, vector<4x1xf32>
    %58 = vector.broadcast %57 : vector<4x1xf32> to vector<4x324xf32>
    %59 = arith.addf %56, %58 : vector<4x324xf32>
    %cst_48 = arith.constant 0.000000e+00 : f32
    %60 = vector.broadcast %cst_48 : f32 to vector<4x324xf32>
    %61 = arith.maximumf %59, %60 : vector<4x324xf32>
    %c0_49 = arith.constant 0 : index
    %c0_50 = arith.constant 0 : index
    %62 = vector.load %arg5[%c0_49, %c0_50] : memref<8x4xf32, #tpu.memory_space<vmem>>, vector<8x4xf32>
    %cst_51 = arith.constant dense<0.000000e+00> : vector<8x324xf32>
    %63 = tpu.matmul %62, %61, %cst_51 {dimension_numbers = #tpu.dot_dimension_numbers<[1], [0], [0], [1], [0, 0, 1, 1], [], []>} : vector<8x4xf32>, vector<4x324xf32>, vector<8x324xf32> -> vector<8x324xf32>
    %c0_52 = arith.constant 0 : index
    %c0_53 = arith.constant 0 : index
    %64 = vector.load %arg6[%c0_52, %c0_53] : memref<8x1xf32, #tpu.memory_space<vmem>>, vector<8x1xf32>
    %65 = vector.broadcast %64 : vector<8x1xf32> to vector<8x324xf32>
    %66 = arith.addf %63, %65 : vector<8x324xf32>
    %cst_54 = arith.constant 0.000000e+00 : f32
    %67 = vector.broadcast %cst_54 : f32 to vector<8x324xf32>
    %68 = arith.maximumf %66, %67 : vector<8x324xf32>
    %69 = vector.shape_cast %68 : vector<8x324xf32> to vector<8x18x18xf32>
    %c16_i32 = arith.constant 16 : i32
    %70 = arith.muli %arg1, %c16_i32 : i32
    %c1_i32 = arith.constant 1 : i32
    %71 = arith.subi %70, %c1_i32 : i32
    %72 = tpu.iota {dimensions = array<i32: 1>} : vector<1x18x18xi32>
    %73 = vector.broadcast %71 : i32 to vector<1x18x18xi32>
    %74 = arith.addi %73, %72 : vector<1x18x18xi32>
    %75 = tpu.iota {dimensions = array<i32: 2>} : vector<1x18x18xi32>
    %c1_i32_55 = arith.constant 1 : i32
    %76 = vector.broadcast %c1_i32_55 : i32 to vector<1x18x18xi32>
    %77 = arith.subi %75, %76 : vector<1x18x18xi32>
    %c0_i32 = arith.constant 0 : i32
    %78 = vector.broadcast %c0_i32 : i32 to vector<1x18x18xi32>
    %79 = arith.cmpi sge, %74, %78 : vector<1x18x18xi32>
    %c16_i32_56 = arith.constant 16 : i32
    %80 = vector.broadcast %c16_i32_56 : i32 to vector<1x18x18xi32>
    %81 = arith.cmpi slt, %74, %80 : vector<1x18x18xi32>
    %82 = arith.andi %79, %81 : vector<1x18x18xi1>
    %c0_i32_57 = arith.constant 0 : i32
    %83 = vector.broadcast %c0_i32_57 : i32 to vector<1x18x18xi32>
    %84 = arith.cmpi sge, %77, %83 : vector<1x18x18xi32>
    %85 = arith.andi %82, %84 : vector<1x18x18xi1>
    %c16_i32_58 = arith.constant 16 : i32
    %86 = vector.broadcast %c16_i32_58 : i32 to vector<1x18x18xi32>
    %87 = arith.cmpi slt, %77, %86 : vector<1x18x18xi32>
    %88 = arith.andi %85, %87 : vector<1x18x18xi1>
    %cst_59 = arith.constant 0.000000e+00 : f32
    %89 = vector.shape_cast %88 : vector<1x18x18xi1> to vector<1x18x18xi1>
    %90 = vector.broadcast %89 : vector<1x18x18xi1> to vector<8x18x18xi1>
    %91 = vector.broadcast %cst_59 : f32 to vector<8x18x18xf32>
    %92 = arith.select %90, %69, %91 : vector<8x18x18xi1>, vector<8x18x18xf32>
    %cst_60 = arith.constant 0.000000e+00 : f32
    %93 = vector.broadcast %cst_60 : f32 to vector<8x256xf32>
    %94 = vector.extract_strided_slice %92 {offsets = [0, 0, 0], sizes = [8, 16, 16], strides = [1, 1, 1]} : vector<8x18x18xf32> to vector<8x16x16xf32>
    %95 = vector.shape_cast %94 : vector<8x16x16xf32> to vector<8x256xf32>
    %c0_61 = arith.constant 0 : index
    %c0_62 = arith.constant 0 : index
    %c0_63 = arith.constant 0 : index
    %c0_64 = arith.constant 0 : index
    %96 = vector.load %arg7[%c0_61, %c0_62, %c0_63, %c0_64] : memref<3x3x8x8xf32, #tpu.memory_space<vmem>>, vector<1x1x8x8xf32>
    %97 = vector.shape_cast %96 : vector<1x1x8x8xf32> to vector<8x8xf32>
    %cst_65 = arith.constant dense<0.000000e+00> : vector<8x256xf32>
    %98 = tpu.matmul %97, %95, %cst_65 {dimension_numbers = #tpu.dot_dimension_numbers<[1], [0], [0], [1], [0, 0, 1, 1], [], []>} : vector<8x8xf32>, vector<8x256xf32>, vector<8x256xf32> -> vector<8x256xf32>
    %99 = arith.addf %93, %98 : vector<8x256xf32>
    %100 = vector.extract_strided_slice %92 {offsets = [0, 0, 1], sizes = [8, 16, 16], strides = [1, 1, 1]} : vector<8x18x18xf32> to vector<8x16x16xf32>
    %101 = vector.shape_cast %100 : vector<8x16x16xf32> to vector<8x256xf32>
    %c0_66 = arith.constant 0 : index
    %c1_67 = arith.constant 1 : index
    %c0_68 = arith.constant 0 : index
    %c0_69 = arith.constant 0 : index
    %102 = vector.load %arg7[%c0_66, %c1_67, %c0_68, %c0_69] : memref<3x3x8x8xf32, #tpu.memory_space<vmem>>, vector<1x1x8x8xf32>
    %103 = vector.shape_cast %102 : vector<1x1x8x8xf32> to vector<8x8xf32>
    %cst_70 = arith.constant dense<0.000000e+00> : vector<8x256xf32>
    %104 = tpu.matmul %103, %101, %cst_70 {dimension_numbers = #tpu.dot_dimension_numbers<[1], [0], [0], [1], [0, 0, 1, 1], [], []>} : vector<8x8xf32>, vector<8x256xf32>, vector<8x256xf32> -> vector<8x256xf32>
    %105 = arith.addf %99, %104 : vector<8x256xf32>
    %106 = vector.extract_strided_slice %92 {offsets = [0, 0, 2], sizes = [8, 16, 16], strides = [1, 1, 1]} : vector<8x18x18xf32> to vector<8x16x16xf32>
    %107 = vector.shape_cast %106 : vector<8x16x16xf32> to vector<8x256xf32>
    %c0_71 = arith.constant 0 : index
    %c2_72 = arith.constant 2 : index
    %c0_73 = arith.constant 0 : index
    %c0_74 = arith.constant 0 : index
    %108 = vector.load %arg7[%c0_71, %c2_72, %c0_73, %c0_74] : memref<3x3x8x8xf32, #tpu.memory_space<vmem>>, vector<1x1x8x8xf32>
    %109 = vector.shape_cast %108 : vector<1x1x8x8xf32> to vector<8x8xf32>
    %cst_75 = arith.constant dense<0.000000e+00> : vector<8x256xf32>
    %110 = tpu.matmul %109, %107, %cst_75 {dimension_numbers = #tpu.dot_dimension_numbers<[1], [0], [0], [1], [0, 0, 1, 1], [], []>} : vector<8x8xf32>, vector<8x256xf32>, vector<8x256xf32> -> vector<8x256xf32>
    %111 = arith.addf %105, %110 : vector<8x256xf32>
    %112 = vector.extract_strided_slice %92 {offsets = [0, 1, 0], sizes = [8, 16, 16], strides = [1, 1, 1]} : vector<8x18x18xf32> to vector<8x16x16xf32>
    %113 = vector.shape_cast %112 : vector<8x16x16xf32> to vector<8x256xf32>
    %c1_76 = arith.constant 1 : index
    %c0_77 = arith.constant 0 : index
    %c0_78 = arith.constant 0 : index
    %c0_79 = arith.constant 0 : index
    %114 = vector.load %arg7[%c1_76, %c0_77, %c0_78, %c0_79] : memref<3x3x8x8xf32, #tpu.memory_space<vmem>>, vector<1x1x8x8xf32>
    %115 = vector.shape_cast %114 : vector<1x1x8x8xf32> to vector<8x8xf32>
    %cst_80 = arith.constant dense<0.000000e+00> : vector<8x256xf32>
    %116 = tpu.matmul %115, %113, %cst_80 {dimension_numbers = #tpu.dot_dimension_numbers<[1], [0], [0], [1], [0, 0, 1, 1], [], []>} : vector<8x8xf32>, vector<8x256xf32>, vector<8x256xf32> -> vector<8x256xf32>
    %117 = arith.addf %111, %116 : vector<8x256xf32>
    %118 = vector.extract_strided_slice %92 {offsets = [0, 1, 1], sizes = [8, 16, 16], strides = [1, 1, 1]} : vector<8x18x18xf32> to vector<8x16x16xf32>
    %119 = vector.shape_cast %118 : vector<8x16x16xf32> to vector<8x256xf32>
    %c1_81 = arith.constant 1 : index
    %c1_82 = arith.constant 1 : index
    %c0_83 = arith.constant 0 : index
    %c0_84 = arith.constant 0 : index
    %120 = vector.load %arg7[%c1_81, %c1_82, %c0_83, %c0_84] : memref<3x3x8x8xf32, #tpu.memory_space<vmem>>, vector<1x1x8x8xf32>
    %121 = vector.shape_cast %120 : vector<1x1x8x8xf32> to vector<8x8xf32>
    %cst_85 = arith.constant dense<0.000000e+00> : vector<8x256xf32>
    %122 = tpu.matmul %121, %119, %cst_85 {dimension_numbers = #tpu.dot_dimension_numbers<[1], [0], [0], [1], [0, 0, 1, 1], [], []>} : vector<8x8xf32>, vector<8x256xf32>, vector<8x256xf32> -> vector<8x256xf32>
    %123 = arith.addf %117, %122 : vector<8x256xf32>
    %124 = vector.extract_strided_slice %92 {offsets = [0, 1, 2], sizes = [8, 16, 16], strides = [1, 1, 1]} : vector<8x18x18xf32> to vector<8x16x16xf32>
    %125 = vector.shape_cast %124 : vector<8x16x16xf32> to vector<8x256xf32>
    %c1_86 = arith.constant 1 : index
    %c2_87 = arith.constant 2 : index
    %c0_88 = arith.constant 0 : index
    %c0_89 = arith.constant 0 : index
    %126 = vector.load %arg7[%c1_86, %c2_87, %c0_88, %c0_89] : memref<3x3x8x8xf32, #tpu.memory_space<vmem>>, vector<1x1x8x8xf32>
    %127 = vector.shape_cast %126 : vector<1x1x8x8xf32> to vector<8x8xf32>
    %cst_90 = arith.constant dense<0.000000e+00> : vector<8x256xf32>
    %128 = tpu.matmul %127, %125, %cst_90 {dimension_numbers = #tpu.dot_dimension_numbers<[1], [0], [0], [1], [0, 0, 1, 1], [], []>} : vector<8x8xf32>, vector<8x256xf32>, vector<8x256xf32> -> vector<8x256xf32>
    %129 = arith.addf %123, %128 : vector<8x256xf32>
    %130 = vector.extract_strided_slice %92 {offsets = [0, 2, 0], sizes = [8, 16, 16], strides = [1, 1, 1]} : vector<8x18x18xf32> to vector<8x16x16xf32>
    %131 = vector.shape_cast %130 : vector<8x16x16xf32> to vector<8x256xf32>
    %c2_91 = arith.constant 2 : index
    %c0_92 = arith.constant 0 : index
    %c0_93 = arith.constant 0 : index
    %c0_94 = arith.constant 0 : index
    %132 = vector.load %arg7[%c2_91, %c0_92, %c0_93, %c0_94] : memref<3x3x8x8xf32, #tpu.memory_space<vmem>>, vector<1x1x8x8xf32>
    %133 = vector.shape_cast %132 : vector<1x1x8x8xf32> to vector<8x8xf32>
    %cst_95 = arith.constant dense<0.000000e+00> : vector<8x256xf32>
    %134 = tpu.matmul %133, %131, %cst_95 {dimension_numbers = #tpu.dot_dimension_numbers<[1], [0], [0], [1], [0, 0, 1, 1], [], []>} : vector<8x8xf32>, vector<8x256xf32>, vector<8x256xf32> -> vector<8x256xf32>
    %135 = arith.addf %129, %134 : vector<8x256xf32>
    %136 = vector.extract_strided_slice %92 {offsets = [0, 2, 1], sizes = [8, 16, 16], strides = [1, 1, 1]} : vector<8x18x18xf32> to vector<8x16x16xf32>
    %137 = vector.shape_cast %136 : vector<8x16x16xf32> to vector<8x256xf32>
    %c2_96 = arith.constant 2 : index
    %c1_97 = arith.constant 1 : index
    %c0_98 = arith.constant 0 : index
    %c0_99 = arith.constant 0 : index
    %138 = vector.load %arg7[%c2_96, %c1_97, %c0_98, %c0_99] : memref<3x3x8x8xf32, #tpu.memory_space<vmem>>, vector<1x1x8x8xf32>
    %139 = vector.shape_cast %138 : vector<1x1x8x8xf32> to vector<8x8xf32>
    %cst_100 = arith.constant dense<0.000000e+00> : vector<8x256xf32>
    %140 = tpu.matmul %139, %137, %cst_100 {dimension_numbers = #tpu.dot_dimension_numbers<[1], [0], [0], [1], [0, 0, 1, 1], [], []>} : vector<8x8xf32>, vector<8x256xf32>, vector<8x256xf32> -> vector<8x256xf32>
    %141 = arith.addf %135, %140 : vector<8x256xf32>
    %142 = vector.extract_strided_slice %92 {offsets = [0, 2, 2], sizes = [8, 16, 16], strides = [1, 1, 1]} : vector<8x18x18xf32> to vector<8x16x16xf32>
    %143 = vector.shape_cast %142 : vector<8x16x16xf32> to vector<8x256xf32>
    %c2_101 = arith.constant 2 : index
    %c2_102 = arith.constant 2 : index
    %c0_103 = arith.constant 0 : index
    %c0_104 = arith.constant 0 : index
    %144 = vector.load %arg7[%c2_101, %c2_102, %c0_103, %c0_104] : memref<3x3x8x8xf32, #tpu.memory_space<vmem>>, vector<1x1x8x8xf32>
    %145 = vector.shape_cast %144 : vector<1x1x8x8xf32> to vector<8x8xf32>
    %cst_105 = arith.constant dense<0.000000e+00> : vector<8x256xf32>
    %146 = tpu.matmul %145, %143, %cst_105 {dimension_numbers = #tpu.dot_dimension_numbers<[1], [0], [0], [1], [0, 0, 1, 1], [], []>} : vector<8x8xf32>, vector<8x256xf32>, vector<8x256xf32> -> vector<8x256xf32>
    %147 = arith.addf %141, %146 : vector<8x256xf32>
    %c0_106 = arith.constant 0 : index
    %c0_107 = arith.constant 0 : index
    %148 = vector.load %arg8[%c0_106, %c0_107] : memref<8x1xf32, #tpu.memory_space<vmem>>, vector<8x1xf32>
    %149 = vector.broadcast %148 : vector<8x1xf32> to vector<8x256xf32>
    %150 = arith.addf %147, %149 : vector<8x256xf32>
    %cst_108 = arith.constant 0.000000e+00 : f32
    %151 = vector.broadcast %cst_108 : f32 to vector<8x256xf32>
    %152 = arith.maximumf %150, %151 : vector<8x256xf32>
    %c0_109 = arith.constant 0 : index
    %c0_110 = arith.constant 0 : index
    %153 = vector.load %arg9[%c0_109, %c0_110] : memref<13x8xf32, #tpu.memory_space<vmem>>, vector<13x8xf32>
    %cst_111 = arith.constant dense<0.000000e+00> : vector<13x256xf32>
    %154 = tpu.matmul %153, %152, %cst_111 {dimension_numbers = #tpu.dot_dimension_numbers<[1], [0], [0], [1], [0, 0, 1, 1], [], []>} : vector<13x8xf32>, vector<8x256xf32>, vector<13x256xf32> -> vector<13x256xf32>
    %c0_112 = arith.constant 0 : index
    %c0_113 = arith.constant 0 : index
    %155 = vector.load %arg10[%c0_112, %c0_113] : memref<13x1xf32, #tpu.memory_space<vmem>>, vector<13x1xf32>
    %156 = vector.broadcast %155 : vector<13x1xf32> to vector<13x256xf32>
    %157 = arith.addf %154, %156 : vector<13x256xf32>
    %cst_114 = arith.constant 0.000000e+00 : f32
    %158 = vector.broadcast %cst_114 : f32 to vector<13x256xf32>
    %159 = arith.maximumf %157, %158 : vector<13x256xf32>
    %160 = vector.extract_strided_slice %1 {offsets = [0, 2, 2], sizes = [3, 16, 16], strides = [1, 1, 1]} : vector<3x20x20xf32> to vector<3x16x16xf32>
    %161 = vector.shape_cast %160 : vector<3x16x16xf32> to vector<3x256xf32>
    %c0_115 = arith.constant 0 : index
    %c0_116 = arith.constant 0 : index
    %162 = vector.load %arg11[%c0_115, %c0_116] : memref<16x3xf32, #tpu.memory_space<vmem>>, vector<16x3xf32>
    %cst_117 = arith.constant dense<0.000000e+00> : vector<16x256xf32>
    %163 = tpu.matmul %162, %161, %cst_117 {dimension_numbers = #tpu.dot_dimension_numbers<[1], [0], [0], [1], [0, 0, 1, 1], [], []>} : vector<16x3xf32>, vector<3x256xf32>, vector<16x256xf32> -> vector<16x256xf32>
    %c0_118 = arith.constant 0 : index
    %c0_119 = arith.constant 0 : index
    %164 = vector.load %arg12[%c0_118, %c0_119] : memref<16x13xf32, #tpu.memory_space<vmem>>, vector<16x13xf32>
    %cst_120 = arith.constant dense<0.000000e+00> : vector<16x256xf32>
    %165 = tpu.matmul %164, %159, %cst_120 {dimension_numbers = #tpu.dot_dimension_numbers<[1], [0], [0], [1], [0, 0, 1, 1], [], []>} : vector<16x13xf32>, vector<13x256xf32>, vector<16x256xf32> -> vector<16x256xf32>
    %166 = arith.addf %163, %165 : vector<16x256xf32>
    %c0_121 = arith.constant 0 : index
    %c0_122 = arith.constant 0 : index
    %167 = vector.load %arg13[%c0_121, %c0_122] : memref<16x1xf32, #tpu.memory_space<vmem>>, vector<16x1xf32>
    %168 = vector.broadcast %167 : vector<16x1xf32> to vector<16x256xf32>
    %169 = arith.addf %166, %168 : vector<16x256xf32>
    %c0_123 = arith.constant 0 : index
    %c0_124 = arith.constant 0 : index
    %c0_125 = arith.constant 0 : index
    %170 = vector.load %arg14[%c0_123, %c0_124, %c0_125] : memref<1x16x256xf32, #tpu.memory_space<vmem>>, vector<1x16x256xf32>
    %171 = vector.shape_cast %170 : vector<1x16x256xf32> to vector<16x256xf32>
    %172 = vector.shape_cast %169 : vector<16x256xf32> to vector<1x16x256xf32>
    tpu.vector_store %arg14[%c0_123, %c0_124, %c0_125], %172 {strides = array<i32>} : memref<1x16x256xf32, #tpu.memory_space<vmem>>, vector<1x16x256xf32>,
    return
  }
  func.func @transform_0(%arg0: i32, %arg1: i32) -> (i32, i32, i32, i32) {
    %c1_i32 = arith.constant 1 : i32
    %0 = arith.muli %arg0, %c1_i32 : i32
    %1 = arith.addi %0, %arg1 : i32
    %c0_i32 = arith.constant 0 : i32
    %c0_i32_0 = arith.constant 0 : i32
    %c0_i32_1 = arith.constant 0 : i32
    %c0_i32_2 = arith.constant 0 : i32
    return %1, %c0_i32, %c0_i32_0, %c0_i32_1 : i32, i32, i32, i32
  }
  func.func @transform_1(%arg0: i32, %arg1: i32) -> (i32, i32, i32, i32) {
    %c0_i32 = arith.constant 0 : i32
    %c0_i32_0 = arith.constant 0 : i32
    %c0_i32_1 = arith.constant 0 : i32
    %c0_i32_2 = arith.constant 0 : i32
    %c0_i32_3 = arith.constant 0 : i32
    return %c0_i32, %c0_i32_0, %c0_i32_1, %c0_i32_2 : i32, i32, i32, i32
  }
  func.func @transform_2(%arg0: i32, %arg1: i32) -> (i32, i32) {
    %c0_i32 = arith.constant 0 : i32
    %c0_i32_0 = arith.constant 0 : i32
    %c0_i32_1 = arith.constant 0 : i32
    return %c0_i32, %c0_i32_0 : i32, i32
  }
  func.func @transform_3(%arg0: i32, %arg1: i32) -> (i32, i32) {
    %c0_i32 = arith.constant 0 : i32
    %c0_i32_0 = arith.constant 0 : i32
    %c0_i32_1 = arith.constant 0 : i32
    return %c0_i32, %c0_i32_0 : i32, i32
  }
  func.func @transform_4(%arg0: i32, %arg1: i32) -> (i32, i32) {
    %c0_i32 = arith.constant 0 : i32
    %c0_i32_0 = arith.constant 0 : i32
    %c0_i32_1 = arith.constant 0 : i32
    return %c0_i32, %c0_i32_0 : i32, i32
  }
  func.func @transform_5(%arg0: i32, %arg1: i32) -> (i32, i32, i32, i32) {
    %c0_i32 = arith.constant 0 : i32
    %c0_i32_0 = arith.constant 0 : i32
    %c0_i32_1 = arith.constant 0 : i32
    %c0_i32_2 = arith.constant 0 : i32
    %c0_i32_3 = arith.constant 0 : i32
    return %c0_i32, %c0_i32_0, %c0_i32_1, %c0_i32_2 : i32, i32, i32, i32
  }
  func.func @transform_6(%arg0: i32, %arg1: i32) -> (i32, i32) {
    %c0_i32 = arith.constant 0 : i32
    %c0_i32_0 = arith.constant 0 : i32
    %c0_i32_1 = arith.constant 0 : i32
    return %c0_i32, %c0_i32_0 : i32, i32
  }
  func.func @transform_7(%arg0: i32, %arg1: i32) -> (i32, i32) {
    %c0_i32 = arith.constant 0 : i32
    %c0_i32_0 = arith.constant 0 : i32
    %c0_i32_1 = arith.constant 0 : i32
    return %c0_i32, %c0_i32_0 : i32, i32
  }
  func.func @transform_8(%arg0: i32, %arg1: i32) -> (i32, i32) {
    %c0_i32 = arith.constant 0 : i32
    %c0_i32_0 = arith.constant 0 : i32
    %c0_i32_1 = arith.constant 0 : i32
    return %c0_i32, %c0_i32_0 : i32, i32
  }
  func.func @transform_9(%arg0: i32, %arg1: i32) -> (i32, i32) {
    %c0_i32 = arith.constant 0 : i32
    %c0_i32_0 = arith.constant 0 : i32
    %c0_i32_1 = arith.constant 0 : i32
    return %c0_i32, %c0_i32_0 : i32, i32
  }
  func.func @transform_10(%arg0: i32, %arg1: i32) -> (i32, i32) {
    %c0_i32 = arith.constant 0 : i32
    %c0_i32_0 = arith.constant 0 : i32
    %c0_i32_1 = arith.constant 0 : i32
    return %c0_i32, %c0_i32_0 : i32, i32
  }
  func.func @transform_11(%arg0: i32, %arg1: i32) -> (i32, i32) {
    %c0_i32 = arith.constant 0 : i32
    %c0_i32_0 = arith.constant 0 : i32
    %c0_i32_1 = arith.constant 0 : i32
    return %c0_i32, %c0_i32_0 : i32, i32
  }
  func.func @transform_12(%arg0: i32, %arg1: i32) -> (i32, i32, i32) {
    %c0_i32 = arith.constant 0 : i32
    %c0_i32_0 = arith.constant 0 : i32
    return %arg0, %c0_i32, %arg1 : i32, i32, i32
  }
}

</mosaic_0001>

<bundles_post_ra>
// kernel: tpu_custom_call.1
= control target key start
LH: loop header
LB: loop body
LE: loop exit
PB: predicated region body
PF: predicated region fallthrough
CT: control target
= control target key end

     0   :  { %s14306_s0 = inlined_call_operand.vmem [shape: f32[2,3,20,20], index: 0, kind: input, shape index: {}]   ;;  %s14307_s1 = inlined_call_operand.vmem [shape: f32[3,3,4,3], index: 1, kind: input, shape index: {}]   ;;  %s14308_s2 = inlined_call_operand.vmem [shape: f32[4,1], index: 2, kind: input, shape index: {}]   ;;  %s14309_s3 = inlined_call_operand.vmem [shape: f32[8,4], index: 3, kind: input, shape index: {}]   ;;  %s14310_s4 = inlined_call_operand.vmem [shape: f32[8,1], index: 4, kind: input, shape index: {}]   ;;  %s14311_s5 = inlined_call_operand.vmem [shape: f32[3,3,8,8], index: 5, kind: input, shape index: {}]   ;;  %s14312_s6 = inlined_call_operand.vmem [shape: f32[8,1], index: 6, kind: input, shape index: {}]   ;;  %s14313_s7 = inlined_call_operand.vmem [shape: f32[13,8], index: 7, kind: input, shape index: {}]   ;;  %s14314_s8 = inlined_call_operand.vmem [shape: f32[13,1], index: 8, kind: input, shape index: {}]   ;;  %s14315_s9 = inlined_call_operand.vmem [shape: f32[16,3], index: 9, kind: input, shape index: {}]   ;;  %s14316_s10 = inlined_call_operand.vmem [shape: f32[16,13], index: 10, kind: input, shape index: {}]   ;;  %s14317_s11 = inlined_call_operand.vmem [shape: f32[16,1], index: 11, kind: input, shape index: {}]   ;;  %s14318_s12 = inlined_call_operand.hbm [shape: f32[2,16,256], index: 12, kind: output, shape index: {}]  }
   0x1   :  { %14615 = sst [smem:[#allocation147_spill]] %s14306_s0 }
   0x2   :  { %14616 = sst [smem:[#allocation148_spill]] %s14318_s12 }
   0x3   :  { %17 = vsyncpa [#allocation3], 0 }
   0x4   :  { %19 = vsyncpa [#allocation3 + $0x1], 0  ;;  %s10033_s21 = smov 0   ;;  %s10035_s22 = smov 0  }
   0x5   :  { %s10037_s23 = smov 0   ;;  %s10039_s24 = smov 0  }
   0x6   :  { %s10041_s25 = smov 0   ;;  %s10043_s26 = smov 0  }
   0x7 LB: > { %14617 = sst [smem:[#allocation5_spill]] %s9900_s21  ;;  %s9523_s27 = sadd.s32 4294967295, %s9920_s26   ;;  %s9920_s26 = sphi %s10043_s26, %s25_s26   ;;  %s9916_s25 = sphi %s10041_s25, %s15280_s25   ;;  %s9912_s24 = sphi %s10039_s24, %s15279_s24   ;;  %s9908_s23 = sphi %s10037_s23, %s15278_s23   ;;  %s9904_s22 = sphi %s10035_s22, %s15282_s22   ;;  %s9900_s21 = sphi %s10033_s21, %s15281_s21  }
   0x8   : > { %14618 = sst [smem:[#allocation6_spill]] %s9908_s23  ;;  %s9524_s28 = sadd.s32 4294967294, %s9920_s26  }
   0x9   : > { %14619 = sst [smem:[#allocation7_spill]] %s9912_s24  ;;  %s37_s29 = sadd.s32 1, %s9916_s25 }
   0xa   : > { %14620 = sst [smem:[#allocation8_spill]] %s9916_s25  ;;  %s305_s30 = sadd.s32 1, %s9908_s23 }
   0xb   : > { %14621 = sst [smem:[#allocation9_spill]] %s9920_s26  ;;  %p39_p0 = scmp.ge.s32.totalorder %s37_s29, 2 }
   0xc   : > { %p315_p1 = scmp.ne.s32.totalorder %s9908_s23, %s9904_s22  ;;  %p316_p2 = scmp.eq.s32.totalorder %s9523_s27, 1 }
   0xd   : > { %p321_p3 = scmp.ne.s32.totalorder %s9904_s22, %s9900_s21  ;;  %s15284_s29 = smov (%p39_p0, %s37_s29), 0 }
   0xe   : > { %14622 = sst [smem:[#allocation10_spill]] %s15284_s29  ;;  %p10073_p4 = por %p316_p2, %p315_p1 }
   0xf   : > { %p322_p5 = scmp.eq.s32.totalorder %s9524_s28, 1  ;;  %s300_s14 = ssub.s32 %s9916_s25, %s15284_s29 }
  0x10   : > { %s14623_s13 = scalar_select %p10073_p4, 1, 0 }
  0x11   : > { %p9527_p6 = scmp.ge.s32.totalorder %s9920_s26, 1  ;;  %p303_p7 = scmp.eq.s32.totalorder %s300_s14, 0 }
  0x12   : > { %14624 = sst [smem:[#allocation11_spill]] %s14623_s13  ;;  %p10080_p8 = por %p322_p5, %p321_p3 }
  0x13   : > { %p383_p9 = scmp.lt.s32.totalorder %s9920_s26, 3 }
  0x14   : > { %s14625_s15 = scalar_select %p10080_p8, 1, 0 }
  0x15   : > { %s10086_s16 = scalar_select %p303_p7, %s9908_s23, %s305_s30  }
  0x16   : > { %14626 = sst [smem:[#allocation12_spill]] %s14625_s15  ;;  %p384_p10 = pnand %p9527_p6, %p383_p9 }
  0x17   : > { %14627 = sst [smem:[#allocation13_spill]] %s10086_s16 }
  0x18   : > { %387 = sbr.rel (%p384_p10) target bundleno = 2413 (0x96d), region = 68 }
  0x1f   : > { %p427_p11 = scmp.lt.s32.totalorder %s9912_s24, 1  ;;  %v14352_v0 = vmov 0.0   ;;  %v9923_v1 = vmov 1983009808   ;;  %v14333_v3 = vlaneseq  ;;  %s14628_s0 = sld [smem:[#allocation147_spill]]  ;;  %vm14374_vm0 = vcmask 1046528  }
  0x20   : > { %1202 = vmatprep.mubr.f32.mxu0 %v14352_v0  ;;  %1049 = vmatprep.mubr.f32.mxu1 %v14352_v0  ;;  %v446_v2 = vunpack.c.l.s4 %v9923_v1  ;;  %s14342_s28 = smov 126   ;;  %s14319_s30 = smov 127   ;;  %vm14379_vm1 = vcmask 1045504   ;;  %vm14393_vm2 = vcmask 130048   ;;  %vm662_vm3 = vcmask 146432  }
  0x21   : > { %s428_s17 = scalar_select %p427_p11, %s9912_s24, 1  ;;  %v10107_v8 = vshrl.u32 %v14333_v3, 7  ;;  %vm678_vm4 = vcmask 277504   ;;  %vm664_vm5 = vcmask 293888   ;;  %vm680_vm6 = vcmask 424960  }
  0x22   : > { %v447_v7 = vunpack.c.0.s8 %v446_v2  ;;  %s14334_s14 = smov 16   ;;  %s14340_s19 = smov 36   ;;  %vm14389_vm7 = vcmask 441344   ;;  %vm14397_vm8 = vcmask 572416   ;;  %vm14396_vm9 = vcmask 588800  }
  0x23   : > { %s9734_s18 = smul.u32 72, %s428_s17  ;;  %14629 = vst [vmem:[#allocation14_spill] sm:$0xff] %v10107_v8  ;;  %s14338_s17 = smov 18   ;;  %vm14394_vm10 = vcmask 719872   ;;  %vm670_vm11 = vcmask 736256   ;;  %vm14395_vm12 = vcmask 867328  }
  0x24   : > { %v10135_v19 = vsub.s32 %v447_v7, %v10107_v8  ;;  %s14329_s20 = smov 52   ;;  %s14643_s29 = smov 18   ;;  %vm14392_vm13 = vcmask 883712   ;;  %vm14391_vm14 = vcmask 1014784   ;;  %vm975_vm15 = vcmask 1042432  }
  0x25   : > { %s10095_s27 = scalar_lea.vmem %s14628_s0, %s9734_s18  ;;  %s14336_s18 = smov 34  }
  0x26   : > { %v10098_v4 = vld [vmem:[%s10095_s27 + $0x30] sm:$0xff]  ;;  %v10101_v5 = vld [vmem:[%s10095_s27] sm:$0xff]  ;;  %v10104_v6 = vld [vmem:[%s10095_s27 + $0x8] sm:$0xff]  ;;  %s14640_s0 = smov 124   ;;  %s14644_s25 = smov 34  }
  0x27   : > { %1291 = vrot.lane.b32.xlu1 %v10098_v4, %s14342_s28  ;;  %1279 = vrot.lane.b32.xlu0 %v10101_v5, %s14342_s28  ;;  %v1701_v9 = vrot.slane %v10101_v5, 1  ;;  %v1702_v10 = vrot.slane %v10104_v6, 1  ;;  %v1711_v11 = vrot.slane %v10098_v4, 1  ;;  %v10117_v12 = vld [vmem:[%s10095_s27 + $0x18] sm:$0xff]  ;;  %v10123_v14 = vld [vmem:[%s10095_s27 + $0x10] sm:$0xf]  ;;  %v444_v15 = vcombine.high %v10101_v5, %v10098_v4 }
  0x28   : > { %v10120_v13 = vld [vmem:[%s10095_s27 + $0x38] sm:$0xff]  ;;  %v10129_v17 = vrot.slane %v10123_v14, 1  ;;  %v10132_v18 = vld [vmem:[%s10095_s27 + $0x40] sm:$0xf]  ;;  %v459_v23 = vcombine.high %v10117_v12, %v14352_v0  ;;  %v443_v37 = vcombine.low %v10101_v5, %v10098_v4  ;;  %v1706_v38 = vrot.slane %v10117_v12, 1  ;;  %s14645_s16 = smov 36  }
  0x29   : > { %v1712_v16 = vrot.slane %v10120_v13, 1  ;;  %v10138_v20 = vrot.slane %v10132_v18, 1  ;;  %v1703_v21 = vsel %vm14374_vm0, %v1701_v9, %v1702_v10  ;;  %v10149_v24 = vld [vmem:[%s10095_s27 + $0x20] sm:$0xff]  ;;  %v10168_v31 = vrot.slane %v444_v15, %v10135_v19  ;;  %v10228_v52 = vld [vmem:[%s10095_s27 + $0x28] sm:$0xf]  ;;  %s14323_s27 = smov 54  }
  0x2a   : > { %v10153_v27 = vsel %vm14374_vm0, %v1702_v10, %v10129_v17  ;;  %v10171_v32 = vrot.slane %v459_v23, %v10135_v19  ;;  %v510_v33 = vcombine.low %v10104_v6, %v10120_v13  ;;  %v10186_v36 = vrot.slane %v10149_v24, %v10135_v19  ;;  %s14654_s23 = smov 106   ;;  %s14658_s15 = smov 108  }
  0x2b   : > { %1281 = vrot.lane.b32.xlu1 %v10104_v6, %s14342_s28  ;;  %1285 = vrot.lane.b32.xlu0 %v10117_v12, %s14342_s28  ;;  %v1713_v22 = vsel %vm14374_vm0, %v1711_v11, %v1712_v16  ;;  %v10157_v28 = vsel %vm14374_vm0, %v1712_v16, %v10138_v20  ;;  %v1707_v39 = vrot.slane %v10149_v24, 1  ;;  %v10199_v41 = vrot.slane %v443_v37, %v10135_v19  ;;  %s14380_s21 = smov 14   ;;  %s14384_s12 = smov 32  }
  0x2c   : > { %v1724_v25 = vcombine.low %v1703_v21, %v1713_v22  ;;  %v1725_v26 = vcombine.high %v1703_v21, %v1713_v22  ;;  %v1791_v29 = vcombine.low %v10153_v27, %v10157_v28  ;;  %v1792_v30 = vcombine.high %v10153_v27, %v10157_v28  ;;  %s14382_s26 = smov 50   ;;  %s14676_s13 = smov 32  }
  0x2d   : > { %v491_v34 = vcombine.high %v10168_v31, %v10171_v32  ;;  %v10182_v35 = vrot.slane %v510_v33, %v10135_v19  ;;  %v10203_v42 = vrot.slane %v10117_v12, %v10135_v19  ;;  %v490_v44 = vcombine.low %v10168_v31, %v10171_v32  ;;  %s9945_s24 = smov 114  }
  0x2e   : > { %v511_v45 = vcombine.high %v10104_v6, %v10120_v13  ;;  %v526_v46 = vcombine.high %v10149_v24, %v14352_v0  ;;  %v1708_v51 = vsel %vm14374_vm0, %v1706_v38, %v1707_v39  ;;  %v10238_v56 = vrot.slane %v10228_v52, 1 }
  0x2f   : > { %1287 = vrot.lane.b32.xlu1 %v10149_v24, %s14342_s28  ;;  %1293 = vrot.lane.b32.xlu0 %v10120_v13, %s14342_s28  ;;  %v541_v40 = vcombine.low %v10182_v35, %v10186_v36  ;;  %v542_v43 = vcombine.high %v10182_v35, %v10186_v36  ;;  %v474_v47 = vcombine.low %v10199_v41, %v10203_v42  ;;  %v2962_v23 = vrot.slane %v10101_v5, 2 }
  0x30   : > { %v475_v48 = vcombine.high %v10199_v41, %v10203_v42  ;;  %v10221_v49 = vrot.slane %v511_v45, %v10135_v19  ;;  %v10224_v50 = vrot.slane %v526_v46, %v10135_v19  ;;  %v1740_v55 = vcombine.high %v1708_v51, %v14352_v0  ;;  %14630 = vst [vmem:[#allocation15_spill] sm:$0xff] %v10238_v56 }
  0x31   : > { %v10248_v58 = vrot.slane %v1725_v26, %v10135_v19  ;;  %v1710_v59 = vsel %vm14374_vm0, %v1707_v39, %v10238_v56  ;;  %v10259_v61 = vrot.slane %v1708_v51, %v10135_v19  ;;  %v10262_v62 = vrot.slane %v1724_v25, %v10135_v19 }
  0x32   : > { %v557_v53 = vcombine.low %v10221_v49, %v10224_v50  ;;  %v558_v54 = vcombine.high %v10221_v49, %v10224_v50  ;;  %v10245_v57 = vrot.slane %v1740_v55, %v10135_v19  ;;  %v10253_v60 = vrot.slane %v1710_v59, %v10135_v19 }
  0x33   : > { %712 = vrot.lane.b32.xlu1 %v10117_v12, %s14319_s30  ;;  %706 = vrot.lane.b32.xlu0 %v10101_v5, %s14319_s30  ;;  %v10267_v1 = vrot.slane %v1791_v29, %v10135_v19  ;;  %v1755_v7 = vcombine.low %v10262_v62, %v10259_v61  ;;  %v1756_v9 = vcombine.high %v10262_v62, %v10259_v61  ;;  %v2963_v25 = vrot.slane %v10104_v6, 2 }
  0x34   : > { %v1772_v63 = vcombine.high %v10248_v58, %v10245_v57  ;;  %v1807_v11 = vcombine.high %v1710_v59, %v14352_v0  ;;  %v10294_v15 = vrot.slane %v1792_v30, %v10135_v19  ;;  %v2967_v26 = vrot.slane %v10117_v12, 2 }
  0x35   : > { %v1822_v2 = vcombine.low %v10267_v1, %v10253_v60  ;;  %v1823_v10 = vcombine.high %v10267_v1, %v10253_v60  ;;  %v2972_v5 = vrot.slane %v10098_v4, 2  ;;  %v10324_v12 = vrot.slane %v10123_v14, 2 }
  0x36   : > { %v10297_v16 = vrot.slane %v1807_v11, %v10135_v19  ;;  %v10351_v37 = vrot.slane %v10228_v52, 2  ;;  %v9926_v39 = vmov 1934713408   ;;  %vm14390_vm0 = vcmask 1031168  }
  0x37   : > { %708 = vrot.lane.b32.xlu1 %v10104_v6, %s14319_s30  ;;  %718 = vrot.lane.b32.xlu0 %v10098_v4, %s14319_s30  ;;  %v2973_v6 = vrot.slane %v10120_v13, 2  ;;  %14631 = vst [vmem:[#allocation16_spill] sm:$0xff] %v10324_v12  ;;  %v10337_v4 = vsel %vm14379_vm1, %v2963_v25, %v10324_v12  ;;  %v477_v45 = vunpack.c.l.s4 %v9926_v39 }
  0x38   : > { %14633 = vst [vmem:[#allocation18_spill] sm:$0xff] %v10351_v37 }
  0x39   : > { %v10333_v30 = vsel %vm14379_vm1, %v2972_v5, %v2973_v6  ;;  %v478_v46 = vunpack.c.0.s8 %v477_v45 }
  0x3b   : > { %720 = vrot.lane.b32.xlu0 %v10120_v13, %s14319_s30  ;;  %2119 = vrot.lane.b32.xlu1 %v1703_v21, %s14319_s30  ;;  %v10340_v13 = vrot.slane %v10132_v18, 2 }
  0x3d   : > { %14632 = vst [vmem:[#allocation17_spill] sm:$0xff] %v10340_v13  ;;  %v10348_v33 = vsel %vm14379_vm1, %v2973_v6, %v10340_v13 }
  0x3f   : > { %2125 = vrot.lane.b32.xlu0 %v1708_v51, %s14319_s30  ;;  %2131 = vrot.lane.b32.xlu1 %v1713_v22, %s14319_s30 }
  0x43   : > { %2121 = vrot.lane.b32.xlu0 %v10153_v27, %s14319_s30  ;;  %2133 = vrot.lane.b32.xlu1 %v10157_v28, %s14319_s30 }
  0x47   : > { %714 = vrot.lane.b32.xlu0 %v10149_v24, %s14319_s30  ;;  %2127 = vrot.lane.b32.xlu1 %v1710_v59, %s14319_s30 }
  0x4b   : > { %2540 = vrot.lane.b32.xlu0 %v1703_v21, %s14342_s28  ;;  %2546 = vrot.lane.b32.xlu1 %v1708_v51, %s14342_s28  ;;  %v1771_v21 = vcombine.low %v10248_v58, %v10245_v57  ;;  %v10386_v51 = vsub.s32 %v478_v46, %v10107_v8  ;;  %v14651_v58 = vmov 0.0  }
  0x4d   : > { %v10396_v55 = vrot.slane %v491_v34, %v10386_v51  ;;  %v10408_v11 = vrot.slane %v474_v47, %v10386_v51  ;;  %v549_v34 = vrot.slane %v541_v40, %v10386_v51  ;;  %v556_v40 = vrot.slane %v542_v43, %v10386_v51 }
  0x4e   : > { %v498_v35 = vrot.slane %v490_v44, %v10386_v51  ;;  %v565_v36 = vrot.slane %v557_v53, %v10386_v51 }
  0x4f   : > { %2552 = vrot.lane.b32.xlu0 %v1713_v22, %s14342_s28  ;;  %2542 = vrot.lane.b32.xlu1 %v10153_v27, %s14342_s28  ;;  %v2968_v27 = vrot.slane %v10149_v24, 2  ;;  %v573_v47 = vcombine.high %v549_v34, %v14352_v0  ;;  %v574_v42 = vcombine.high %v556_v40, %v14352_v0 }
  0x50   : > { %v575_v31 = vcombine.high %v565_v36, %v14352_v0 }
  0x51   : > { %v10319_v29 = vsel %vm14379_vm1, %v2967_v26, %v2968_v27  ;;  %v10359_v38 = vsel %vm14379_vm1, %v2968_v27, %v10351_v37 }
  0x53   : > { %2554 = vrot.lane.b32.xlu0 %v10157_v28, %s14342_s28  ;;  %710 = vrot.lane.b32.xlu1 %v10123_v14, %s14319_s30  ;;  %v10316_v28 = vsel %vm14379_vm1, %v2962_v23, %v2963_v25  ;;  %v506_v23 = vcombine.high %v10408_v11, %v14352_v0  ;;  %v489_v25 = vrot.slane %v475_v48, %v10386_v51  ;;  %vm971_vm1 = vcmask 23552  }
  0x55   : > { %v507_v41 = vcombine.high %v489_v25, %v14352_v0 }
  0x57   : > { %722 = vrot.lane.b32.xlu0 %v10132_v18, %s14319_s30  ;;  %2548 = vrot.lane.b32.xlu1 %v1710_v59, %s14342_s28  ;;  %v509_v59 = vcombine.high %v10396_v55, %v14352_v0 }
  0x5b   : > { %716 = vrot.lane.b32.xlu0 %v10228_v52, %s14319_s30  ;;  %1283 = vrot.lane.b32.xlu1 %v10123_v14, %s14342_s28 }
  0x5f   : > { %1295 = vrot.lane.b32.xlu0 %v10132_v18, %s14342_s28  ;;  %1289 = vrot.lane.b32.xlu1 %v10228_v52, %s14342_s28 }
  0x63   : > { %3380 = vrot.lane.b32.xlu0 %v10316_v28, %s14319_s30  ;;  %3386 = vrot.lane.b32.xlu1 %v10319_v29, %s14319_s30 }
  0x67   : > { %3392 = vrot.lane.b32.xlu0 %v10333_v30, %s14319_s30  ;;  %3382 = vrot.lane.b32.xlu1 %v10337_v4, %s14319_s30 }
  0x6b   : > { %3394 = vrot.lane.b32.xlu0 %v10348_v33, %s14319_s30  ;;  %2123 = vrot.lane.b32.xlu1 %v10129_v17, %s14319_s30 }
  0x6f   : > { %2135 = vrot.lane.b32.xlu0 %v10138_v20, %s14319_s30  ;;  %3388 = vrot.lane.b32.xlu1 %v10359_v38, %s14319_s30 }
  0x73   : > { %2129 = vrot.lane.b32.xlu0 %v10238_v56, %s14319_s30  ;;  %2544 = vrot.lane.b32.xlu1 %v10129_v17, %s14342_s28 }
  0x77   : > { %2556 = vrot.lane.b32.xlu0 %v10138_v20, %s14342_s28  ;;  %3801 = vrot.lane.b32.xlu1 %v10316_v28, %s14342_s28 }
  0x7b   : > { %3807 = vrot.lane.b32.xlu0 %v10319_v29, %s14342_s28  ;;  %3813 = vrot.lane.b32.xlu1 %v10333_v30, %s14342_s28 }
  0x7f   : > { %3803 = vrot.lane.b32.xlu0 %v10337_v4, %s14342_s28  ;;  %3815 = vrot.lane.b32.xlu1 %v10348_v33, %s14342_s28 }
  0x83   : > { %2550 = vrot.lane.b32.xlu0 %v10238_v56, %s14342_s28  ;;  %3809 = vrot.lane.b32.xlu1 %v10359_v38, %s14342_s28 }
  0x87   : > { %3384 = vrot.lane.b32.xlu0 %v10324_v12, %s14319_s30  ;;  %3396 = vrot.lane.b32.xlu1 %v10340_v13, %s14319_s30 }
  0x8b   : > { %3390 = vrot.lane.b32.xlu0 %v10351_v37, %s14319_s30  ;;  %3805 = vrot.lane.b32.xlu1 %v10324_v12, %s14342_s28  ;;  %s14321_s30 = smov 70  }
  0x8f   : > { %3817 = vrot.lane.b32.xlu0 %v10340_v13, %s14342_s28  ;;  %619 = vrot.lane.b32.xlu1 %v509_v59, %s14342_s28 }
  0x93   : > { %623 = vrot.lane.b32.xlu0 %v549_v34, %s14334_s14  ;;  %595 = vrot.lane.b32.xlu1 %v506_v23, %s14338_s17  ;;  %v508_v34 = vcombine.high %v498_v35, %v14352_v0 }
  0x97   : > { %627 = vrot.lane.b32.xlu0 %v573_v47, %s14336_s18  ;;  %599 = vrot.lane.b32.xlu1 %v489_v25, %s14340_s19 }
  0x99   : > { %v1292_v26 = vpop.permute.xlu1 %1291  ;;  %v1280_v27 = vpop.permute.xlu0 %1279 }
  0x9a   : > { %v1306_v39 = vcombine.high %v1280_v27, %v1292_v26  ;;  %v1305_v23 = vcombine.low %v1280_v27, %v1292_v26 }
  0x9b   : > { %631 = vrot.lane.b32.xlu0 %v556_v40, %s14329_s20  ;;  %3811 = vrot.lane.b32.xlu1 %v10351_v37, %s14342_s28  ;;  %s14346_s20 = smov 108  }
  0x9c   : > { %v10453_v47 = vrot.slane %v1306_v39, %v10135_v19  ;;  %v1313_v27 = vrot.slane %v1305_v23, %v10135_v19 }
  0x9d   : > { %v1282_v48 = vpop.permute.xlu1 %1281  ;;  %v1286_v5 = vpop.permute.xlu0 %1285 }
  0x9e   : > { %v1321_v6 = vcombine.high %v1286_v5, %v14352_v0  ;;  %v1328_v32 = vrot.slane %v1286_v5, %v10135_v19 }
  0x9f   : > { %603 = vrot.lane.b32.xlu0 %v507_v41, %s14323_s27  ;;  %635 = vrot.lane.b32.xlu1 %v574_v42, %s14321_s30  ;;  %s14325_s30 = smov 72   ;;  %s14327_s27 = smov 88   ;;  %v10474_v41 = vrot.slane %v558_v54, %v10386_v51 }
  0xa0   : > { %v10449_v43 = vrot.slane %v1321_v6, %v10135_v19  ;;  %v1336_v42 = vcombine.low %v1313_v27, %v1328_v32 }
  0xa1   : > { %v1288_v45 = vpop.permute.xlu1 %1287  ;;  %v1294_v46 = vpop.permute.xlu0 %1293 }
  0xa2   : > { %v1372_v59 = vcombine.low %v1282_v48, %v1294_v46  ;;  %v1353_v44 = vcombine.high %v10453_v47, %v10449_v43  ;;  %v1395_v53 = vrot.slane %v1288_v45, %v10135_v19  ;;  %v1373_v23 = vcombine.high %v1282_v48, %v1294_v46 }
  0xa3   : > { %607 = vrot.lane.b32.xlu0 %v498_v35, %s14325_s30  ;;  %639 = vrot.lane.b32.xlu1 %v565_v36, %s14327_s27  ;;  %s14331_s30 = smov 90   ;;  %s14348_s27 = smov 106  }
  0xa4   : > { %v1380_v25 = vrot.slane %v1372_v59, %v10135_v19  ;;  %v1367_v39 = vrot.slane %v1353_v44, %v10386_v51  ;;  %v10492_v59 = vrot.slane %v1336_v42, %v10386_v51 }
  0xa5   : > { %v10463_v40 = vpop.permute.xlu1 %712  ;;  %v10465_v26 = vpop.permute.xlu0 %706 }
  0xa6   : > { %v1403_v35 = vcombine.low %v1380_v25, %v1395_v53  ;;  %v1371_v50 = vcombine.high %v1367_v39, %v14352_v0  ;;  %v1368_v3 = vcombine.high %v10492_v59, %v14352_v0  ;;  %v1404_v24 = vcombine.high %v1380_v25, %v1395_v53 }
  0xa7   : > { %611 = vrot.lane.b32.xlu0 %v508_v34, %s14331_s30  ;;  %643 = vrot.lane.b32.xlu1 %v575_v31, %s14348_s27  ;;  %s14344_s30 = smov 124   ;;  %v1388_v34 = vcombine.high %v1288_v45, %v14352_v0  ;;  %v748_v61 = vcombine.high %v10463_v40, %v14352_v0 }
  0xa8   : > { %v1411_v54 = vrot.slane %v1403_v35, %v10386_v51 }
  0xa9   : > { %v10476_v5 = vpop.permute.xlu1 %708  ;;  %v10478_v6 = vpop.permute.xlu0 %718  ;;  %v1402_v42 = vrot.slane %v1388_v34, %v10135_v19 }
  0xaa   : > { %v1435_v35 = vcombine.high %v1411_v54, %v14352_v0  ;;  %v733_v62 = vcombine.high %v10465_v26, %v10478_v6 }
  0xab   : > { %615 = vrot.lane.b32.xlu0 %v10396_v55, %s14346_s20  ;;  %647 = vrot.lane.b32.xlu1 %v10474_v41, %s14344_s30  ;;  %v1337_v55 = vcombine.high %v1313_v27, %v1328_v32  ;;  %v1387_v32 = vrot.slane %v1373_v23, %v10135_v19  ;;  %v1418_v27 = vrot.slane %v1404_v24, %v10386_v51  ;;  %s14639_s30 = smov 90  }
  0xad   : > { %v10485_v36 = vpop.permute.xlu0 %720  ;;  %v10487_v49 = vpop.permute.xlu1 %2119  ;;  %v1351_v46 = vrot.slane %v1337_v55, %v10386_v51  ;;  %v1419_v34 = vcombine.low %v1387_v32, %v1402_v42 }
  0xae   : > { %v799_v57 = vcombine.low %v10476_v5, %v10485_v36 }
  0xaf   : > { %1482 = vrot.lane.b32.xlu0 %v1371_v50, %s14342_s28  ;;  %1486 = vrot.lane.b32.xlu1 %v1411_v54, %s14334_s14  ;;  %s14634_s14 = smov 52   ;;  %v1369_v25 = vcombine.high %v1351_v46, %v14352_v0  ;;  %v1436_v50 = vcombine.high %v1418_v27, %v14352_v0  ;;  %v1352_v54 = vcombine.low %v10453_v47, %v10449_v43  ;;  %s14638_s28 = smov 88  }
  0xb1   : > { %v10497_v31 = vpop.permute.xlu0 %2125  ;;  %v10499_v44 = vpop.permute.xlu1 %2131  ;;  %v1360_v23 = vrot.slane %v1352_v54, %v10386_v51 }
  0xb3   : > { %1458 = vrot.lane.b32.xlu0 %v1368_v3, %s14338_s17  ;;  %1490 = vrot.lane.b32.xlu1 %v1435_v35, %s14336_s18  ;;  %s14635_s18 = smov 54   ;;  %s14636_s17 = smov 70   ;;  %v1427_v35 = vrot.slane %v1419_v34, %v10386_v51  ;;  %v1370_v47 = vcombine.high %v1360_v23, %v14352_v0 }
  0xb5   : > { %v10508_v45 = vpop.permute.xlu0 %2121  ;;  %v10510_v48 = vpop.permute.xlu1 %2133 }
  0xb7   : > { %1462 = vrot.lane.b32.xlu0 %v1351_v46, %s14340_s19  ;;  %1494 = vrot.lane.b32.xlu1 %v1418_v27, %s14634_s14  ;;  %s14637_s19 = smov 72   ;;  %v1437_v27 = vcombine.high %v1427_v35, %v14352_v0 }
  0xb9   : > { %v10516_v53 = vpop.permute.xlu0 %714  ;;  %v10518_v3 = vpop.permute.xlu1 %2127 }
  0xba   : > { %v822_v37 = vrot.slane %v10516_v53, %v10135_v19 }
  0xbb   : > { %1466 = vrot.lane.b32.xlu0 %v1369_v25, %s14635_s18  ;;  %1498 = vrot.lane.b32.xlu1 %v1436_v50, %s14636_s17  ;;  %v1420_v25 = vcombine.high %v1387_v32, %v1402_v42  ;;  %v10546_v50 = vrot.slane %v1772_v63, %v10386_v51  ;;  %v1830_v63 = vrot.slane %v1822_v2, %v10386_v51 }
  0xbc   : > { %v10568_v32 = vrot.slane %v1755_v7, %v10386_v51  ;;  %v1770_v7 = vrot.slane %v1756_v9, %v10386_v51  ;;  %v1779_v9 = vrot.slane %v1771_v21, %v10386_v51 }
  0xbd   : > { %v10526_v24 = vpop.permute.xlu0 %2540  ;;  %v10528_v55 = vpop.permute.xlu1 %2546  ;;  %v10553_v22 = vrot.slane %v1420_v25, %v10386_v51  ;;  %v1790_v42 = vcombine.high %v10546_v50, %v14352_v0  ;;  %v1837_v25 = vrot.slane %v1823_v10, %v10386_v51  ;;  %v14648_v10 = vcombine.low %v10294_v15, %v10297_v16 }
  0xbe   : > { %v1789_v21 = vcombine.high %v1779_v9, %v14651_v58 }
  0xbf   : > { %1470 = vrot.lane.b32.xlu0 %v1360_v23, %s14637_s19  ;;  %1502 = vrot.lane.b32.xlu1 %v1427_v35, %s14638_s28  ;;  %v1787_v35 = vcombine.high %v10568_v32, %v14352_v0 }
  0xc1   : > { %v10534_v46 = vpop.permute.xlu0 %2552  ;;  %v10536_v43 = vpop.permute.xlu1 %2542 }
  0xc3   : > { %1474 = vrot.lane.b32.xlu0 %v1370_v47, %s14639_s30  ;;  %1506 = vrot.lane.b32.xlu1 %v1437_v27, %s14348_s27  ;;  %s14642_s27 = smov 16   ;;  %v1854_v47 = vcombine.high %v1830_v63, %v14352_v0 }
  0xc5   : > { %v10548_v54 = vpop.permute.xlu0 %2554  ;;  %v10550_v34 = vpop.permute.xlu1 %710 }
  0xc7   : > { %1478 = vrot.lane.b32.xlu0 %v1367_v39, %s14346_s20  ;;  %1510 = vrot.lane.b32.xlu1 %v10553_v22, %s14640_s0  ;;  %s14641_s20 = smov 126  }
  0xc9   : > { %v10570_v23 = vpop.permute.xlu0 %722  ;;  %v10572_v39 = vpop.permute.xlu1 %2548 }
  0xcb   : > { %1901 = vrot.lane.b32.xlu0 %v1790_v42, %s14641_s20  ;;  %1905 = vrot.lane.b32.xlu1 %v1830_v63, %s14642_s27 }
  0xcd   : > { %v10579_v2 = vpop.permute.xlu0 %716  ;;  %v10581_v27 = vpop.permute.xlu1 %1283 }
  0xcf   : > { %1877 = vrot.lane.b32.xlu0 %v1787_v35, %s14643_s29  ;;  %1909 = vrot.lane.b32.xlu1 %v1854_v47, %s14644_s25  ;;  %v1788_v35 = vcombine.high %v1770_v7, %v14352_v0  ;;  %v1855_v47 = vcombine.high %v1837_v25, %v14352_v0  ;;  %v10622_v0 = vrot.slane %v748_v61, %v10135_v19 }
  0xd1   : > { %v10593_v42 = vpop.permute.xlu0 %1295  ;;  %v10595_v63 = vpop.permute.xlu1 %1289 }
  0xd3   : > { %1881 = vrot.lane.b32.xlu0 %v1770_v7, %s14645_s16  ;;  %1913 = vrot.lane.b32.xlu1 %v1837_v25, %s14634_s14  ;;  %v1846_v7 = vrot.slane %v14648_v10, %v10386_v51  ;;  %v732_v25 = vcombine.low %v10465_v26, %v10478_v6  ;;  %v2146_v10 = vcombine.high %v10487_v49, %v10499_v44 }
  0xd5   : > { %v10605_v60 = vpop.permute.xlu0 %3380  ;;  %v10607_v1 = vpop.permute.xlu1 %3386  ;;  %v1856_v26 = vcombine.high %v1846_v7, %v14651_v58  ;;  %v740_v6 = vrot.slane %v732_v25, %v10135_v19  ;;  %v14655_v25 = vcombine.high %v10294_v15, %v10297_v16  ;;  %v2212_v15 = vcombine.low %v10508_v45, %v10510_v48 }
  0xd6   : > { %14646 = vst [vmem:[#allocation19_spill] sm:$0xff] %v10605_v60  ;;  %14647 = vst [vmem:[#allocation20_spill] sm:$0xff] %v10607_v1  ;;  %v2145_v16 = vcombine.low %v10487_v49, %v10499_v44 }
  0xd7   : > { %1885 = vrot.lane.b32.xlu0 %v1788_v35, %s14635_s18  ;;  %1917 = vrot.lane.b32.xlu1 %v1855_v47, %s14636_s17  ;;  %v10625_v35 = vrot.slane %v733_v62, %v10135_v19  ;;  %v2161_v62 = vcombine.high %v10497_v31, %v14651_v58  ;;  %v2220_v49 = vrot.slane %v2212_v15, %v10135_v19 }
  0xd8   : > { %v2168_v15 = vrot.slane %v10497_v31, %v10135_v19 }
  0xd9   : > { %v10627_v47 = vpop.permute.xlu0 %3392  ;;  %v10629_v8 = vpop.permute.xlu1 %3382  ;;  %v780_v61 = vcombine.high %v10625_v35, %v10622_v0 }
  0xda   : > { %14649 = vst [vmem:[#allocation21_spill] sm:$0xff] %v10627_v47  ;;  %14650 = vst [vmem:[#allocation22_spill] sm:$0xff] %v10629_v8  ;;  %v10659_v8 = vrot.slane %v14655_v25, %v10386_v51 }
  0xdb   : > { %1889 = vrot.lane.b32.xlu0 %v1779_v9, %s14637_s19  ;;  %1921 = vrot.lane.b32.xlu1 %v1846_v7, %s14638_s28  ;;  %v755_v9 = vrot.slane %v10463_v40, %v10135_v19  ;;  %v807_v7 = vrot.slane %v799_v57, %v10135_v19 }
  0xdd   : > { %v10646_v12 = vpop.permute.xlu0 %3394  ;;  %v10648_v13 = vpop.permute.xlu1 %2123  ;;  %v763_v60 = vcombine.low %v740_v6, %v755_v9  ;;  %v830_v40 = vcombine.low %v807_v7, %v822_v37 }
  0xde   : > { %14652 = vst [vmem:[#allocation23_spill] sm:$0xff] %v10646_v12  ;;  %14653 = vst [vmem:[#allocation24_spill] sm:$0xff] %v10648_v13  ;;  %v10662_v12 = vrot.slane %v2161_v62, %v10135_v19  ;;  %v10665_v13 = vrot.slane %v2146_v10, %v10135_v19 }
  0xdf   : > { %1893 = vrot.lane.b32.xlu0 %v1789_v21, %s14639_s30  ;;  %1925 = vrot.lane.b32.xlu1 %v1856_v26, %s14654_s23  ;;  %v10672_v21 = vrot.slane %v780_v61, %v10386_v51  ;;  %v10683_v26 = vrot.slane %v763_v60, %v10386_v51  ;;  %v2235_v61 = vrot.slane %v10518_v3, %v10135_v19 }
  0xe0   : > { %v2193_v62 = vcombine.high %v10665_v13, %v10662_v12  ;;  %v2153_v60 = vrot.slane %v2145_v16, %v10135_v19  ;;  %v831_v16 = vcombine.high %v807_v7, %v822_v37 }
  0xe1   : > { %v10667_v47 = vpop.permute.xlu0 %2135  ;;  %v10669_v57 = vpop.permute.xlu1 %3388  ;;  %14659 = vst [vmem:[#allocation27_spill] sm:$0xff] %v10683_v26  ;;  %v795_v44 = vcombine.high %v10683_v26, %v14651_v58 }
  0xe2   : > { %14656 = vst [vmem:[#allocation25_spill] sm:$0xff] %v10667_v47  ;;  %14657 = vst [vmem:[#allocation26_spill] sm:$0xff] %v10669_v57  ;;  %v838_v57 = vrot.slane %v830_v40, %v10386_v51  ;;  %v2243_v47 = vcombine.low %v2220_v49, %v2235_v61  ;;  %v10708_v40 = vrot.slane %v2193_v62, %v10386_v51 }
  0xe3   : > { %1897 = vrot.lane.b32.xlu0 %v10546_v50, %s14658_s15  ;;  %1929 = vrot.lane.b32.xlu1 %v10659_v8, %s14640_s0  ;;  %v798_v50 = vcombine.high %v10672_v21, %v14651_v58  ;;  %v2176_v26 = vcombine.low %v2153_v60, %v2168_v15  ;;  %v845_v37 = vrot.slane %v831_v16, %v10386_v51 }
  0xe4   : > { %v2251_v62 = vrot.slane %v2243_v47, %v10386_v51 }
  0xe5   : > { %v10689_v10 = vpop.permute.xlu0 %2129  ;;  %v10691_v25 = vpop.permute.xlu1 %2544 }
  0xe6   : > { %14660 = vst [vmem:[#allocation28_spill] sm:$0xff] %v10689_v10  ;;  %14661 = vst [vmem:[#allocation29_spill] sm:$0xff] %v10691_v25  ;;  %v862_v10 = vcombine.high %v838_v57, %v14651_v58 }
  0xe7   : > { %909 = vrot.lane.b32.xlu0 %v798_v50, %s14641_s20  ;;  %913 = vrot.lane.b32.xlu1 %v838_v57, %s14642_s27  ;;  %v764_v50 = vcombine.high %v740_v6, %v755_v9  ;;  %v10730_v9 = vrot.slane %v2176_v26, %v10386_v51  ;;  %v800_v26 = vcombine.high %v10476_v5, %v10485_v36 }
  0xe8   : > { %v779_v5 = vcombine.low %v10625_v35, %v10622_v0 }
  0xe9   : > { %v10703_v25 = vpop.permute.xlu0 %2556  ;;  %v10705_v1 = vpop.permute.xlu1 %3801  ;;  %v778_v6 = vrot.slane %v764_v50, %v10386_v51  ;;  %14665 = vst [vmem:[#allocation33_spill] sm:$0xff] %v10730_v9  ;;  %v2275_v50 = vcombine.high %v2251_v62, %v14651_v58 }
  0xea   : > { %14662 = vst [vmem:[#allocation30_spill] sm:$0xff] %v10705_v1  ;;  %v2211_v1 = vcombine.high %v10708_v40, %v14651_v58  ;;  %v787_v0 = vrot.slane %v779_v5, %v10386_v51 }
  0xeb   : > { %885 = vrot.lane.b32.xlu0 %v795_v44, %s14643_s29  ;;  %917 = vrot.lane.b32.xlu1 %v862_v10, %s14644_s25  ;;  %v2208_v10 = vcombine.high %v10730_v9, %v14651_v58  ;;  %v796_v16 = vcombine.high %v778_v6, %v14651_v58  ;;  %v863_v9 = vcombine.high %v845_v37, %v14651_v58 }
  0xed   : > { %v10714_v56 = vpop.permute.xlu0 %3807  ;;  %v10716_v57 = vpop.permute.xlu1 %3813 }
  0xef   : > { %2322 = vrot.lane.b32.xlu0 %v2211_v1, %s14641_s20  ;;  %2326 = vrot.lane.b32.xlu1 %v2251_v62, %s14642_s27  ;;  %v815_v1 = vcombine.high %v10516_v53, %v14651_v58  ;;  %v814_v62 = vrot.slane %v800_v26, %v10135_v19 }
  0xf1   : > { %v10723_v31 = vpop.permute.xlu0 %3803  ;;  %v10725_v44 = vpop.permute.xlu1 %3815  ;;  %v829_v53 = vrot.slane %v815_v1, %v10135_v19 }
  0xf2   : > { %14663 = vst [vmem:[#allocation31_spill] sm:$0xff] %v10723_v31  ;;  %14664 = vst [vmem:[#allocation32_spill] sm:$0xff] %v10725_v44  ;;  %v2177_v31 = vcombine.high %v2153_v60, %v2168_v15  ;;  %v2244_v44 = vcombine.high %v2220_v49, %v2235_v61 }
  0xf3   : > { %889 = vrot.lane.b32.xlu0 %v778_v6, %s14645_s16  ;;  %921 = vrot.lane.b32.xlu1 %v845_v37, %s14634_s14  ;;  %v846_v36 = vcombine.low %v814_v62, %v829_v53  ;;  %v2228_v6 = vcombine.high %v10518_v3, %v14651_v58 }
  0xf4   : > { %v2191_v61 = vrot.slane %v2177_v31, %v10386_v51  ;;  %v2258_v49 = vrot.slane %v2244_v44, %v10386_v51  ;;  %v2213_v31 = vcombine.high %v10508_v45, %v10510_v48  ;;  %v2192_v45 = vcombine.low %v10665_v13, %v10662_v12 }
  0xf5   : > { %v10736_v47 = vpop.permute.xlu0 %2550  ;;  %v10738_v7 = vpop.permute.xlu1 %3809  ;;  %v854_v35 = vrot.slane %v846_v36, %v10386_v51  ;;  %v10780_v44 = vrot.slane %v2228_v6, %v10135_v19  ;;  %v797_v36 = vcombine.high %v787_v0, %v14651_v58 }
  0xf6   : > { %14666 = vst [vmem:[#allocation34_spill] sm:$0xff] %v10736_v47  ;;  %14667 = vst [vmem:[#allocation35_spill] sm:$0xff] %v10738_v7  ;;  %v2227_v26 = vrot.slane %v2213_v31, %v10135_v19  ;;  %v847_v31 = vcombine.high %v814_v62, %v829_v53  ;;  %v2566_v62 = vcombine.low %v10526_v24, %v10534_v46 }
  0xf7   : > { %2298 = vrot.lane.b32.xlu0 %v2208_v10, %s14643_s29  ;;  %2330 = vrot.lane.b32.xlu1 %v2275_v50, %s14644_s25  ;;  %v2209_v10 = vcombine.high %v2191_v61, %v14651_v58  ;;  %v2276_v50 = vcombine.high %v2258_v49, %v14651_v58  ;;  %v864_v6 = vcombine.high %v854_v35, %v14651_v58 }
  0xf8   : > { %v2259_v48 = vcombine.low %v2227_v26, %v10780_v44  ;;  %v861_v53 = vrot.slane %v847_v31, %v10386_v51 }
  0xf9   : > { %v10749_v47 = vpop.permute.xlu0 %3384  ;;  %v10751_v7 = vpop.permute.xlu1 %3396 }
  0xfb   : > { %893 = vrot.lane.b32.xlu0 %v796_v16, %s14635_s18  ;;  %925 = vrot.lane.b32.xlu1 %v863_v9, %s14636_s17 }
  0xfd   : > { %v10759_v60 = vpop.permute.xlu0 %3390  ;;  %v10761_v15 = vpop.permute.xlu1 %3805 }
  0xfe   : > { %14668 = vst [vmem:[#allocation36_spill] sm:$0xff] %v10761_v15 }
  0xff   : > { %2302 = vrot.lane.b32.xlu0 %v2191_v61, %s14645_s16  ;;  %2334 = vrot.lane.b32.xlu1 %v2258_v49, %s14634_s14  ;;  %v2582_v61 = vcombine.high %v10528_v55, %v14651_v58  ;;  %v2567_v49 = vcombine.high %v10526_v24, %v10534_v46  ;;  %v2633_v24 = vcombine.low %v10536_v43, %v10548_v54 }
 0x101   : > { %v10769_v37 = vpop.permute.xlu0 %3817  ;;  %v10771_v9 = vpop.permute.xlu1 %619  ;;  %v2641_v15 = vrot.slane %v2633_v24, %v10135_v19 }
 0x103   : > { %897 = vrot.lane.b32.xlu0 %v787_v0, %s14637_s19  ;;  %929 = vrot.lane.b32.xlu1 %v854_v35, %s14638_s28  ;;  %v2267_v0 = vrot.slane %v2259_v48, %v10386_v51  ;;  %v10805_v35 = vrot.slane %v2582_v61, %v10135_v19  ;;  %v2260_v48 = vcombine.high %v2227_v26, %v10780_v44 }
 0x104   : > { %v866_v61 = vcombine.low %v10550_v34, %v10570_v23  ;;  %v10830_v34 = vrot.slane %v2566_v62, %v10135_v19  ;;  %v10839_v26 = vrot.slane %v10572_v39, %v10135_v19 }
 0x105   : > { %v624_v1 = vpop.permute.xlu0 %623  ;;  %v596_v3 = vpop.permute.xlu1 %595 }
 0x106   : > { %v663_v46 = vsel %vm662_vm3, %v10408_v11, %v596_v3  ;;  %v677_v23 = vsel %vm14393_vm2, %v10771_v9, %v624_v1  ;;  %v873_v11 = vrot.slane %v866_v61, %v10135_v19  ;;  %v2589_v1 = vrot.slane %v10528_v55, %v10135_v19 }
 0x107   : > { %2306 = vrot.lane.b32.xlu0 %v2209_v10, %s14635_s18  ;;  %2338 = vrot.lane.b32.xlu1 %v2276_v50, %s14636_s17  ;;  %v2200_v10 = vrot.slane %v2192_v45, %v10386_v51  ;;  %v10808_v50 = vrot.slane %v2567_v49, %v10135_v19 }
 0x108   : > { %v2597_v55 = vcombine.low %v10830_v34, %v2589_v1 }
 0x109   : > { %v628_v16 = vpop.permute.xlu0 %627  ;;  %v600_v5 = vpop.permute.xlu1 %599  ;;  %v2614_v45 = vcombine.high %v10808_v50, %v10805_v35 }
 0x10a   : > { %v679_v3 = vsel %vm678_vm4, %v677_v23, %v628_v16  ;;  %v665_v62 = vsel %vm664_vm5, %v663_v46, %v600_v5 }
 0x10b   : > { %901 = vrot.lane.b32.xlu0 %v797_v36, %s14639_s30  ;;  %933 = vrot.lane.b32.xlu1 %v864_v6, %s14654_s23  ;;  %v10835_v44 = vrot.slane %v2614_v45, %v10386_v51 }
 0x10d   : > { %v632_v12 = vpop.permute.xlu0 %631  ;;  %v10798_v13 = vpop.permute.xlu1 %3811 }
 0x10e   : > { %14669 = vst [vmem:[#allocation37_spill] sm:$0xff] %v10798_v13  ;;  %v2210_v13 = vcombine.high %v2200_v10, %v14651_v58  ;;  %v681_v45 = vsel %vm680_vm6, %v679_v3, %v632_v12 }
 0x10f   : > { %2310 = vrot.lane.b32.xlu0 %v2200_v10, %s14637_s19  ;;  %2342 = vrot.lane.b32.xlu1 %v2267_v0, %s14638_s28 }
 0x111   : > { %v604_v36 = vpop.permute.xlu0 %603  ;;  %v636_v6 = vpop.permute.xlu1 %635 }
 0x112   : > { %v667_v61 = vsel %vm14389_vm7, %v665_v62, %v604_v36  ;;  %v683_v16 = vsel %vm14397_vm8, %v681_v45, %v636_v6  ;;  %v2664_v36 = vcombine.low %v2641_v15, %v10839_v26  ;;  %v875_v6 = vcombine.low %v873_v11, %v10579_v2 }
 0x113   : > { %905 = vrot.lane.b32.xlu0 %v10672_v21, %s14658_s15  ;;  %937 = vrot.lane.b32.xlu1 %v861_v53, %s14640_s0  ;;  %v2277_v21 = vcombine.high %v2267_v0, %v14651_v58  ;;  %v10844_v0 = vrot.slane %v2260_v48, %v10386_v51  ;;  %v10888_v62 = vrot.slane %v2597_v55, %v10386_v51 }
 0x114   : > { %v882_v11 = vrot.slane %v875_v6, %v10386_v51  ;;  %v2649_v55 = vcombine.high %v10572_v39, %v14651_v58  ;;  %v577_v6 = vcombine.low %v10123_v14, %v10132_v18  ;;  %v2613_v18 = vcombine.low %v10808_v50, %v10805_v35 }
 0x115   : > { %v608_v49 = vpop.permute.xlu0 %607  ;;  %v640_v31 = vpop.permute.xlu1 %639 }
 0x116   : > { %v669_v5 = vsel %vm14396_vm9, %v667_v61, %v608_v49  ;;  %v685_v12 = vsel %vm14394_vm10, %v683_v16, %v640_v31  ;;  %v10879_v31 = vld [vmem:[%s14307_s1] sm:$0xf]  ;;  %v2629_v61 = vcombine.high %v10888_v62, %v14651_v58  ;;  %v10913_v39 = vrot.slane %v2649_v55, %v10135_v19 }
 0x117   : > { %2314 = vrot.lane.b32.xlu0 %v2210_v13, %s14639_s30  ;;  %2346 = vrot.lane.b32.xlu1 %v2277_v21, %s14654_s23  ;;  %v865_v21 = vcombine.high %v861_v53, %v14651_v58  ;;  %v2632_v53 = vcombine.high %v10835_v44, %v14651_v58  ;;  %v584_v14 = vrot.slane %v577_v6, %v10135_v19 }
 0x118   : > { %v2621_v55 = vrot.slane %v2613_v18, %v10386_v51 }
 0x119   : > { %v612_v13 = vpop.permute.xlu0 %611  ;;  %v644_v10 = vpop.permute.xlu1 %643 }
 0x11a   : > { %v671_v48 = vsel %vm670_vm11, %v669_v5, %v612_v13  ;;  %v2665_v5 = vcombine.high %v2641_v15, %v10839_v26 }
 0x11b   : > { %2318 = vrot.lane.b32.xlu0 %v10708_v40, %s14658_s15  ;;  %2350 = vrot.lane.b32.xlu1 %v10844_v0, %s14640_s0  ;;  %v687_v40 = vsel %vm14395_vm12, %v685_v12, %v644_v10  ;;  %v2672_v10 = vrot.slane %v2664_v36, %v10386_v51  ;;  %v883_v12 = vcombine.high %v882_v11, %v14651_v58 }
 0x11c   : > { %v2634_v36 = vcombine.high %v10536_v43, %v10548_v54  ;;  %v576_v43 = vcombine.high %v10474_v41, %v14651_v58  ;;  %v3001_v41 = vcombine.high %v10319_v29, %v14651_v58 }
 0x11d   : > { %v616_v24 = vpop.permute.xlu0 %615  ;;  %v10867_v46 = vpop.permute.xlu1 %647  ;;  %v2696_v16 = vcombine.high %v2672_v10, %v14651_v58 }
 0x11e   : > { %v673_v23 = vsel %vm14392_vm13, %v671_v48, %v616_v24  ;;  %v689_v49 = vsel %vm14391_vm14, %v687_v40, %v10867_v46  ;;  %v2679_v48 = vrot.slane %v2665_v5, %v10386_v51  ;;  %v10920_v54 = vrot.slane %v2634_v36, %v10135_v19 }
 0x11f   : > { %941 = vrot.lane.b32.xlu0 %v865_v21, %s14380_s21  ;;  %2743 = vrot.lane.b32.xlu1 %v2632_v53, %s14641_s20  ;;  %v675_v2 = vsel %vm14390_vm0, %v673_v23, %v10771_v9  ;;  %v2598_v9 = vcombine.high %v10830_v34, %v2589_v1 }
 0x120   : > { %9536 = vmatprep.subr.msk.mxu0 %vm975_vm15, %v689_v49  ;;  %v2680_v24 = vcombine.low %v10920_v54, %v10913_v39 }
 0x121   : > { %9537 = vmatpush1.msk.msra.mxu0 %vm975_vm15, %v675_v2  ;;  %v10884_v3 = vpop.permute.xlu0 %1482  ;;  %v1487_v13 = vpop.permute.xlu1 %1486  ;;  %v2612_v1 = vrot.slane %v2598_v9, %v10386_v51  ;;  %v2697_v2 = vcombine.high %v2679_v48, %v14651_v58 }
 0x122   : > { %9538 = vmatmul.mubr.msk.f32.vlgmr.msra.gmra.mrb[0].mxu0 %vm971_vm1, %v10879_v31  ;;  %v1532_v35 = vsel %vm14393_vm2, %v10884_v3, %v1487_v13  ;;  %v2688_v5 = vrot.slane %v2680_v24, %v10386_v51 }
 0x123   : > { %2747 = vrot.lane.b32.xlu0 %v2672_v10, %s14642_s27  ;;  %945 = vrot.lane.b32.xlu1 %v882_v11, %s14384_s12  ;;  %v2630_v40 = vcombine.high %v2612_v1, %v14651_v58  ;;  %v2986_v11 = vcombine.high %v10316_v28, %v10333_v30  ;;  %v585_v10 = vcombine.low %v584_v14, %v10228_v52 }
 0x124   : > { %1620 = vmatprep.mubr.f32.mxu0 %v14651_v58 }
 0x125   : > { %v1459_v45 = vpop.permute.xlu0 %1458  ;;  %v1491_v21 = vpop.permute.xlu1 %1490 }
 0x126   : > { %v1525_v50 = vsel %vm662_vm3, %v10492_v59, %v1459_v45  ;;  %v1533_v9 = vsel %vm678_vm4, %v1532_v35, %v1491_v21  ;;  %v592_v21 = vrot.slane %v585_v10, %v10386_v51  ;;  %v3008_v10 = vrot.slane %v10319_v29, %v10135_v19 }
 0x127   : > { %2719 = vrot.lane.b32.xlu0 %v2629_v61, %s14643_s29  ;;  %2751 = vrot.lane.b32.xlu1 %v2696_v16, %s14644_s25 }
 0x129   : > { %v1463_v53 = vpop.permute.xlu0 %1462  ;;  %v1495_v34 = vpop.permute.xlu1 %1494 }
 0x12a   : > { %v1526_v52 = vsel %vm664_vm5, %v1525_v50, %v1463_v53  ;;  %v1534_v13 = vsel %vm680_vm6, %v1533_v9, %v1495_v34 }
 0x12b   : > { %949 = vrot.lane.b32.xlu0 %v883_v12, %s14382_s26  ;;  %2723 = vrot.lane.b32.xlu1 %v2612_v1, %s14645_s16  ;;  %v10945_v12 = vrot.slane %v3001_v41, %v10135_v19  ;;  %v10948_v1 = vrot.slane %v2986_v11, %v10135_v19  ;;  %v2698_v11 = vcombine.high %v2688_v5, %v14651_v58  ;;  %s14671_s26 = smov 14  }
 0x12d   : > { %v1467_v15 = vpop.permute.xlu0 %1466  ;;  %v1499_v26 = vpop.permute.xlu1 %1498 }
 0x12e   : > { %v1527_v59 = vsel %vm14389_vm7, %v1526_v52, %v1467_v15  ;;  %v1535_v45 = vsel %vm14397_vm8, %v1534_v13, %v1499_v26  ;;  %v2631_v15 = vcombine.high %v2621_v55, %v14651_v58  ;;  %v2985_v26 = vcombine.low %v10316_v28, %v10333_v30  ;;  %v10981_v30 = vld [vmem:[%s14307_s1 + $0x8] sm:$0xf] }
 0x12f   : > { %2755 = vrot.lane.b32.xlu0 %v2679_v48, %s14634_s14  ;;  %2727 = vrot.lane.b32.xlu1 %v2630_v40, %s14635_s18  ;;  %v3033_v28 = vcombine.high %v10948_v1, %v10945_v12 }
 0x130   : > { %v2993_v35 = vrot.slane %v2985_v26, %v10135_v19 }
 0x131   : > { %v1471_v23 = vpop.permute.xlu0 %1470  ;;  %v1503_v49 = vpop.permute.xlu1 %1502 }
 0x132   : > { %v1528_v36 = vsel %vm14396_vm9, %v1527_v59, %v1471_v23  ;;  %v1536_v6 = vsel %vm14394_vm10, %v1535_v45, %v1503_v49  ;;  %v593_v23 = vcombine.high %v592_v21, %v14651_v58  ;;  %v2681_v49 = vcombine.high %v10920_v54, %v10913_v39 }
 0x133   : > { %2759 = vrot.lane.b32.xlu0 %v2697_v2, %s14636_s17  ;;  %651 = vrot.lane.b32.xlu1 %v576_v43, %s14380_s21  ;;  %v3052_v43 = vcombine.low %v10337_v4, %v10348_v33  ;;  %s14670_s21 = smov 50  }
 0x134   : > { %v11008_v9 = vrot.slane %v2681_v49, %v10386_v51 }
 0x135   : > { %v1475_v61 = vpop.permute.xlu0 %1474  ;;  %v1507_v16 = vpop.permute.xlu1 %1506  ;;  %v3060_v39 = vrot.slane %v3052_v43, %v10135_v19 }
 0x136   : > { %v1529_v48 = vsel %vm670_vm11, %v1528_v36, %v1475_v61  ;;  %v1537_v53 = vsel %vm14395_vm12, %v1536_v6, %v1507_v16 }
 0x137   : > { %2731 = vrot.lane.b32.xlu0 %v2621_v55, %s14637_s19  ;;  %2763 = vrot.lane.b32.xlu1 %v2688_v5, %s14638_s28  ;;  %v3016_v55 = vcombine.low %v2993_v35, %v3008_v10  ;;  %v1438_v5 = vcombine.high %v10553_v22, %v14651_v58 }
 0x139   : > { %v1479_v40 = vpop.permute.xlu0 %1478  ;;  %v10961_v34 = vpop.permute.xlu1 %1510  ;;  %v11023_v45 = vrot.slane %v3016_v55, %v10386_v51 }
 0x13a   : > { %v1530_v14 = vsel %vm14392_vm13, %v1529_v48, %v1479_v40  ;;  %v1538_v18 = vsel %vm14391_vm14, %v1537_v53, %v10961_v34  ;;  %v3017_v48 = vcombine.high %v2993_v35, %v3008_v10  ;;  %v3053_v53 = vcombine.high %v10337_v4, %v10348_v33 }
 0x13b   : > { %v1531_v24 = vsel %vm14390_vm0, %v1530_v14, %v10884_v3  ;;  %655 = vrot.lane.b32.xlu0 %v592_v21, %s14384_s12  ;;  %2735 = vrot.lane.b32.xlu1 %v2631_v15, %s14639_s30  ;;  %v1439_v3 = vcombine.low %v10581_v27, %v10593_v42  ;;  %v3075_v27 = vrot.slane %v10359_v38, %v10135_v19 }
 0x13c   : > { %9542 = vmatprep.subr.msk.mxu0 %vm975_vm15, %v1538_v18  ;;  %v11003_v42 = vrot.slane %v3033_v28, %v10386_v51  ;;  %v3048_v22 = vcombine.high %v11023_v45, %v14651_v58  ;;  %v3068_v40 = vcombine.high %v10359_v38, %v14651_v58  ;;  %v3031_v14 = vrot.slane %v3017_v48, %v10386_v51  ;;  %v14674_v48 = vld [vmem:[#allocation21_spill] sm:$0xff] }
 0x13d   : > { %9543 = vmatpush1.msk.msra.mxu0 %vm975_vm15, %v1531_v24  ;;  %v10989_v2 = vpop.permute.xlu0 %1901  ;;  %v1906_v41 = vpop.permute.xlu1 %1905  ;;  %v1446_v29 = vrot.slane %v1439_v3, %v10135_v19  ;;  %v3083_v16 = vcombine.low %v3060_v39, %v3075_v27  ;;  %v3084_v43 = vcombine.high %v3060_v39, %v3075_v27  ;;  %v11039_v18 = vrot.slane %v3053_v53, %v10135_v19  ;;  %v14675_v53 = vld [vmem:[#allocation19_spill] sm:$0xff] }
 0x13e   : > { %9544 = vmatmul.mubr.msk.f32.vlgmr.msra.gmra.mrb[0].mxu0 %vm971_vm1, %v10981_v30  ;;  %v3051_v61 = vcombine.high %v11003_v42, %v14651_v58  ;;  %v1951_v24 = vsel %vm14393_vm2, %v10989_v2, %v1906_v41  ;;  %v11044_v4 = vrot.slane %v3068_v40, %v10135_v19  ;;  %v3049_v41 = vcombine.high %v3031_v14, %v14651_v58 }
 0x13f   : > { %2767 = vrot.lane.b32.xlu0 %v2698_v11, %s14654_s23  ;;  %659 = vrot.lane.b32.xlu1 %v593_v23, %s14670_s21  ;;  %v1448_v52 = vcombine.low %v1446_v29, %v10595_v63  ;;  %v3098_v10 = vrot.slane %v3084_v43, %v10386_v51  ;;  %v3407_v40 = vcombine.high %v14675_v53, %v14674_v48 }
 0x140   : > { %2039 = vmatprep.mubr.f32.mxu0 %v14651_v58 }
 0x141   : > { %v1878_v54 = vpop.permute.xlu0 %1877  ;;  %v1910_v50 = vpop.permute.xlu1 %1909  ;;  %v1455_v21 = vrot.slane %v1448_v52, %v10386_v51 }
 0x142   : > { %v1944_v38 = vsel %vm662_vm3, %v10568_v32, %v1878_v54  ;;  %v1952_v23 = vsel %vm678_vm4, %v1951_v24, %v1910_v50  ;;  %v1858_v32 = vcombine.low %v10129_v17, %v10138_v20  ;;  %v1857_v54 = vcombine.high %v10659_v8, %v14651_v58 }
 0x143   : > { %2739 = vrot.lane.b32.xlu0 %v10835_v44, %s14658_s15  ;;  %2771 = vrot.lane.b32.xlu1 %v11008_v9, %s14640_s0  ;;  %v3091_v44 = vrot.slane %v3083_v16, %v10386_v51  ;;  %v1456_v33 = vcombine.high %v1455_v21, %v14651_v58  ;;  %v3116_v17 = vcombine.high %v3098_v10, %v14651_v58 }
 0x144   : > { %v3032_v20 = vcombine.low %v10948_v1, %v10945_v12 }
 0x145   : > { %v1882_v13 = vpop.permute.xlu0 %1881  ;;  %v1914_v59 = vpop.permute.xlu1 %1913  ;;  %v3115_v63 = vcombine.high %v3091_v44, %v14651_v58 }
 0x146   : > { %v1945_v3 = vsel %vm664_vm5, %v1944_v38, %v1882_v13  ;;  %v1953_v11 = vsel %vm680_vm6, %v1952_v23, %v1914_v59  ;;  %v3099_v13 = vcombine.low %v11039_v18, %v11044_v4  ;;  %v1865_v59 = vrot.slane %v1858_v32, %v10135_v19 }
 0x147   : > { %1514 = vrot.lane.b32.xlu0 %v1438_v5, %s14671_s26  ;;  %3162 = vrot.lane.b32.xlu1 %v3051_v61, %s14641_s20 }
 0x149   : > { %v1886_v36 = vpop.permute.xlu0 %1885  ;;  %v1918_v6 = vpop.permute.xlu1 %1917 }
 0x14a   : > { %v1946_v35 = vsel %vm14389_vm7, %v1945_v3, %v1886_v36  ;;  %v1954_v39 = vsel %vm14397_vm8, %v1953_v11, %v1918_v6  ;;  %v14672_v36 = vld [vmem:[#allocation15_spill] sm:$0xff]  ;;  %v3100_v3 = vcombine.high %v11039_v18, %v11044_v4  ;;  %v3406_v11 = vcombine.low %v14675_v53, %v14674_v48 }
 0x14b   : > { %3166 = vrot.lane.b32.xlu0 %v3091_v44, %s14642_s27  ;;  %1518 = vrot.lane.b32.xlu1 %v1455_v21, %s14384_s12  ;;  %v11084_v44 = vld [vmem:[%s14307_s1 + $0xc] sm:$0xf]  ;;  %v3107_v21 = vrot.slane %v3099_v13, %v10386_v51  ;;  %v1867_v6 = vcombine.low %v1865_v59, %v14672_v36  ;;  %v2278_v59 = vcombine.high %v10844_v0, %v14651_v58  ;;  %v14682_v36 = vld [vmem:[#allocation28_spill] sm:$0xff]  ;;  %s9946_s12 = smov 4  }
 0x14c   : > { %v11143_v18 = vrot.slane %v3100_v3, %v10386_v51  ;;  %v3414_v4 = vrot.slane %v3406_v11, %v10135_v19 }
 0x14d   : > { %v1890_v15 = vpop.permute.xlu0 %1889  ;;  %v1922_v26 = vpop.permute.xlu1 %1921  ;;  %v1874_v43 = vrot.slane %v1867_v6, %v10386_v51 }
 0x14e   : > { %v1947_v27 = vsel %vm14396_vm9, %v1946_v35, %v1890_v15  ;;  %v1955_v29 = vsel %vm14394_vm10, %v1954_v39, %v1922_v26  ;;  %v14678_v35 = vld [vmem:[#allocation24_spill] sm:$0xff] }
 0x14f   : > { %3138 = vrot.lane.b32.xlu0 %v3048_v22, %s14643_s29  ;;  %3170 = vrot.lane.b32.xlu1 %v3115_v63, %s14644_s25  ;;  %v14673_v22 = vld [vmem:[#allocation20_spill] sm:$0xff] }
 0x150   : > { %v3422_v63 = vcombine.high %v14673_v22, %v14651_v58 }
 0x151   : > { %v1894_v28 = vpop.permute.xlu0 %1893  ;;  %v1926_v49 = vpop.permute.xlu1 %1925 }
 0x152   : > { %v1948_v50 = vsel %vm670_vm11, %v1947_v27, %v1894_v28  ;;  %v1956_v61 = vsel %vm14395_vm12, %v1955_v29, %v1926_v49  ;;  %v11113_v24 = vrot.slane %v3422_v63, %v10135_v19  ;;  %v3117_v28 = vcombine.high %v3107_v21, %v14651_v58  ;;  %v14679_v29 = vld [vmem:[#allocation23_spill] sm:$0xff] }
 0x153   : > { %1522 = vrot.lane.b32.xlu0 %v1456_v33, %s14670_s21  ;;  %3142 = vrot.lane.b32.xlu1 %v3031_v14, %s14645_s16  ;;  %v11116_v33 = vrot.slane %v3407_v40, %v10135_v19  ;;  %v1875_v49 = vcombine.high %v1874_v43, %v14651_v58 }
 0x155   : > { %v1898_v16 = vpop.permute.xlu0 %1897  ;;  %v11066_v55 = vpop.permute.xlu1 %1929 }
 0x156   : > { %v1949_v5 = vsel %vm14392_vm13, %v1948_v50, %v1898_v16  ;;  %v1957_v52 = vsel %vm14391_vm14, %v1956_v61, %v11066_v55  ;;  %v14681_v61 = vld [vmem:[#allocation26_spill] sm:$0xff] }
 0x157   : > { %v1950_v8 = vsel %vm14390_vm0, %v1949_v5, %v10989_v2  ;;  %3174 = vrot.lane.b32.xlu0 %v3098_v10, %s14634_s14  ;;  %3146 = vrot.lane.b32.xlu1 %v3049_v41, %s14635_s18  ;;  %v3040_v2 = vrot.slane %v3032_v20, %v10386_v51  ;;  %v3454_v10 = vcombine.high %v11116_v33, %v11113_v24  ;;  %v14677_v41 = vld [vmem:[#allocation25_spill] sm:$0xff] }
 0x158   : > { %9548 = vmatprep.subr.msk.mxu0 %vm975_vm15, %v1957_v52  ;;  %v2279_v39 = vcombine.low %v14678_v35, %v14677_v41  ;;  %v3496_v16 = vrot.slane %v14681_v61, %v10135_v19 }
 0x159   : > { %9549 = vmatpush1.msk.msra.mxu0 %vm975_vm15, %v1950_v8  ;;  %v11088_v12 = vpop.permute.xlu0 %909  ;;  %v11090_v1 = vpop.permute.xlu1 %913  ;;  %v3050_v14 = vcombine.high %v3040_v2, %v14651_v58  ;;  %v11154_v20 = vrot.slane %v3454_v10, %v10386_v51  ;;  %v3429_v8 = vrot.slane %v14673_v22, %v10135_v19  ;;  %v3489_v10 = vcombine.high %v14681_v61, %v14651_v58 }
 0x15a   : > { %9550 = vmatmul.mubr.msk.f32.vlgmr.msra.gmra.mrb[0].mxu0 %vm971_vm1, %v11084_v44  ;;  %v2286_v5 = vrot.slane %v2279_v39, %v10135_v19 }
 0x15b   : > { %3178 = vrot.lane.b32.xlu0 %v3116_v17, %s14636_s17  ;;  %1933 = vrot.lane.b32.xlu1 %v1857_v54, %s14671_s26  ;;  %v14680_v54 = vld [vmem:[#allocation22_spill] sm:$0xff]  ;;  %v3472_v22 = vcombine.high %v11154_v20, %v14651_v58 }
 0x15c   : > { %2460 = vmatprep.mubr.f32.mxu0 %v14651_v58  ;;  %v3473_v50 = vcombine.low %v14680_v54, %v14679_v29  ;;  %v2288_v6 = vcombine.low %v2286_v5, %v14682_v36  ;;  %v3474_v5 = vcombine.high %v14680_v54, %v14679_v29  ;;  %v14683_v29 = vld [vmem:[#allocation29_spill] sm:$0xff]  ;;  %v959_v36 = vsel %vm14393_vm2, %v11088_v12, %v11090_v1 }
 0x15d   : > { %v11104_v15 = vpop.permute.xlu0 %885  ;;  %v11106_v26 = vpop.permute.xlu1 %917  ;;  %v2700_v54 = vcombine.low %v14683_v29, %v10703_v25 }
 0x15e   : > { %v3481_v13 = vrot.slane %v3473_v50, %v10135_v19  ;;  %v960_v25 = vsel %vm678_vm4, %v959_v36, %v11106_v26  ;;  %v3843_v26 = vcombine.high %v10714_v56, %v14651_v58 }
 0x15f   : > { %3150 = vrot.lane.b32.xlu0 %v3040_v2, %s14637_s19  ;;  %3182 = vrot.lane.b32.xlu1 %v3107_v21, %s14638_s28  ;;  %v3437_v2 = vcombine.low %v3414_v4, %v3429_v8 }
 0x160   : > { %v3504_v21 = vcombine.low %v3481_v13, %v3496_v16  ;;  %v3505_v41 = vcombine.high %v3481_v13, %v3496_v16 }
 0x161   : > { %v11118_v38 = vpop.permute.xlu0 %2322  ;;  %v11120_v23 = vpop.permute.xlu1 %2326 }
 0x162   : > { %v3512_v0 = vrot.slane %v3504_v21, %v10386_v51  ;;  %v3519_v13 = vrot.slane %v3505_v41, %v10386_v51  ;;  %v11206_v21 = vrot.slane %v3474_v5, %v10135_v19  ;;  %v2372_v36 = vsel %vm14393_vm2, %v11118_v38, %v11120_v23 }
 0x163   : > { %1937 = vrot.lane.b32.xlu0 %v1874_v43, %s14676_s13  ;;  %3154 = vrot.lane.b32.xlu1 %v3050_v14, %s14639_s30  ;;  %v11177_v43 = vrot.slane %v3437_v2, %v10386_v51  ;;  %v3438_v14 = vcombine.high %v3414_v4, %v3429_v8  ;;  %v11199_v8 = vrot.slane %v3489_v10, %v10135_v19 }
 0x164   : > { %v3536_v11 = vcombine.high %v3512_v0, %v14651_v58  ;;  %v3453_v2 = vcombine.low %v11116_v33, %v11113_v24  ;;  %v14684_v33 = vld [vmem:[#allocation27_spill] sm:$0xff] }
 0x165   : > { %v11134_v32 = vpop.permute.xlu0 %889  ;;  %v11136_v27 = vpop.permute.xlu1 %921  ;;  %v3469_v3 = vcombine.high %v11177_v43, %v14651_v58  ;;  %v3452_v4 = vrot.slane %v3438_v14, %v10386_v51  ;;  %v3520_v24 = vcombine.low %v11206_v21, %v11199_v8  ;;  %v3537_v14 = vcombine.high %v3519_v13, %v14651_v58 }
 0x166   : > { %v3521_v23 = vcombine.high %v11206_v21, %v11199_v8  ;;  %v14688_v8 = vld [vmem:[#allocation17_spill] sm:$0xff] }
 0x167   : > { %3186 = vrot.lane.b32.xlu0 %v3117_v28, %s14654_s23  ;;  %1941 = vrot.lane.b32.xlu1 %v1875_v49, %s14670_s21 }
 0x169   : > { %v11149_v52 = vpop.permute.xlu0 %2298  ;;  %v11151_v17 = vpop.permute.xlu1 %2330 }
 0x16b   : > { %3158 = vrot.lane.b32.xlu0 %v11003_v42, %s14658_s15  ;;  %3190 = vrot.lane.b32.xlu1 %v11143_v18, %s14640_s0  ;;  %v2295_v42 = vrot.slane %v2288_v6, %v10386_v51  ;;  %v2699_v6 = vcombine.high %v11008_v9, %v14651_v58  ;;  %v961_v9 = vsel %vm680_vm6, %v960_v25, %v11136_v27 }
 0x16d   : > { %v894_v63 = vpop.permute.xlu0 %893  ;;  %v926_v48 = vpop.permute.xlu1 %925  ;;  %v2296_v35 = vcombine.high %v2295_v42, %v14651_v58 }
 0x16f   : > { %2354 = vrot.lane.b32.xlu0 %v2278_v59, %s14671_s26  ;;  %3583 = vrot.lane.b32.xlu1 %v3472_v22, %s14641_s20  ;;  %v3470_v59 = vcombine.high %v3452_v4, %v14651_v58  ;;  %v952_v22 = vsel %vm662_vm3, %v14684_v33, %v11104_v15  ;;  %v962_v15 = vsel %vm14397_vm8, %v961_v9, %v926_v48 }
 0x170   : > { %v953_v1 = vsel %vm664_vm5, %v952_v22, %v11134_v32  ;;  %v14685_v32 = vld [vmem:[#allocation30_spill] sm:$0xff]  ;;  %v2373_v22 = vsel %vm678_vm4, %v2372_v36, %v11151_v17  ;;  %v3850_v36 = vrot.slane %v10714_v56, %v10135_v19 }
 0x171   : > { %v11171_v53 = vpop.permute.xlu0 %2302  ;;  %v11173_v40 = vpop.permute.xlu1 %2334  ;;  %v954_v10 = vsel %vm14389_vm7, %v953_v1, %v894_v63  ;;  %v3828_v41 = vcombine.high %v14685_v32, %v10716_v57 }
 0x172   : > { %v2374_v9 = vsel %vm680_vm6, %v2373_v22, %v11173_v40  ;;  %v3827_v40 = vcombine.low %v14685_v32, %v10716_v57 }
 0x173   : > { %3587 = vrot.lane.b32.xlu0 %v3512_v0, %s14642_s27  ;;  %2358 = vrot.lane.b32.xlu1 %v2295_v42, %s14676_s13 }
 0x175   : > { %v898_v28 = vpop.permute.xlu0 %897  ;;  %v930_v49 = vpop.permute.xlu1 %929 }
 0x176   : > { %v955_v27 = vsel %vm14396_vm9, %v954_v10, %v898_v28 }
 0x177   : > { %3559 = vrot.lane.b32.xlu0 %v3469_v3, %s14643_s29  ;;  %3591 = vrot.lane.b32.xlu1 %v3536_v11, %s14644_s25  ;;  %v3461_v3 = vrot.slane %v3453_v2, %v10386_v51  ;;  %v2707_v11 = vrot.slane %v2700_v54, %v10135_v19  ;;  %v3528_v2 = vrot.slane %v3520_v24, %v10386_v51  ;;  %v14687_v24 = vld [vmem:[#allocation33_spill] sm:$0xff] }
 0x178   : > { %v2365_v33 = vsel %vm662_vm3, %v14687_v24, %v11149_v52  ;;  %v14694_v24 = vld [vmem:[#allocation18_spill] sm:$0xff] }
 0x179   : > { %v11189_v39 = vpop.permute.xlu0 %2306  ;;  %v11191_v50 = vpop.permute.xlu1 %2338  ;;  %v2366_v1 = vsel %vm664_vm5, %v2365_v33, %v11171_v53  ;;  %v14689_v53 = vld [vmem:[#allocation16_spill] sm:$0xff]  ;;  %v3538_v10 = vcombine.high %v3528_v2, %v14651_v58 }
 0x17a   : > { %v2367_v52 = vsel %vm14389_vm7, %v2366_v1, %v11189_v39  ;;  %v2375_v17 = vsel %vm14397_vm8, %v2374_v9, %v11191_v50  ;;  %v3119_v21 = vcombine.low %v14689_v53, %v14688_v8  ;;  %vm9943_vm7 = vmmov 0  }
 0x17b   : > { %2362 = vrot.lane.b32.xlu0 %v2296_v35, %s14670_s21  ;;  %3563 = vrot.lane.b32.xlu1 %v3452_v4, %s14645_s16  ;;  %v963_v35 = vsel %vm14394_vm10, %v962_v15, %v930_v49  ;;  %v14686_v4 = vld [vmem:[#allocation34_spill] sm:$0xff] }
 0x17c   : > { %v2709_v5 = vcombine.low %v2707_v11, %v14686_v4  ;;  %v11257_v49 = vld [vmem:[%s14307_s1 + $0x4] sm:$0xf] }
 0x17d   : > { %v902_v61 = vpop.permute.xlu0 %901  ;;  %v934_v16 = vpop.permute.xlu1 %933 }
 0x17e   : > { %v956_v63 = vsel %vm670_vm11, %v955_v27, %v902_v61  ;;  %v964_v48 = vsel %vm14395_vm12, %v963_v35, %v934_v16  ;;  %v11260_v61 = vrot.slane %v3843_v26, %v10135_v19  ;;  %v11263_v16 = vrot.slane %v3828_v41, %v10135_v19  ;;  %v14690_v41 = vld [vmem:[#allocation32_spill] sm:$0xff]  ;;  %v14691_v27 = vld [vmem:[#allocation31_spill] sm:$0xff] }
 0x17f   : > { %3595 = vrot.lane.b32.xlu0 %v3519_v13, %s14634_s14  ;;  %3567 = vrot.lane.b32.xlu1 %v3470_v59, %s14635_s18  ;;  %v3894_v35 = vcombine.low %v14691_v27, %v14690_v41 }
 0x180   : > { %v3875_v39 = vcombine.high %v11263_v16, %v11260_v61 }
 0x181   : > { %v2311_v42 = vpop.permute.xlu0 %2310  ;;  %v2343_v0 = vpop.permute.xlu1 %2342 }
 0x182   : > { %v2376_v11 = vsel %vm14394_vm10, %v2375_v17, %v2343_v0 }
 0x183   : > { %3599 = vrot.lane.b32.xlu0 %v3537_v14, %s14636_s17  ;;  %2775 = vrot.lane.b32.xlu1 %v2699_v6, %s14671_s26  ;;  %v3471_v6 = vcombine.high %v3461_v3, %v14651_v58 }
 0x185   : > { %v906_v13 = vpop.permute.xlu0 %905  ;;  %v11244_v59 = vpop.permute.xlu1 %937 }
 0x186   : > { %v957_v29 = vsel %vm14392_vm13, %v956_v63, %v906_v13  ;;  %v965_v54 = vsel %vm14391_vm14, %v964_v48, %v11244_v59  ;;  %v11321_v63 = vld [vmem:[%s14307_s1 + $0x10] sm:$0xf]  ;;  %v3835_v48 = vrot.slane %v3827_v40, %v10135_v19  ;;  %v11326_v13 = vrot.slane %v3875_v39, %v10386_v51 }
 0x187   : > { %3571 = vrot.lane.b32.xlu0 %v3461_v3, %s14637_s19  ;;  %3603 = vrot.lane.b32.xlu1 %v3528_v2, %s14638_s28  ;;  %v958_v28 = vsel %vm14390_vm0, %v957_v29, %v11088_v12  ;;  %v2716_v12 = vrot.slane %v2709_v5, %v10386_v51  ;;  %v2368_v3 = vsel %vm14396_vm9, %v2367_v52, %v2311_v42 }
 0x188   : > { %9531 = vmatprep.subr.msk.mxu1 %vm975_vm15, %v965_v54  ;;  %v3126_v5 = vrot.slane %v3119_v21, %v10135_v19  ;;  %14692 = vst [vmem:[#allocation15_spill] sm:$0xff] %v11326_v13  ;;  %v3858_v22 = vcombine.low %v3835_v48, %v3850_v36  ;;  %v3859_v8 = vcombine.high %v3835_v48, %v3850_v36 }
 0x189   : > { %9532 = vmatpush1.msk.msra.mxu1 %vm975_vm15, %v958_v28  ;;  %v2315_v25 = vpop.permute.xlu0 %2314  ;;  %v2347_v14 = vpop.permute.xlu1 %2346  ;;  %v2717_v50 = vcombine.high %v2716_v12, %v14651_v58  ;;  %v11334_v28 = vrot.slane %v3521_v23, %v10386_v51  ;;  %v11353_v23 = vcombine.high %v11326_v13, %v14651_v58 }
 0x18a   : > { %9642 = vmatprep.subr.mxu1 %v14651_v58  ;;  %9533 = vmatmul.mubr.msk.f32.vlgmr.msra.gmra.mrb[0].mxu1 %vm971_vm1, %v11257_v49  ;;  %v2369_v15 = vsel %vm670_vm11, %v2368_v3, %v2315_v25  ;;  %v2377_v26 = vsel %vm14395_vm12, %v2376_v11, %v2347_v14  ;;  %v3128_v33 = vcombine.low %v3126_v5, %v14694_v24 }
 0x18b   : > { %2779 = vrot.lane.b32.xlu0 %v2716_v12, %s14676_s13  ;;  %3575 = vrot.lane.b32.xlu1 %v3471_v6, %s14639_s30  ;;  %v3902_v6 = vrot.slane %v3894_v35, %v10135_v19  ;;  %v3118_v12 = vcombine.high %v11143_v18, %v14651_v58  ;;  %14695 = vst [vmem:[#allocation20_spill] sm:$0xff] %v11353_v23 }
 0x18c   : > { %9644 = vmatprep.mubr.msk.f32.mxu1 %vm9943_vm7, %v14651_v58  ;;  %v3135_v18 = vrot.slane %v3128_v33, %v10386_v51  ;;  %v3540_v35 = vcombine.low %v10749_v47, %v10751_v7  ;;  %v3874_v47 = vcombine.low %v11263_v16, %v11260_v61  ;;  %v3539_v36 = vcombine.high %v11334_v28, %v14651_v58 }
 0x18d   : > { %v2319_v57 = vpop.permute.xlu0 %2318  ;;  %v11306_v32 = vpop.permute.xlu1 %2350 }
 0x18e   : > { %v2370_v42 = vsel %vm14392_vm13, %v2369_v15, %v2319_v57  ;;  %v2378_v0 = vsel %vm14391_vm14, %v2377_v26, %v11306_v32  ;;  %vm692_vm14 = vcmask 261120   ;;  %vm694_vm13 = vcmask 408576  }
 0x18f   : > { %v2371_v4 = vsel %vm14390_vm0, %v2370_v42, %v11118_v38  ;;  %3607 = vrot.lane.b32.xlu0 %v3538_v10, %s14654_s23  ;;  %2783 = vrot.lane.b32.xlu1 %v2717_v50, %s14670_s21  ;;  %v14693_v38 = vld [vmem:[#allocation35_spill] sm:$0xff]  ;;  %vm690_vm0 = vcmask 113664   ;;  %v11389_v57 = vrot.slane %v3859_v8, %v10386_v51  ;;  %v3895_v42 = vcombine.high %v14691_v27, %v14690_v41 }
 0x190   : > { %9554 = vmatprep.subr.msk.mxu0 %vm975_vm15, %v2378_v0  ;;  %v3917_v2 = vrot.slane %v14693_v38, %v10135_v19  ;;  %v3910_v39 = vcombine.high %v14693_v38, %v14651_v58  ;;  %v3547_v27 = vrot.slane %v3540_v35, %v10135_v19  ;;  %v11432_v61 = vrot.slane %v3874_v47, %v10386_v51 }
 0x191   : > { %9555 = vmatpush1.msk.msra.mxu0 %vm975_vm15, %v2371_v4  ;;  %v942_v29 = vpop.permute.xlu0 %941  ;;  %v11331_v54 = vpop.permute.xlu1 %2743  ;;  %14700 = vst [vmem:[#allocation23_spill] sm:$0xff] %v11389_v57  ;;  %v11411_v48 = vcombine.high %v11389_v57, %v14651_v58  ;;  %v3909_v41 = vrot.slane %v3895_v42, %v10135_v19 }
 0x192   : > { %9556 = vmatmul.mubr.msk.f32.vlgmr.msra.gmra.mrb[0].mxu0 %vm971_vm1, %v11321_v63  ;;  %v3925_v56 = vcombine.low %v3902_v6, %v3917_v2  ;;  %v966_v17 = vsel %vm690_vm0, %v11244_v59, %v942_v29  ;;  %v3136_v59 = vcombine.high %v3135_v18, %v14651_v58  ;;  %v3926_v50 = vcombine.high %v3902_v6, %v3917_v2 }
 0x193   : > { %3579 = vrot.lane.b32.xlu0 %v11154_v20, %s14658_s15  ;;  %3611 = vrot.lane.b32.xlu1 %v11334_v28, %s14640_s0  ;;  %v11360_v20 = vrot.slane %v3858_v22, %v10386_v51  ;;  %v11402_v0 = vrot.slane %v3910_v39, %v10135_v19  ;;  %14702 = vst [vmem:[#allocation26_spill] sm:$0xff] %v11411_v48  ;;  %14704 = vst [vmem:[#allocation29_spill] sm:$0xff] %v11432_v61 }
 0x194   : > { %2881 = vmatprep.mubr.f32.mxu0 %v14651_v58  ;;  %v11363_v52 = vrot.slane %v3925_v56, %v10386_v51  ;;  %v3549_v16 = vcombine.low %v3547_v27, %v10759_v60  ;;  %v11449_v60 = vcombine.high %v11432_v61, %v14651_v58 }
 0x195   : > { %v11349_v25 = vpop.permute.xlu0 %2747  ;;  %v946_v14 = vpop.permute.xlu1 %945  ;;  %14696 = vst [vmem:[#allocation21_spill] sm:$0xff] %v11360_v20  ;;  %v11373_v3 = vcombine.high %v11360_v20, %v14651_v58  ;;  %v3941_v7 = vcombine.low %v3909_v41, %v11402_v0 }
 0x196   : > { %14697 = vst [vmem:[#allocation19_spill] sm:$0xff] %v11363_v52  ;;  %v967_v53 = vsel %vm692_vm14, %v966_v17, %v946_v14  ;;  %v11377_v11 = vcombine.high %v11363_v52, %v14651_v58  ;;  %v2793_v28 = vsel %vm14393_vm2, %v11331_v54, %v11349_v25  ;;  %14706 = vst [vmem:[#allocation30_spill] sm:$0xff] %v11449_v60  ;;  %vm14708_vm2 = vcmask 441344  }
 0x197   : > { %3194 = vrot.lane.b32.xlu0 %v3118_v12, %s14671_s26  ;;  %4004 = vrot.lane.b32.xlu1 %v11353_v23, %s14641_s20  ;;  %14698 = vst [vmem:[#allocation25_spill] sm:$0xff] %v11373_v3  ;;  %v11436_v24 = vrot.slane %v3941_v7, %v10386_v51  ;;  %v3556_v22 = vrot.slane %v3549_v16, %v10386_v51 }
 0x198   : > { %14699 = vst [vmem:[#allocation24_spill] sm:$0xff] %v11377_v11 }
 0x199   : > { %v2720_v1 = vpop.permute.xlu0 %2719  ;;  %v2752_v9 = vpop.permute.xlu1 %2751  ;;  %14705 = vst [vmem:[#allocation27_spill] sm:$0xff] %v11436_v24 }
 0x19a   : > { %v2786_v56 = vsel %vm662_vm3, %v10888_v62, %v2720_v1  ;;  %v2794_v14 = vsel %vm678_vm4, %v2793_v28, %v2752_v9  ;;  %v3942_v62 = vcombine.high %v3909_v41, %v11402_v0  ;;  %v14713_v41 = vld [vmem:[#allocation37_spill] sm:$0xff] }
 0x19b   : > { %4008 = vrot.lane.b32.xlu0 %v11363_v52, %s14642_s27  ;;  %3198 = vrot.lane.b32.xlu1 %v3135_v18, %s14676_s13 }
 0x19d   : > { %v950_v21 = vpop.permute.xlu0 %949  ;;  %v2724_v40 = vpop.permute.xlu1 %2723 }
 0x19e   : > { %v968_v10 = vsel %vm694_vm13, %v967_v53, %v950_v21  ;;  %v2787_v25 = vsel %vm664_vm5, %v2786_v56, %v2724_v40  ;;  %v14707_v21 = vld [vmem:[#allocation36_spill] sm:$0xff]  ;;  %v3557_v40 = vcombine.high %v3556_v22, %v14651_v58 }
 0x19f   : > { %3980 = vrot.lane.b32.xlu0 %v11373_v3, %s14643_s29  ;;  %4012 = vrot.lane.b32.xlu1 %v11377_v11, %s14644_s25  ;;  %s9947_s25 = smov 78   ;;  %s9948_s29 = smov 96  }
 0x1a0   : > { %9643 = vmatpush3.msk.msra.mxu1 %vm975_vm15, %v968_v10  ;;  %v3961_v10 = vcombine.low %v14707_v21, %v10769_v37  ;;  %v11472_v37 = vcombine.high %v11436_v24, %v14651_v58 }
 0x1a1   : > { %v2756_v15 = vpop.permute.xlu0 %2755  ;;  %v2728_v26 = vpop.permute.xlu1 %2727  ;;  %9647 = vmatprep.subr.mxu1 %v14651_v58  ;;  %9645 = vmatmul.mubr.msk.f32.vlgmr.msra.gmra.mrb[2].mxu1 %vm971_vm1, %v11257_v49  ;;  %v11407_v49 = vrot.slane %v3926_v50, %v10386_v51 }
 0x1a2   : > { %9649 = vmatprep.mubr.msk.f32.mxu1 %vm9943_vm7, %v14651_v58  ;;  %v2795_v53 = vsel %vm680_vm6, %v2794_v14, %v2756_v15  ;;  %14709 = vst [vmem:[#allocation34_spill] sm:$0xff] %v11472_v37 }
 0x1a3   : > { %3202 = vrot.lane.b32.xlu0 %v3136_v59, %s14670_s21  ;;  %3984 = vrot.lane.b32.xlu1 %v11389_v57, %s14645_s16  ;;  %14701 = vst [vmem:[#allocation22_spill] sm:$0xff] %v11407_v49  ;;  %v11424_v29 = vcombine.high %v11407_v49, %v14651_v58  ;;  %v2788_v59 = vsel %vm14708_vm2, %v2787_v25, %v2728_v26  ;;  %vm14710_vm2 = vcmask 883712   ;;  %s9952_s16 = smov 74  }
 0x1a5   : > { %v2760_v4 = vpop.permute.xlu0 %2759  ;;  %v652_v5 = vpop.permute.xlu1 %651  ;;  %14703 = vst [vmem:[#allocation28_spill] sm:$0xff] %v11424_v29 }
 0x1a6   : > { %v691_v33 = vsel %vm690_vm0, %v10867_v46, %v652_v5  ;;  %v2796_v39 = vsel %vm14397_vm8, %v2795_v53, %v2760_v4  ;;  %v3968_v4 = vrot.slane %v3961_v10, %v10135_v19 }
 0x1a7   : > { %4016 = vrot.lane.b32.xlu0 %v11407_v49, %s14634_s14  ;;  %3988 = vrot.lane.b32.xlu1 %v11411_v48, %s14635_s18  ;;  %s9955_s14 = smov 20   ;;  %s9957_s18 = smov 76  }
 0x1a8   : > { %v3970_v47 = vcombine.low %v3968_v4, %v14713_v41 }
 0x1a9   : > { %v2732_v38 = vpop.permute.xlu0 %2731  ;;  %v2764_v2 = vpop.permute.xlu1 %2763 }
 0x1aa   : > { %v2789_v1 = vsel %vm14396_vm9, %v2788_v59, %v2732_v38  ;;  %v2797_v9 = vsel %vm14394_vm10, %v2796_v39, %v2764_v2  ;;  %vm14711_vm10 = vcmask 1014784   ;;  %v9944_v38 = vmov 0  }
 0x1ab   : > { %4020 = vrot.lane.b32.xlu0 %v11424_v29, %s14636_s17  ;;  %3615 = vrot.lane.b32.xlu1 %v3539_v36, %s14671_s26  ;;  %v3977_v2 = vrot.slane %v3970_v47, %v10386_v51  ;;  %s9956_s17 = smov 112  }
 0x1ac   : > { %9835 = vset.pattern.permute.xlu1 %v9944_v38  ;;  %9836 = vset.pattern.permute.xlu0 %v9944_v38 }
 0x1ad   : > { %v656_v6 = vpop.permute.xlu0 %655  ;;  %v2736_v12 = vpop.permute.xlu1 %2735  ;;  %v3978_v28 = vcombine.high %v3977_v2, %v14651_v58 }
 0x1ae   : > { %v693_v18 = vsel %vm692_vm14, %v691_v33, %v656_v6  ;;  %v2790_v50 = vsel %vm670_vm11, %v2789_v1, %v2736_v12  ;;  %v4222_v12 = vld [vmem:[%s14308_s2] sm:$0xf] }
 0x1af   : > { %3992 = vrot.lane.b32.xlu0 %v11432_v61, %s14637_s19  ;;  %4024 = vrot.lane.b32.xlu1 %v11436_v24, %s14638_s28  ;;  %s9953_s28 = smov 56   ;;  %s9958_s19 = smov 94  }
 0x1b1   : > { %v2768_v17 = vpop.permute.xlu0 %2767  ;;  %v660_v8 = vpop.permute.xlu1 %659 }
 0x1b2   : > { %v695_v46 = vsel %vm694_vm13, %v693_v18, %v660_v8  ;;  %v2798_v15 = vsel %vm14395_vm12, %v2797_v9, %v2768_v17  ;;  %vm14712_vm12 = vcmask 1031168  }
 0x1b3   : > { %3619 = vrot.lane.b32.xlu0 %v3556_v22, %s14676_s13  ;;  %3996 = vrot.lane.b32.xlu1 %v11449_v60, %s14639_s30  ;;  %s9954_s30 = smov 38  }
 0x1b4   : > { %9648 = vmatpush3.msk.msra.mxu1 %vm975_vm15, %v695_v46 }
 0x1b5   : > { %v2740_v26 = vpop.permute.xlu0 %2739  ;;  %v11477_v42 = vpop.permute.xlu1 %2771  ;;  %9652 = vmatprep.subr.mxu1 %v14651_v58  ;;  %9650 = vmatmul.mubr.msk.f32.vlgmr.msra.gmra.mrb[4].mxu1 %vm971_vm1, %v10879_v31  ;;  %v11496_v31 = vld [vmem:[%s14307_s1 + $0x14] sm:$0xf] }
 0x1b6   : > { %v2791_v0 = vsel %vm14710_vm2, %v2790_v50, %v2740_v26  ;;  %v2799_v35 = vsel %vm14711_vm10, %v2798_v15, %v11477_v42  ;;  %9654 = vmatprep.mubr.msk.f32.mxu1 %vm9943_vm7, %v14651_v58  ;;  %vm14716_vm10 = vcmask 130048   ;;  %vm14718_vm2 = vcmask 719872  }
 0x1b7   : > { %v2792_v5 = vsel %vm14712_vm12, %v2791_v0, %v11331_v54  ;;  %4028 = vrot.lane.b32.xlu0 %v11472_v37, %s14654_s23  ;;  %3623 = vrot.lane.b32.xlu1 %v3557_v40, %s14670_s21  ;;  %v11504_v54 = vrot.slane %v3942_v62, %v10386_v51  ;;  %vm14717_vm12 = vcmask 441344   ;;  %s9949_s23 = smov 2  }
 0x1b8   : > { %9560 = vmatprep.subr.msk.mxu0 %vm975_vm15, %v2799_v35 }
 0x1b9   : > { %9561 = vmatpush1.msk.msra.mxu0 %vm975_vm15, %v2792_v5  ;;  %v1515_v7 = vpop.permute.xlu0 %1514  ;;  %v11501_v27 = vpop.permute.xlu1 %3162  ;;  %14714 = vst [vmem:[#allocation33_spill] sm:$0xff] %v11504_v54  ;;  %v11516_v6 = vcombine.high %v11504_v54, %v14651_v58 }
 0x1ba   : > { %9562 = vmatmul.mubr.msk.f32.vlgmr.msra.gmra.mrb[0].mxu0 %vm971_vm1, %v11496_v31  ;;  %v1539_v56 = vsel %vm690_vm0, %v10961_v34, %v1515_v7 }
 0x1bb   : > { %4000 = vrot.lane.b32.xlu0 %v11326_v13, %s14658_s15  ;;  %4032 = vrot.lane.b32.xlu1 %v11504_v54, %s14640_s0  ;;  %14715 = vst [vmem:[#allocation17_spill] sm:$0xff] %v11516_v6  ;;  %s9950_s15 = smov 110   ;;  %s9951_s0 = smov 92  }
 0x1bc   : > { %3300 = vmatprep.mubr.f32.mxu0 %v14651_v58 }
 0x1bd   : > { %v3167_v36 = vpop.permute.xlu0 %3166  ;;  %v1519_v16 = vpop.permute.xlu1 %1518 }
 0x1be   : > { %v1540_v14 = vsel %vm692_vm14, %v1539_v56, %v1519_v16  ;;  %v3212_v62 = vsel %vm14716_vm10, %v11501_v27, %v3167_v36  ;;  %vm14719_vm10 = vcmask 867328   ;;  %v11567_v16 = vld [vmem:[%s14307_s1 + $0x18] sm:$0xf] }
 0x1bf   : > { %4036 = vrot.lane.b32.xlu0 %v11516_v6, %s14671_s26  ;;  %4040 = vrot.lane.b32.xlu1 %v3977_v2, %s14676_s13  ;;  %s9960_s26 = smov 58  }
 0x1c1   : > { %v3139_v33 = vpop.permute.xlu0 %3138  ;;  %v3171_v22 = vpop.permute.xlu1 %3170 }
 0x1c2   : > { %v3213_v9 = vsel %vm678_vm4, %v3212_v62, %v3171_v22 }
 0x1c3   : > { %4044 = vrot.lane.b32.xlu0 %v3978_v28, %s14670_s21  ;;  %4225 = vperm.xlu1 %9835, %v4222_v12   ;;  %s9959_s21 = smov 40  }
 0x1c5   : > { %v1523_v18 = vpop.permute.xlu0 %1522  ;;  %v3143_v17 = vpop.permute.xlu1 %3142 }
 0x1c6   : > { %v1541_v8 = vsel %vm694_vm13, %v1540_v14, %v1523_v18 }
 0x1c7   : > { %9653 = vmatpush3.msk.msra.mxu1 %vm975_vm15, %v1541_v8 }
 0x1c8   : > { %9657 = vmatprep.subr.mxu1 %v14651_v58  ;;  %9655 = vmatmul.mubr.msk.f32.vlgmr.msra.gmra.mrb[6].mxu1 %vm971_vm1, %v10981_v30  ;;  %v3205_v30 = vsel %vm662_vm3, %v11023_v45, %v3139_v33 }
 0x1c9   : > { %v3175_v25 = vpop.permute.xlu0 %3174  ;;  %v3147_v53 = vpop.permute.xlu1 %3146  ;;  %9659 = vmatprep.mubr.msk.f32.mxu1 %vm9943_vm7, %v14651_v58  ;;  %v3206_v26 = vsel %vm664_vm5, %v3205_v30, %v3143_v17 }
 0x1ca   : > { %v3214_v0 = vsel %vm680_vm6, %v3213_v9, %v3175_v25  ;;  %v3207_v4 = vsel %vm14717_vm12, %v3206_v26, %v3147_v53  ;;  %vm14720_vm12 = vcmask 883712  }
 0x1cd   : > { %v3179_v46 = vpop.permute.xlu0 %3178  ;;  %v1934_v34 = vpop.permute.xlu1 %1933 }
 0x1ce   : > { %v1958_v1 = vsel %vm690_vm0, %v11066_v55, %v1934_v34  ;;  %v3215_v5 = vsel %vm14397_vm8, %v3214_v0, %v3179_v46 }
 0x1d1   : > { %v3151_v21 = vpop.permute.xlu0 %3150  ;;  %v3183_v10 = vpop.permute.xlu1 %3182 }
 0x1d2   : > { %v3208_v45 = vsel %vm14396_vm9, %v3207_v4, %v3151_v21  ;;  %v3216_v55 = vsel %vm14718_vm2, %v3215_v5, %v3183_v10  ;;  %vm14721_vm9 = vcmask 1014784   ;;  %vm14722_vm2 = vcmask 1031168  }
 0x1d5   : > { %v1938_v59 = vpop.permute.xlu0 %1937  ;;  %v3155_v39 = vpop.permute.xlu1 %3154 }
 0x1d6   : > { %v1959_v40 = vsel %vm692_vm14, %v1958_v1, %v1938_v59  ;;  %v3209_v41 = vsel %vm670_vm11, %v3208_v45, %v3155_v39 }
 0x1d9   : > { %v3187_v50 = vpop.permute.xlu0 %3186  ;;  %v1942_v15 = vpop.permute.xlu1 %1941 }
 0x1da   : > { %v1960_v35 = vsel %vm694_vm13, %v1959_v40, %v1942_v15  ;;  %v3217_v47 = vsel %vm14719_vm10, %v3216_v55, %v3187_v50  ;;  %vm14724_vm10 = vcmask 441344  }
 0x1db   : > { %9658 = vmatpush3.msk.msra.mxu1 %vm975_vm15, %v1960_v35 }
 0x1dc   : > { %9662 = vmatprep.subr.mxu1 %v14651_v58  ;;  %9660 = vmatmul.mubr.msk.f32.vlgmr.msra.gmra.mrb[8].mxu1 %vm971_vm1, %v11084_v44 }
 0x1dd   : > { %v3159_v7 = vpop.permute.xlu0 %3158  ;;  %v11557_v38 = vpop.permute.xlu1 %3190  ;;  %9664 = vmatprep.mubr.msk.f32.mxu1 %vm9943_vm7, %v14651_v58 }
 0x1de   : > { %v3210_v2 = vsel %vm14720_vm12, %v3209_v41, %v3159_v7  ;;  %v3218_v36 = vsel %vm14721_vm9, %v3217_v47, %v11557_v38  ;;  %vm14723_vm9 = vcmask 130048   ;;  %vm14725_vm12 = vcmask 588800  }
 0x1df   : > { %v3211_v44 = vsel %vm14722_vm2, %v3210_v2, %v11501_v27  ;;  %9566 = vmatprep.subr.msk.mxu0 %vm975_vm15, %v3218_v36  ;;  %vm14726_vm2 = vcmask 719872   ;;  %v9571_v2 = vld [vmem:[%s14307_s1 + $0x1c] sm:$0xf] }
 0x1e0   : > { %9567 = vmatpush1.msk.msra.mxu0 %vm975_vm15, %v3211_v44 }
 0x1e1   : > { %v2355_v12 = vpop.permute.xlu0 %2354  ;;  %v3584_v28 = vpop.permute.xlu1 %3583  ;;  %9568 = vmatmul.mubr.msk.f32.vlgmr.msra.gmra.mrb[0].mxu0 %vm971_vm1, %v11567_v16 }
 0x1e2   : > { %3721 = vmatprep.mubr.f32.mxu0 %v14651_v58  ;;  %v2379_v18 = vsel %vm690_vm0, %v11306_v32, %v2355_v12 }
 0x1e5   : > { %v3588_v33 = vpop.permute.xlu0 %3587  ;;  %v2359_v22 = vpop.permute.xlu1 %2358 }
 0x1e6   : > { %v2380_v27 = vsel %vm692_vm14, %v2379_v18, %v2359_v22  ;;  %v3633_v62 = vsel %vm14723_vm9, %v3584_v28, %v3588_v33  ;;  %vm14727_vm9 = vcmask 867328  }
 0x1e9   : > { %v3560_v56 = vpop.permute.xlu0 %3559  ;;  %v3592_v14 = vpop.permute.xlu1 %3591 }
 0x1ea   : > { %v3626_v30 = vsel %vm662_vm3, %v11177_v43, %v3560_v56 }
 0x1ed   : > { %v2363_v17 = vpop.permute.xlu0 %2362  ;;  %v3564_v8 = vpop.permute.xlu1 %3563 }
 0x1ee   : > { %v2381_v25 = vsel %vm694_vm13, %v2380_v27, %v2363_v17  ;;  %v3627_v15 = vsel %vm664_vm5, %v3626_v30, %v3564_v8 }
 0x1ef   : > { %9663 = vmatpush3.msk.msra.mxu1 %vm975_vm15, %v2381_v25 }
 0x1f0   : > { %9667 = vmatprep.subr.mxu1 %v14651_v58  ;;  %9665 = vmatmul.mubr.msk.f32.vlgmr.msra.gmra.mrb[10].mxu1 %vm971_vm1, %v11321_v63  ;;  %v3634_v63 = vsel %vm678_vm4, %v3633_v62, %v3592_v14 }
 0x1f1   : > { %v3596_v53 = vpop.permute.xlu0 %3595  ;;  %v3568_v46 = vpop.permute.xlu1 %3567  ;;  %9669 = vmatprep.mubr.msk.f32.mxu1 %vm9943_vm7, %v14651_v58 }
 0x1f2   : > { %v3635_v26 = vsel %vm680_vm6, %v3634_v63, %v3596_v53  ;;  %v3628_v35 = vsel %vm14724_vm10, %v3627_v15, %v3568_v46  ;;  %vm14728_vm10 = vcmask 883712  }
 0x1f5   : > { %v3600_v34 = vpop.permute.xlu0 %3599  ;;  %v2776_v32 = vpop.permute.xlu1 %2775 }
 0x1f6   : > { %v2800_v1 = vsel %vm690_vm0, %v11477_v42, %v2776_v32  ;;  %v3636_v4 = vsel %vm14397_vm8, %v3635_v26, %v3600_v34  ;;  %vm14729_vm8 = vcmask 1014784  }
 0x1f9   : > { %v3572_v21 = vpop.permute.xlu0 %3571  ;;  %v3604_v10 = vpop.permute.xlu1 %3603 }
 0x1fa   : > { %v3629_v43 = vsel %vm14725_vm12, %v3628_v35, %v3572_v21  ;;  %v3637_v42 = vsel %vm14726_vm2, %v3636_v4, %v3604_v10  ;;  %vm14730_vm12 = vcmask 1031168   ;;  %vm14732_vm2 = vcmask 441344  }
 0x1fd   : > { %v2780_v59 = vpop.permute.xlu0 %2779  ;;  %v3576_v39 = vpop.permute.xlu1 %3575 }
 0x1fe   : > { %v2801_v9 = vsel %vm692_vm14, %v2800_v1, %v2780_v59  ;;  %v3630_v5 = vsel %vm670_vm11, %v3629_v43, %v3576_v39 }
 0x201   : > { %v3608_v40 = vpop.permute.xlu0 %3607  ;;  %v2784_v50 = vpop.permute.xlu1 %2783 }
 0x202   : > { %v2802_v0 = vsel %vm694_vm13, %v2801_v9, %v2784_v50  ;;  %v3638_v45 = vsel %vm14727_vm9, %v3637_v42, %v3608_v40  ;;  %vm14733_vm9 = vcmask 572416  }
 0x203   : > { %9668 = vmatpush3.msk.msra.mxu1 %vm975_vm15, %v2802_v0 }
 0x204   : > { %9672 = vmatprep.subr.mxu1 %v14651_v58  ;;  %9670 = vmatmul.mubr.msk.f32.vlgmr.msra.gmra.mrb[12].mxu1 %vm971_vm1, %v11496_v31 }
 0x205   : > { %v3580_v55 = vpop.permute.xlu0 %3579  ;;  %v3612_v41 = vpop.permute.xlu1 %3611  ;;  %9674 = vmatprep.mubr.msk.f32.mxu1 %vm9943_vm7, %v14651_v58 }
 0x206   : > { %v3631_v47 = vsel %vm14728_vm10, %v3630_v5, %v3580_v55  ;;  %v3639_v7 = vsel %vm14729_vm8, %v3638_v45, %v3612_v41  ;;  %vm14731_vm8 = vcmask 130048   ;;  %vm14734_vm10 = vcmask 588800   ;;  %v9577_v55 = vld [vmem:[%s14307_s1 + $0x20] sm:$0xf] }
 0x207   : > { %v3632_v36 = vsel %vm14730_vm12, %v3631_v47, %v3584_v28  ;;  %9572 = vmatprep.subr.msk.mxu0 %vm975_vm15, %v3639_v7 }
 0x208   : > { %9573 = vmatpush1.msk.msra.mxu0 %vm975_vm15, %v3632_v36 }
 0x209   : > { %v3195_v31 = vpop.permute.xlu0 %3194  ;;  %v4005_v44 = vpop.permute.xlu1 %4004  ;;  %9574 = vmatmul.mubr.msk.f32.vlgmr.msra.gmra.mrb[0].mxu0 %vm971_vm1, %v9571_v2 }
 0x20a   : > { %4142 = vmatprep.mubr.f32.mxu0 %v14651_v58  ;;  %v3219_v14 = vsel %vm690_vm0, %v11557_v38, %v3195_v31 }
 0x20d   : > { %v4009_v12 = vpop.permute.xlu0 %4008  ;;  %v3199_v33 = vpop.permute.xlu1 %3198 }
 0x20e   : > { %v3220_v18 = vsel %vm692_vm14, %v3219_v14, %v3199_v33  ;;  %v4054_v10 = vsel %vm14731_vm8, %v4005_v44, %v4009_v12  ;;  %vm4423_vm8 = vcmask 15360  }
 0x211   : > { %v3981_v22 = vpop.permute.xlu0 %3980  ;;  %v4013_v56 = vpop.permute.xlu1 %4012 }
 0x212   : > { %v4055_v39 = vsel %vm678_vm4, %v4054_v10, %v4013_v56  ;;  %vm14736_vm4 = vcmask 867328  }
 0x215   : > { %v3203_v28 = vpop.permute.xlu0 %3202  ;;  %v3985_v27 = vpop.permute.xlu1 %3984 }
 0x216   : > { %v3221_v17 = vsel %vm694_vm13, %v3220_v18, %v3203_v28 }
 0x217   : > { %9673 = vmatpush3.msk.msra.mxu1 %vm975_vm15, %v3221_v17 }
 0x218   : > { %9675 = vmatmul.mubr.msk.f32.vlgmr.msra.gmra.mrb[14].mxu1 %vm971_vm1, %v11567_v16  ;;  %9677 = vmatprep.subr.mxu1 %v14651_v58  ;;  %v4047_v16 = vsel %vm662_vm3, %v11360_v20, %v3981_v22  ;;  %vm14735_vm3 = vcmask 719872  }
 0x219   : > { %v4017_v8 = vpop.permute.xlu0 %4016  ;;  %v3989_v25 = vpop.permute.xlu1 %3988  ;;  %9679 = vmatprep.mubr.msk.f32.mxu1 %vm9943_vm7, %v14651_v58  ;;  %v4048_v63 = vsel %vm664_vm5, %v4047_v16, %v3985_v27  ;;  %vm14737_vm5 = vcmask 883712   ;;  %v4235_v27 = vld [vmem:[%s14310_s4] sm:$0xff] }
 0x21a   : > { %v4056_v9 = vsel %vm680_vm6, %v4055_v39, %v4017_v8  ;;  %v4049_v50 = vsel %vm14732_vm2, %v4048_v63, %v3989_v25  ;;  %vm14738_vm6 = vcmask 1014784   ;;  %4238 = vperm.xlu0 %9836, %v4235_v27  }
 0x21d   : > { %v4021_v53 = vpop.permute.xlu0 %4020  ;;  %v3616_v38 = vpop.permute.xlu1 %3615 }
 0x21e   : > { %v3640_v59 = vsel %vm690_vm0, %v3612_v41, %v3616_v38  ;;  %v4057_v15 = vsel %vm14733_vm9, %v4056_v9, %v4021_v53 }
 0x221   : > { %v3993_v46 = vpop.permute.xlu0 %3992  ;;  %v4025_v34 = vpop.permute.xlu1 %4024 }
 0x222   : > { %v4050_v26 = vsel %vm14734_vm10, %v4049_v50, %v3993_v46  ;;  %v4058_v0 = vsel %vm14735_vm3, %v4057_v15, %v4025_v34 }
 0x225   : > { %v3620_v32 = vpop.permute.xlu0 %3619  ;;  %v3997_v21 = vpop.permute.xlu1 %3996 }
 0x226   : > { %v3641_v62 = vsel %vm692_vm14, %v3640_v59, %v3620_v32  ;;  %v4051_v35 = vsel %vm670_vm11, %v4050_v26, %v3997_v21 }
 0x229   : > { %v4029_v1 = vpop.permute.xlu0 %4028  ;;  %v3624_v30 = vpop.permute.xlu1 %3623 }
 0x22a   : > { %v3642_v40 = vsel %vm694_vm13, %v3641_v62, %v3624_v30  ;;  %v4059_v4 = vsel %vm14736_vm4, %v4058_v0, %v4029_v1 }
 0x22b   : > { %9678 = vmatpush3.msk.msra.mxu1 %vm975_vm15, %v3642_v40 }
 0x22c   : > { %9680 = vmatmul.mubr.msk.f32.vlgmr.msra.gmra.mrb[16].mxu1 %vm971_vm1, %v9571_v2  ;;  %9682 = vmatprep.subr.mxu1 %v14651_v58 }
 0x22d   : > { %v4001_v43 = vpop.permute.xlu0 %4000  ;;  %v4033_v42 = vpop.permute.xlu1 %4032  ;;  %9684 = vmatprep.mubr.msk.f32.mxu1 %vm9943_vm7, %v14651_v58 }
 0x22e   : > { %v4052_v5 = vsel %vm14737_vm5, %v4051_v35, %v4001_v43  ;;  %v4060_v45 = vsel %vm14738_vm6, %v4059_v4, %v4033_v42 }
 0x22f   : > { %v4053_v41 = vsel %vm14730_vm12, %v4052_v5, %v4005_v44  ;;  %9578 = vmatprep.subr.msk.mxu0 %vm975_vm15, %v4060_v45  ;;  %v4234_v45 = vld [vmem:[%s14309_s3] sm:$0xff]  ;;  %vm14748_vm12 = vcmask 1045504  }
 0x230   : > { %9579 = vmatpush1.msk.msra.mxu0 %vm975_vm15, %v4053_v41 }
 0x231   : > { %v4037_v47 = vpop.permute.xlu0 %4036  ;;  %9580 = vmatmul.mubr.msk.f32.vlgmr.msra.gmra.mrb[0].mxu0 %vm971_vm1, %v9577_v55  ;;  %v4041_v2 = vpop.permute.xlu1 %4040 }
 0x232   : > { %v4061_v7 = vsel %vm690_vm0, %v4033_v42, %v4037_v47  ;;  %4319 = vmatprep.mubr.f32.mxu0 %v14651_v58  ;;  %vm4245_vm0 = vcmask 1043456  }
 0x233   : > { %v4062_v36 = vsel %vm692_vm14, %v4061_v7, %v4041_v2 }
 0x235   : > { %v4045_v31 = vpop.permute.xlu0 %4044 }
 0x236   : > { %v4063_v12 = vsel %vm694_vm13, %v4062_v36, %v4045_v31 }
 0x237   : > { %9683 = vmatpush3.msk.msra.mxu1 %vm975_vm15, %v4063_v12 }
 0x238   : > { %9685 = vmatmul.mubr.msk.f32.vlgmr.msra.gmra.mrb[18].mxu1 %vm971_vm1, %v9577_v55  ;;  %9687 = vmatprep.subr.mxu1 %v14651_v58 }
 0x239   : > { %9689 = vmatprep.mubr.msk.f32.mxu1 %vm9943_vm7, %v14651_v58  ;;  %vm4241_vm7 = vcmask 31744  }
 0x242   : > { %v4226_v50 = vpop.permute.xlu1 %4225 }
 0x25d   : > { %v1051_v44 = vpop.f32.mrb[0].mxu1 }
 0x25e   : > { %v1053_v33 = vpop.f32.mrb[1].mxu1 }
 0x274   : > { %v1122_v22 = vpop.f32.mrb[2].mxu1 }
 0x275   : > { %v9646_v56 = vpop.f32.mrb[3].mxu1 }
 0x288   : > { %v1275_v14 = vpop.f32.mrb[4].mxu1 }
 0x289   : > { %v1276_v18 = vadd.f32 %v1275_v14, %v1122_v22  ;;  %v9651_v28 = vpop.f32.mrb[5].mxu1 }
 0x299   : > { %v4239_v31 = vpop.permute.xlu0 %4238 }
 0x29b   : > { %v1693_v17 = vpop.f32.mrb[6].mxu1 }
 0x29c   : > { %v1699_v8 = vadd.f32 %v1693_v17, %v1276_v18  ;;  %v9656_v25 = vpop.f32.mrb[7].mxu1 }
 0x2af   : > { %v2112_v53 = vpop.f32.mrb[8].mxu1 }
 0x2b0   : > { %v2118_v38 = vadd.f32 %v2112_v53, %v1699_v8  ;;  %v9661_v46 = vpop.f32.mrb[9].mxu1 }
 0x2c3   : > { %v2533_v34 = vpop.f32.mrb[10].mxu1 }
 0x2c4   : > { %v2539_v32 = vadd.f32 %v2533_v34, %v2118_v38  ;;  %v9666_v21 = vpop.f32.mrb[11].mxu1 }
 0x2d7   : > { %v2954_v10 = vpop.f32.mrb[12].mxu1 }
 0x2d8   : > { %v2960_v59 = vadd.f32 %v2954_v10, %v2539_v32  ;;  %v9671_v16 = vpop.f32.mrb[13].mxu1 }
 0x2eb   : > { %v3373_v39 = vpop.f32.mrb[14].mxu1 }
 0x2ec   : > { %v3379_v62 = vadd.f32 %v3373_v39, %v2960_v59  ;;  %v9676_v1 = vpop.f32.mrb[15].mxu1 }
 0x2ff   : > { %v3794_v30 = vpop.f32.mrb[16].mxu1 }
 0x300   : > { %v3800_v63 = vadd.f32 %v3794_v30, %v3379_v62  ;;  %v9681_v9 = vpop.f32.mrb[17].mxu1  ;;  %v14739_v62 = vlaneseq  ;;  %v14740_v30 = vld [vmem:[#allocation14_spill] sm:$0xff] }
 0x302   : > { %v4809_v1 = vand.u32 127, %v14739_v62 }
 0x304   : > { %v4144_v40 = vpop.f32.mrb[0].mxu0 }
 0x305   : > { %v9698_v15 = vadd.f32 %v4144_v40, %v1051_v44  ;;  %v4146_v26 = vpop.f32.mrb[1].mxu0 }
 0x306   : > { %v9699_v0 = vadd.f32 %v4146_v26, %v1053_v33 }
 0x307   : > { %v4228_v35 = vadd.f32 %v9698_v15, %v4226_v50 }
 0x308   : > { %v4229_v4 = vadd.f32 %v9699_v0, %v4226_v50 }
 0x309   : > { %v4231_v42 = vmax.f32 %v4228_v35, 0.0  ;;  %v11705_v35 = vadd.s32 4294967295, %v4809_v1 }
 0x30a   : > { %v4232_v43 = vmax.f32 %v4229_v4, 0.0 }
 0x30b   : > { %v4215_v5 = vpop.f32.mrb[18].mxu1  ;;  %vm4820_vm11 = vcmp.ge.s32.totalorder %v11705_v35, 0  ;;  %vm4824_vm2 = vcmp.lt.s32.totalorder %v11705_v35, 16 }
 0x30c   : > { %v4221_v55 = vadd.f32 %v4215_v5, %v3800_v63  ;;  %v9686_v41 = vpop.f32.mrb[19].mxu1  ;;  %9583 = vmatprep.subr.msk.mxu0 %vm4245_vm0, %v4232_v43  ;;  %v4803_v63 = vadd.s32 16, %v14740_v30  ;;  %vm11766_vm3 = vmand %vm4820_vm11, %vm4824_vm2 }
 0x30d   : > { %9584 = vmatpush1.msk.msra.mxu0 %vm4245_vm0, %v4231_v42 }
 0x30e   : > { %v4230_v47 = vadd.f32 %v4226_v50, %v4221_v55  ;;  %9585 = vmatmul.mubr.msk.f32.vlgmr.msra.gmra.mrb[2].mxu0 %vm4241_vm7, %v4234_v45  ;;  %v4807_v4 = vadd.s32 4294967295, %v4803_v63  ;;  %v11724_v63 = vadd.s32 4294967295, %v14740_v30 }
 0x30f   : > { %5682 = vmatprep.mubr.f32.mxu0 %v14651_v58 }
 0x310   : > { %v4233_v7 = vmax.f32 %v4230_v47, 0.0  ;;  %vm4816_vm13 = vcmp.lt.s32.totalorder %v4807_v4, 16  ;;  %vm4811_vm4 = vcmp.ge.s32.totalorder %v11724_v63, 0 }
 0x311   : > { %vm4823_vm9 = vmand %vm4816_vm13, %vm4820_vm11 }
 0x312   : > { %9688 = vmatpush3.msk.msra.mxu1 %vm4245_vm0, %v4233_v7  ;;  %vm11731_vm10 = vmand %vm4823_vm9, %vm4824_vm2 }
 0x313   : > { %9690 = vmatmul.mubr.msk.f32.vlgmr.msra.gmra.mrb[20].mxu1 %vm4241_vm7, %v4234_v45  ;;  %vm4821_vm5 = vmand %vm4811_vm4, %vm4820_vm11 }
 0x314   : > { %9157 = vmatprep.mubr.f32.mxu1 %v14651_v58  ;;  %vm11882_vm6 = vmand %vm4821_vm5, %vm4824_vm2 }
 0x315   : > { %vm14749_vm0 = vmmov %vm14748_vm12 }
 0x316   : > { %vm14751_vm11 = vmmov %vm14749_vm0 }
 0x317   : > { %vm14752_vm13 = vmmov %vm14749_vm0 }
 0x318   : > { %vm14754_vm2 = vmmov %vm14749_vm0 }
 0x319   : > { %vm14755_vm9 = vmmov %vm14749_vm0 }
 0x31a   : > { %vm14758_vm4 = vmmov %vm14749_vm0 }
 0x31b   : > { %vm14759_vm5 = vmmov %vm14749_vm0 }
 0x3e1   : > { %v4321_v2 = vpop.f32.mrb[2].mxu0 }
 0x3e2   : > { %v4323_v36 = vpop.f32.mrb[3].mxu0  ;;  %v4322_v56 = vadd.f32 %v4321_v2, %v4239_v31 }
 0x3e3   : > { %v4324_v18 = vadd.f32 %v4323_v36, %v4239_v31 }
 0x3e4   : > { %v11677_v14 = vmax.f32 %v4322_v56, 0.0 }
 0x3e5   : > { %v4397_v28 = vmax.f32 %v4324_v18, 0.0 }
 0x3e6   : > { %v4392_v12 = vpop.f32.mrb[20].mxu1 }
 0x3e7   : > { %v4393_v44 = vadd.f32 %v4392_v12, %v4239_v31  ;;  %v9691_v33 = vpop.f32.mrb[21].mxu1 }
 0x3e9   : > { %v4398_v22 = vmax.f32 %v4393_v44, 0.0 }
 0x3eb   : > { %4451 = vrot.lane.b32.xlu0 %v4398_v22, %s9945_s24  ;;  %4447 = vrot.lane.b32.xlu1 %v4398_v22, %s9946_s12  ;;  %s9961_s24 = smov 22  }
 0x3ef   : > { %4457 = vrot.lane.b32.xlu0 %v4398_v22, %s9947_s25  ;;  %4454 = vrot.lane.b32.xlu1 %v4398_v22, %s9948_s29  ;;  %s9963_s25 = smov 64  }
 0x3f3   : > { %4419 = vrot.lane.b32.xlu0 %v11677_v14, %s9949_s23  ;;  %4400 = vrot.lane.b32.xlu1 %v11677_v14, %s9950_s15 }
 0x3f7   : > { %4403 = vrot.lane.b32.xlu0 %v11677_v14, %s9951_s0  ;;  %4406 = vrot.lane.b32.xlu1 %v11677_v14, %s9952_s16  ;;  %s15273_s0 = sld [smem:[#allocation148_spill]] }
 0x3fb   : > { %4409 = vrot.lane.b32.xlu0 %v11677_v14, %s9953_s28  ;;  %4412 = vrot.lane.b32.xlu1 %v11677_v14, %s9954_s30 }
 0x3ff   : > { %4415 = vrot.lane.b32.xlu0 %v11677_v14, %s9955_s14  ;;  %4445 = vrot.lane.b32.xlu1 %v4397_v28, %s9946_s12  ;;  %s14745_s12 = smov 127   ;;  %s423_s14 = sand.u32 1, %s9904_s22  }
 0x403   : > { %4426 = vrot.lane.b32.xlu0 %v4397_v28, %s9956_s17  ;;  %4421 = vrot.lane.b32.xlu1 %v4397_v28, %s9949_s23  ;;  %s9964_s23 = smov 80  }
 0x407   : > { %4432 = vrot.lane.b32.xlu0 %v4397_v28, %s9957_s18  ;;  %4429 = vrot.lane.b32.xlu1 %v4397_v28, %s9958_s19  ;;  %s9528_s18 = sshll.u32 %s423_s14, 5 }
 0x408   : > { %s425_s19 = scalar_lea.vmem [#allocation2], %s9528_s18 }
 0x40b   : > { %4438 = vrot.lane.b32.xlu0 %v4397_v28, %s9959_s21  ;;  %4435 = vrot.lane.b32.xlu1 %v4397_v28, %s9960_s26  ;;  %s9450_s21 = sshll.u32 %s425_s19, 4  ;;  %s14252_s21 = int_to_ptr.vmem [resolvable:$true] %s9450_s21 }
 0x40f   : > { %4441 = vrot.lane.b32.xlu1 %v4397_v28, %s9961_s24 }
 0x45d   : > { %v4452_v27 = vpop.permute.xlu0 %4451  ;;  %v4448_v17 = vpop.permute.xlu1 %4447 }
 0x461   : > { %v4458_v8 = vpop.permute.xlu0 %4457  ;;  %v4455_v25 = vpop.permute.xlu1 %4454 }
 0x462   : > { %v4747_v9 = vcombine.high %v4458_v8, %v14651_v58  ;;  %v4732_v40 = vcombine.high %v4455_v25, %v14651_v58  ;;  %v4754_v26 = vrot.slane %v4458_v8, %v10135_v19  ;;  %v4739_v0 = vrot.slane %v4455_v25, %v10135_v19 }
 0x464   : > { %v4761_v43 = vrot.slane %v4747_v9, %v10135_v19  ;;  %v4746_v42 = vrot.slane %v4732_v40, %v10135_v19  ;;  %v4762_v45 = vcombine.low %v4739_v0, %v4754_v26  ;;  %v4763_v55 = vcombine.high %v4739_v0, %v4754_v26 }
 0x465   : > { %v4420_v53 = vpop.permute.xlu0 %4419  ;;  %v11687_v38 = vpop.permute.xlu1 %4400 }
 0x466   : > { %v4778_v2 = vcombine.low %v4746_v42, %v4761_v43  ;;  %v4770_v33 = vrot.slane %v4762_v45, %v10386_v51  ;;  %v4777_v22 = vrot.slane %v4763_v55, %v10386_v51  ;;  %v4779_v56 = vcombine.high %v4746_v42, %v4761_v43 }
 0x468   : > { %v11748_v55 = vsel %vm11731_vm10, %v4770_v33, 0.0 }
 0x469   : > { %v11689_v46 = vpop.permute.xlu0 %4403  ;;  %v11691_v34 = vpop.permute.xlu1 %4406 }
 0x46a   : > { %v4460_v42 = vcombine.low %v11677_v14, %v11689_v46 }
 0x46d   : > { %v11693_v32 = vpop.permute.xlu0 %4409  ;;  %v11695_v21 = vpop.permute.xlu1 %4412 }
 0x471   : > { %v11697_v10 = vpop.permute.xlu0 %4415  ;;  %v4446_v59 = vpop.permute.xlu1 %4445 }
 0x472   : > { %v4449_v36 = vsel %vm4241_vm7, %v4446_v59, %v4448_v17  ;;  %v11719_v59 = vrot.slane %v4778_v2, %v10386_v51  ;;  %vm14750_vm7 = vmmov %vm14749_vm0 }
 0x475   : > { %v4427_v16 = vpop.permute.xlu0 %4426  ;;  %v4422_v39 = vpop.permute.xlu1 %4421 }
 0x476   : > { %v11721_v62 = vsel %vm4423_vm8, %v4420_v53, %v4422_v39  ;;  %v11736_v53 = vrot.slane %v4779_v56, %v10386_v51  ;;  %v4795_v39 = vcombine.high %v4777_v22, %v14651_v58  ;;  %vm14753_vm8 = vmmov %vm14749_vm0 }
 0x479   : > { %v4433_v50 = vpop.permute.xlu0 %4432  ;;  %v4430_v15 = vpop.permute.xlu1 %4429 }
 0x47a   : > { %v4596_v7 = vcombine.low %v4427_v16, %v4433_v50  ;;  %v4597_v1 = vcombine.high %v4427_v16, %v4433_v50  ;;  %v4794_v16 = vcombine.high %v4770_v33, %v14651_v58  ;;  %v7654_v33 = vrot.slane %v11748_v55, 2 }
 0x47c   : > { %v4604_v28 = vrot.slane %v4596_v7, %v10135_v19 }
 0x47d   : > { %v4436_v5 = vpop.permute.xlu1 %4435  ;;  %v4439_v41 = vpop.permute.xlu0 %4438 }
 0x47e   : > { %v4612_v47 = vcombine.low %v4430_v15, %v4436_v5  ;;  %v4628_v31 = vcombine.low %v4439_v41, %v4449_v36  ;;  %v4629_v18 = vcombine.high %v4439_v41, %v4449_v36  ;;  %v4613_v8 = vcombine.high %v4430_v15, %v4436_v5 }
 0x47f   : > { %v4508_v5 = vcombine.low %v11695_v21, %v11721_v62  ;;  %v4611_v41 = vrot.slane %v4597_v1, %v10135_v19  ;;  %v4461_v36 = vcombine.high %v11677_v14, %v11689_v46 }
 0x480   : > { %v4620_v12 = vrot.slane %v4612_v47, %v10135_v19  ;;  %v4636_v9 = vrot.slane %v4628_v31, %v10135_v19  ;;  %v4643_v30 = vrot.slane %v4629_v18, %v10135_v19  ;;  %v4627_v50 = vrot.slane %v4613_v8, %v10135_v19 }
 0x481   : > { %v4442_v44 = vpop.permute.xlu1 %4441  ;;  %v4476_v31 = vcombine.low %v11687_v38, %v11691_v34 }
 0x482   : > { %v4644_v17 = vcombine.low %v4442_v44, %v4452_v27  ;;  %v4645_v25 = vcombine.high %v4442_v44, %v4452_v27  ;;  %v4660_v40 = vcombine.low %v4604_v28, %v4620_v12  ;;  %v4661_v15 = vcombine.high %v4604_v28, %v4620_v12 }
 0x483   : > { %v4477_v12 = vcombine.high %v11687_v38, %v11691_v34  ;;  %v4492_v44 = vcombine.low %v11693_v32, %v11697_v10  ;;  %v4676_v14 = vcombine.low %v4611_v41, %v4627_v50  ;;  %v4468_v28 = vrot.slane %v4460_v42, %v10135_v19 }
 0x484   : > { %v4652_v26 = vrot.slane %v4644_v17, %v10135_v19  ;;  %v4659_v0 = vrot.slane %v4645_v25, %v10135_v19  ;;  %v4668_v47 = vrot.slane %v4660_v40, %v10386_v51  ;;  %v4675_v56 = vrot.slane %v4661_v15, %v10386_v51 }
 0x485   : > { %v4516_v38 = vrot.slane %v4508_v5, %v10135_v19  ;;  %v4475_v40 = vrot.slane %v4461_v36, %v10135_v19  ;;  %v4491_v15 = vrot.slane %v4477_v12, %v10135_v19  ;;  %v4684_v42 = vrot.slane %v4676_v14, %v10386_v51 }
 0x486   : > { %v4692_v4 = vcombine.low %v4636_v9, %v4652_v26  ;;  %v4693_v43 = vcombine.high %v4636_v9, %v4652_v26  ;;  %v4708_v45 = vcombine.low %v4643_v30, %v4659_v0  ;;  %v4709_v34 = vcombine.high %v4643_v30, %v4659_v0 }
 0x487   : > { %v4484_v26 = vrot.slane %v4476_v31, %v10135_v19  ;;  %v4500_v0 = vrot.slane %v4492_v44, %v10135_v19  ;;  %v11792_v30 = vsel %vm11731_vm10, %v4777_v22, 0.0  ;;  %v4493_v5 = vcombine.high %v11693_v32, %v11697_v10 }
 0x488   : > { %v4700_v7 = vrot.slane %v4692_v4, %v10386_v51  ;;  %v4707_v2 = vrot.slane %v4693_v43, %v10386_v51  ;;  %v4716_v8 = vrot.slane %v4708_v45, %v10386_v51  ;;  %v4509_v4 = vcombine.high %v11695_v21, %v11721_v62 }
 0x489   : > { %v4677_v43 = vcombine.high %v4611_v41, %v4627_v50  ;;  %v4556_v45 = vcombine.low %v4500_v0, %v4516_v38  ;;  %v4524_v41 = vcombine.low %v4468_v28, %v4484_v26  ;;  %v11819_v32 = vsel %vm11731_vm10, %v4795_v39, 0.0 }
 0x48a   : > { %v4725_v46 = vcombine.high %v4668_v47, %v4700_v7  ;;  %v4724_v18 = vcombine.low %v4668_v47, %v4700_v7  ;;  %v4727_v1 = vcombine.high %v4675_v56, %v4707_v2  ;;  %v4726_v9 = vcombine.low %v4675_v56, %v4707_v2 }
 0x48b   : > { %v4723_v47 = vrot.slane %v4709_v34, %v10386_v51  ;;  %v11803_v7 = vsel %vm11731_vm10, %v4794_v16, 0.0  ;;  %v4729_v62 = vcombine.high %v4684_v42, %v4716_v8  ;;  %v4728_v50 = vcombine.low %v4684_v42, %v4716_v8 }
 0x48c   : > { %v11777_v17 = vsel %vm11766_vm3, %v4725_v46, 0.0  ;;  %v11781_v25 = vsel %vm11766_vm3, %v4724_v18, 0.0  ;;  %v11807_v22 = vsel %vm11766_vm3, %v4727_v1, 0.0  ;;  %v11811_v21 = vsel %vm11766_vm3, %v4726_v9, 0.0 }
 0x48d   : > { %5228 = vrot.lane.b32.xlu0 %v11777_v17, %s14745_s12  ;;  %5224 = vrot.lane.b32.xlu1 %v11781_v25, %s14745_s12  ;;  %v4525_v2 = vcombine.high %v4468_v28, %v4484_v26  ;;  %v4796_v10 = vcombine.high %v11719_v59, %v14651_v58  ;;  %v4540_v16 = vcombine.low %v4475_v40, %v4491_v15  ;;  %v11830_v46 = vsel %vm11731_vm10, %v11719_v59, 0.0 }
 0x48e   : > { %v4523_v36 = vrot.slane %v4509_v4, %v10135_v19  ;;  %v4557_v31 = vcombine.high %v4500_v0, %v4516_v38  ;;  %v4691_v12 = vrot.slane %v4677_v43, %v10386_v51  ;;  %v4541_v44 = vcombine.high %v4475_v40, %v4491_v15 }
 0x48f   : > { %v4507_v56 = vrot.slane %v4493_v5, %v10135_v19  ;;  %v4564_v14 = vrot.slane %v4556_v45, %v10386_v51  ;;  %v11834_v39 = vsel %vm11766_vm3, %v4729_v62, 0.0  ;;  %v11838_v18 = vsel %vm11766_vm3, %v4728_v50, 0.0 }
 0x490   : > { %v4731_v28 = vcombine.high %v4691_v12, %v4723_v47  ;;  %v4730_v38 = vcombine.low %v4691_v12, %v4723_v47  ;;  %v4532_v34 = vrot.slane %v4524_v41, %v10386_v51  ;;  %v11847_v59 = vsel %vm11731_vm10, %v4796_v10, 0.0 }
 0x491   : > { %5236 = vrot.lane.b32.xlu0 %v11807_v22, %s14745_s12  ;;  %5232 = vrot.lane.b32.xlu1 %v11811_v21, %s14745_s12  ;;  %v4797_v8 = vcombine.high %v11736_v53, %v14651_v58  ;;  %v11854_v1 = vsel %vm11731_vm10, %v11736_v53, 0.0  ;;  %v4539_v9 = vrot.slane %v4525_v2, %v10386_v51  ;;  %v4548_v40 = vrot.slane %v4540_v16, %v10386_v51 }
 0x492   : > { %v4571_v26 = vrot.slane %v4557_v31, %v10386_v51  ;;  %v4572_v0 = vcombine.low %v4507_v56, %v4523_v36  ;;  %v11864_v15 = vrot.slane %v4541_v44, %v10386_v51  ;;  %v4573_v4 = vcombine.high %v4507_v56, %v4523_v36 }
 0x493   : > { %v7657_v43 = vrot.slane %v11777_v17, 2  ;;  %v7652_v53 = vrot.slane %v11781_v25, 2  ;;  %v11870_v42 = vsel %vm11766_vm3, %v4731_v28, 0.0  ;;  %v11874_v5 = vsel %vm11766_vm3, %v4730_v38, 0.0  ;;  %vm14757_vm3 = vmmov %vm14749_vm0 }
 0x494   : > { %v4589_v45 = vcombine.high %v4532_v34, %v4564_v14  ;;  %v4588_v47 = vcombine.low %v4532_v34, %v4564_v14  ;;  %v7659_v62 = vrot.slane %v11803_v7, 2  ;;  %v7667_v50 = vrot.slane %v11807_v22, 2 }
 0x495   : > { %5244 = vrot.lane.b32.xlu0 %v11834_v39, %s14745_s12  ;;  %5240 = vrot.lane.b32.xlu1 %v11838_v18, %s14745_s12  ;;  %v7669_v41 = vrot.slane %v11819_v32, 2  ;;  %v4580_v2 = vrot.slane %v4572_v0, %v10386_v51  ;;  %v4591_v10 = vcombine.high %v4539_v9, %v4571_v26  ;;  %v11893_v16 = vsel %vm11731_vm10, %v4797_v8, 0.0  ;;  %vm14756_vm10 = vmmov %vm14749_vm0 }
 0x496   : > { %v7664_v35 = vrot.slane %v11792_v30, 2  ;;  %v4587_v36 = vrot.slane %v4573_v4, %v10386_v51  ;;  %v11898_v31 = vsel %vm14748_vm12, %v7657_v43, %v7659_v62  ;;  %v11901_v12 = vsel %vm14749_vm0, %v7652_v53, %v7654_v33  ;;  %vm14760_vm12 = vmmov %vm14749_vm0 }
 0x497   : > { %v11904_v44 = vsel %vm14750_vm7, %v7667_v50, %v7669_v41  ;;  %v11908_v56 = vsel %vm11882_vm6, %v4589_v45, 0.0  ;;  %v11912_v27 = vsel %vm11882_vm6, %v4588_v47, 0.0  ;;  %v4590_v14 = vcombine.low %v4539_v9, %v4571_v26  ;;  %vm14762_vm7 = vmmov %vm14749_vm0 }
 0x498   : > { %v7679_v28 = vrot.slane %v11847_v59, 2  ;;  %v7662_v38 = vrot.slane %v11811_v21, 2  ;;  %v7677_v34 = vrot.slane %v11834_v39, 2  ;;  %v7674_v8 = vrot.slane %v11830_v46, 2 }
 0x499   : > { %5252 = vrot.lane.b32.xlu0 %v11870_v42, %s14745_s12  ;;  %5248 = vrot.lane.b32.xlu1 %v11874_v5, %s14745_s12  ;;  %v7689_v0 = vrot.slane %v11893_v16, 2  ;;  %v11925_v4 = vsel %vm11882_vm6, %v4591_v10, 0.0  ;;  %v4593_v9 = vcombine.high %v4548_v40, %v4580_v2  ;;  %v7672_v26 = vrot.slane %v11838_v18, 2 }
 0x49a   : > { %v7687_v45 = vrot.slane %v11870_v42, 2  ;;  %v4592_v47 = vcombine.low %v4548_v40, %v4580_v2  ;;  %v4595_v62 = vcombine.high %v11864_v15, %v4587_v36  ;;  %v11931_v33 = vsel %vm14751_vm11, %v7662_v38, %v7664_v35 }
 0x49b   : > { %v11934_v41 = vsel %vm14752_vm13, %v7677_v34, %v7679_v28  ;;  %v11938_v20 = vsel %vm11882_vm6, %v4590_v14, 0.0  ;;  %v11941_v10 = vsel %vm14753_vm8, %v7672_v26, %v7674_v8  ;;  %v7682_v40 = vrot.slane %v11874_v5, 2 }
 0x49c   : > { %v11944_v52 = vsel %vm14754_vm2, %v7687_v45, %v7689_v0  ;;  %v7684_v2 = vrot.slane %v11854_v1, 2  ;;  %v7656_v35 = vrot.slane %v11908_v56, 2  ;;  %v11955_v14 = vsel %vm11882_vm6, %v4593_v9, 0.0 }
 0x49d   : > { %5226 = vrot.lane.b32.xlu0 %v11908_v56, %s14745_s12  ;;  %5222 = vrot.lane.b32.xlu1 %v11912_v27, %s14745_s12  ;;  %v4594_v28 = vcombine.low %v11864_v15, %v4587_v36  ;;  %v7651_v8 = vrot.slane %v11912_v27, 2  ;;  %v7666_v0 = vrot.slane %v11925_v4, 2  ;;  %v11962_v23 = vsel %vm11882_vm6, %v4592_v47, 0.0 }
 0x49e   : > { %v11966_v13 = vsel %vm11882_vm6, %v4595_v62, 0.0  ;;  %v11969_v6 = vsel %vm14755_vm9, %v7682_v40, %v7684_v2  ;;  %v11972_v9 = vsel %vm14756_vm10, %v7656_v35, %v7657_v43  ;;  %v6247_v62 = vrot.slane %v11803_v7, 1 }
 0x49f   : > { %v11977_v60 = vsel %vm14757_vm3, %v7651_v8, %v7652_v53  ;;  %v11980_v47 = vsel %vm14758_vm4, %v7666_v0, %v7667_v50  ;;  %v7661_v2 = vrot.slane %v11938_v20, 2  ;;  %v7676_v35 = vrot.slane %v11955_v14, 2 }
 0x4a0   : > { %v11992_v53 = vsel %vm11882_vm6, %v4594_v28, 0.0  ;;  %v7671_v8 = vrot.slane %v11962_v23, 2  ;;  %v7686_v0 = vrot.slane %v11966_v13, 2  ;;  %vm14761_vm6 = vmmov %vm14749_vm0  ;;  %vm14764_vm11 = vcmask 1046528  }
 0x4a1   : > { %5234 = vrot.lane.b32.xlu0 %v11925_v4, %s14745_s12  ;;  %5230 = vrot.lane.b32.xlu1 %v11938_v20, %s14745_s12  ;;  %v12000_v43 = vsel %vm14759_vm5, %v7661_v2, %v7662_v38  ;;  %v12003_v15 = vsel %vm14760_vm12, %v7676_v35, %v7677_v34  ;;  %v7681_v2 = vrot.slane %v11992_v53, 2  ;;  %v4858_v35 = vcombine.low %v11912_v27, %v11938_v20  ;;  %vm14775_vm13 = vmmov %vm14764_vm11 }
 0x4a2   : > { %v12008_v50 = vsel %vm14761_vm6, %v7671_v8, %v7672_v26  ;;  %v12011_v54 = vsel %vm14749_vm0, %v7686_v0, %v7687_v45  ;;  %v4874_v8 = vcombine.low %v11908_v56, %v11925_v4  ;;  %v4890_v0 = vcombine.low %v11962_v23, %v11992_v53  ;;  %vm14778_vm8 = vmmov %vm14764_vm11 }
 0x4a3   : > { %v12031_v34 = vsel %vm14762_vm7, %v7681_v2, %v7682_v40  ;;  %v4866_v7 = vrot.slane %v4858_v35, %v10135_v19  ;;  %v4906_v40 = vcombine.low %v11955_v14, %v11966_v13  ;;  %v4994_v2 = vcombine.low %v11781_v25, %v11811_v21  ;;  %vm14782_vm2 = vmmov %vm14778_vm8 }
 0x4a4   : > { %v4882_v45 = vrot.slane %v4874_v8, %v10135_v19  ;;  %v4898_v26 = vrot.slane %v4890_v0, %v10135_v19  ;;  %v5010_v35 = vcombine.low %v11777_v17, %v11807_v22  ;;  %v14763_v8 = vrot.slane %v11777_v17, 1  ;;  %vm14786_vm9 = vmmov %vm14782_vm2 }
 0x4a5   : > { %5242 = vrot.lane.b32.xlu0 %v11955_v14, %s14745_s12  ;;  %5238 = vrot.lane.b32.xlu1 %v11962_v23, %s14745_s12  ;;  %v5026_v38 = vcombine.low %v11838_v18, %v11874_v5  ;;  %v4914_v63 = vrot.slane %v4906_v40, %v10135_v19  ;;  %v5002_v61 = vrot.slane %v4994_v2, %v10135_v19  ;;  %vm14790_vm10 = vmmov %vm14782_vm2 }
 0x4a6   : > { %v12052_v0 = vsel %vm14764_vm11, %v14763_v8, %v6247_v62  ;;  %v4922_v28 = vcombine.low %v4866_v7, %v4882_v45  ;;  %v5018_v37 = vrot.slane %v5010_v35, %v10135_v19  ;;  %v5042_v48 = vcombine.low %v11834_v39, %v11870_v42  ;;  %vm14792_vm3 = vmmov %vm14782_vm2 }
 0x4a7   : > { %v5034_v62 = vrot.slane %v5026_v38, %v10135_v19  ;;  %v4923_v8 = vcombine.high %v4866_v7, %v4882_v45  ;;  %v4859_v36 = vcombine.high %v11912_v27, %v11938_v20  ;;  %v4954_v2 = vcombine.low %v4898_v26, %v4914_v63  ;;  %vm14794_vm4 = vmmov %vm14782_vm2 }
 0x4a8   : > { %v12063_v24 = vrot.slane %v4922_v28, %v10386_v51  ;;  %v5050_v35 = vrot.slane %v5042_v48, %v10135_v19  ;;  %v5058_v57 = vcombine.low %v5002_v61, %v5018_v37  ;;  %v4955_v38 = vcombine.high %v4898_v26, %v4914_v63  ;;  %vm14797_vm5 = vmmov %vm14782_vm2 }
 0x4a9   : > { %5250 = vrot.lane.b32.xlu0 %v11966_v13, %s14745_s12  ;;  %5246 = vrot.lane.b32.xlu1 %v11992_v53, %s14745_s12  ;;  %v12075_v28 = vrot.slane %v4923_v8, %v10386_v51  ;;  %v5059_v7 = vcombine.high %v5002_v61, %v5018_v37  ;;  %v4873_v45 = vrot.slane %v4859_v36, %v10135_v19  ;;  %vm14800_vm12 = vmmov %vm14782_vm2 }
 0x4aa   : > { %14765 = vst [vmem:[#allocation16_spill] sm:$0xff] %v12063_v24  ;;  %v12079_v29 = vrot.slane %v4954_v2, %v10386_v51  ;;  %v12082_v3 = vrot.slane %v5058_v57, %v10386_v51  ;;  %v5090_v49 = vcombine.low %v5034_v62, %v5050_v35  ;;  %v5091_v11 = vcombine.high %v5034_v62, %v5050_v35  ;;  %vm14803_vm6 = vmmov %vm14782_vm2 }
 0x4ab   : > { %14766 = vst [vmem:[#allocation32_spill] sm:$0xff] %v12075_v28  ;;  %v12085_v40 = vrot.slane %v4955_v38, %v10386_v51  ;;  %v12088_v48 = vrot.slane %v5059_v7, %v10386_v51  ;;  %v4875_v63 = vcombine.high %v11908_v56, %v11925_v4  ;;  %v4891_v61 = vcombine.high %v11962_v23, %v11992_v53  ;;  %vm14806_vm0 = vmmov %vm14782_vm2 }
 0x4ac   : > { %14767 = vst [vmem:[#allocation31_spill] sm:$0xff] %v12079_v29  ;;  %14768 = vst [vmem:[#allocation35_spill] sm:$0xff] %v12082_v3  ;;  %v12102_v36 = vrot.slane %v5090_v49, %v10386_v51  ;;  %v12105_v26 = vrot.slane %v5091_v11, %v10386_v51  ;;  %v4907_v7 = vcombine.high %v11955_v14, %v11966_v13  ;;  %v6275_v11 = vrot.slane %v11870_v42, 1 }
 0x4ad   : > { %5769 = vrot.lane.b32.xlu0 %v11777_v17, %s14641_s20  ;;  %5765 = vrot.lane.b32.xlu1 %v11781_v25, %s14641_s20  ;;  %14769 = vst [vmem:[#allocation18_spill] sm:$0xff] %v12085_v40  ;;  %14770 = vst [vmem:[#allocation36_spill] sm:$0xff] %v12088_v48  ;;  %v4889_v2 = vrot.slane %v4875_v63, %v10135_v19  ;;  %v4905_v35 = vrot.slane %v4891_v61, %v10135_v19 }
 0x4ae   : > { %14771 = vst [vmem:[#allocation37_spill] sm:$0xff] %v12102_v36  ;;  %14772 = vst [vmem:[#allocation14_spill] sm:$0xff] %v12105_v26  ;;  %v4995_v8 = vcombine.high %v11781_v25, %v11811_v21  ;;  %v5011_v63 = vcombine.high %v11777_v17, %v11807_v22  ;;  %v5027_v61 = vcombine.high %v11838_v18, %v11874_v5  ;;  %v14773_v36 = vrot.slane %v11748_v55, 1 }
 0x4af   : > { %v4938_v62 = vcombine.low %v4873_v45, %v4889_v2  ;;  %v4921_v49 = vrot.slane %v4907_v7, %v10135_v19  ;;  %v5043_v38 = vcombine.high %v11834_v39, %v11870_v42  ;;  %v4939_v37 = vcombine.high %v4873_v45, %v4889_v2  ;;  %vm14809_vm7 = vmmov %vm14806_vm0 }
 0x4b0   : > { %v5009_v58 = vrot.slane %v4995_v8, %v10135_v19  ;;  %v5025_v26 = vrot.slane %v5011_v63, %v10135_v19  ;;  %v5041_v48 = vrot.slane %v5027_v61, %v10135_v19  ;;  %v14777_v8 = vrot.slane %v11807_v22, 1  ;;  %vm14812_vm11 = vmmov %vm14806_vm0 }
 0x4b1   : > { %5777 = vrot.lane.b32.xlu0 %v11807_v22, %s14641_s20  ;;  %5773 = vrot.lane.b32.xlu1 %v11811_v21, %s14641_s20  ;;  %v12136_v57 = vrot.slane %v4938_v62, %v10386_v51  ;;  %v4970_v40 = vcombine.low %v4905_v35, %v4921_v49  ;;  %v5057_v28 = vrot.slane %v5043_v38, %v10135_v19  ;;  %v14776_v62 = vrot.slane %v11819_v32, 1 }
 0x4b2   : > { %v12143_v3 = vrot.slane %v4939_v37, %v10386_v51  ;;  %v4971_v7 = vcombine.high %v4905_v35, %v4921_v49  ;;  %v5074_v63 = vcombine.low %v5009_v58, %v5025_v26  ;;  %v5075_v38 = vcombine.high %v5009_v58, %v5025_v26 }
 0x4b3   : > { %v12157_v2 = vsel %vm14778_vm8, %v14777_v8, %v14776_v62  ;;  %v6270_v55 = vrot.slane %v11874_v5, 1  ;;  %v12165_v37 = vrot.slane %v4970_v40, %v10386_v51  ;;  %v14780_v35 = vrot.slane %v11792_v30, 1  ;;  %vm14815_vm8 = vmmov %vm14806_vm0 }
 0x4b4   : > { %v12168_v32 = vrot.slane %v4971_v7, %v10386_v51  ;;  %v14781_v49 = vrot.slane %v11811_v21, 1  ;;  %v12178_v26 = vrot.slane %v5074_v63, %v10386_v51  ;;  %v12181_v61 = vrot.slane %v5075_v38, %v10386_v51 }
 0x4b5   : > { %5785 = vrot.lane.b32.xlu0 %v11834_v39, %s14641_s20  ;;  %5781 = vrot.lane.b32.xlu1 %v11838_v18, %s14641_s20  ;;  %v6447_v62 = vcombine.low %v12052_v0, %v12157_v2  ;;  %v14784_v8 = vrot.slane %v11847_v59, 1  ;;  %v14785_v63 = vrot.slane %v11834_v39, 1  ;;  %v14789_v59 = vrot.slane %v11838_v18, 1 }
 0x4b6   : > { %14779 = vst [vmem:[#allocation38_spill] sm:$0xff] %v12168_v32  ;;  %v12175_v58 = vsel %vm14782_vm2, %v14781_v49, %v14780_v35  ;;  %14783 = vst [vmem:[#allocation39_spill] sm:$0xff] %v12181_v61  ;;  %v6269_v49 = vrot.slane %v11992_v53, 1  ;;  %v14795_v30 = vrot.slane %v11777_v17, 1  ;;  %v14804_v17 = vrot.slane %v11811_v21, 1 }
 0x4b7   : > { %v14813_v21 = vrot.slane %v11966_v13, 1  ;;  %vm5188_vm2 = vcmask 392192  }
 0x4b9   : > { %5793 = vrot.lane.b32.xlu0 %v11870_v42, %s14641_s20  ;;  %5789 = vrot.lane.b32.xlu1 %v11874_v5, %s14641_s20  ;;  %v14774_v42 = vrot.slane %v11781_v25, 1  ;;  %v5107_v5 = vcombine.high %v5041_v48, %v5057_v28 }
 0x4bb   : > { %v12150_v45 = vsel %vm14775_vm13, %v14774_v42, %v14773_v36  ;;  %v5106_v36 = vcombine.low %v5041_v48, %v5057_v28  ;;  %v12199_v28 = vsel %vm14786_vm9, %v14785_v63, %v14784_v8  ;;  %v12202_v48 = vrot.slane %v5107_v5, %v10386_v51  ;;  %vm14814_vm13 = vmmov %vm14806_vm0 }
 0x4bc   : > { %v14791_v63 = vrot.slane %v11893_v16, 1  ;;  %v14796_v8 = vrot.slane %v11908_v56, 1  ;;  %v14801_v5 = vrot.slane %v11807_v22, 1  ;;  %v14810_v22 = vrot.slane %v11838_v18, 1 }
 0x4bd   : > { %5767 = vrot.lane.b32.xlu0 %v11908_v56, %s14641_s20  ;;  %5763 = vrot.lane.b32.xlu1 %v11912_v27, %s14641_s20  ;;  %v12186_v7 = vrot.slane %v5106_v36, %v10386_v51  ;;  %14787 = vst [vmem:[#allocation40_spill] sm:$0xff] %v12202_v48  ;;  %v14788_v36 = vrot.slane %v11830_v46, 1  ;;  %v14793_v46 = vrot.slane %v11854_v1, 1  ;;  %v14799_v1 = vrot.slane %v11912_v27, 1 }
 0x4be   : > { %v12225_v38 = vsel %vm14792_vm3, %v6275_v11, %v14791_v63  ;;  %v12241_v16 = vsel %vm14797_vm5, %v14796_v8, %v14795_v30  ;;  %v14798_v63 = vrot.slane %v11781_v25, 1  ;;  %v14805_v56 = vrot.slane %v11938_v20, 1 }
 0x4bf   : > { %v12215_v35 = vsel %vm14790_vm10, %v14789_v59, %v14788_v36  ;;  %v12230_v42 = vsel %vm14794_vm4, %v6270_v55, %v14793_v46  ;;  %v14802_v36 = vrot.slane %v11925_v4, 1  ;;  %v14807_v25 = vrot.slane %v11834_v39, 1 }
 0x4c0   : > { %v12248_v46 = vsel %vm14800_vm12, %v14799_v1, %v14798_v63  ;;  %v12262_v30 = vsel %vm14806_vm0, %v14805_v56, %v14804_v17  ;;  %v14808_v27 = vrot.slane %v11955_v14, 1  ;;  %v6431_v39 = vcombine.low %v12150_v45, %v12175_v58 }
 0x4c1   : > { %5775 = vrot.lane.b32.xlu0 %v11925_v4, %s14641_s20  ;;  %5771 = vrot.lane.b32.xlu1 %v11938_v20, %s14641_s20  ;;  %v12255_v59 = vsel %vm14803_vm6, %v14802_v36, %v14801_v5  ;;  %v14811_v4 = vrot.slane %v11962_v23, 1  ;;  %v12281_v20 = vsel %vm14814_vm13, %v14813_v21, %v6275_v11  ;;  %v12284_v36 = vsel %vm14815_vm8, %v6269_v49, %v6270_v55 }
 0x4c2   : > { %v12269_v8 = vsel %vm14809_vm7, %v14808_v27, %v14807_v25  ;;  %v12293_v18 = vrot.slane %v6447_v62, %v10135_v19  ;;  %v6479_v63 = vcombine.low %v12199_v28, %v12225_v38  ;;  %v6463_v11 = vcombine.low %v12215_v35, %v12230_v42 }
 0x4c3   : > { %v12276_v5 = vsel %vm14812_vm11, %v14811_v4, %v14810_v22  ;;  %v6311_v55 = vcombine.low %v12241_v16, %v12255_v59  ;;  %v7859_v62 = vcombine.low %v11898_v31, %v11904_v44  ;;  %v7843_v1 = vcombine.low %v11901_v12, %v11931_v33 }
 0x4c4   : > { %v6327_v49 = vcombine.low %v12276_v5, %v12284_v36  ;;  %v7891_v17 = vcombine.low %v11934_v41, %v11944_v52  ;;  %v7723_v56 = vcombine.low %v11972_v9, %v11980_v47  ;;  %v7707_v25 = vcombine.low %v11977_v60, %v12000_v43 }
 0x4c5   : > { %5783 = vrot.lane.b32.xlu0 %v11955_v14, %s14641_s20  ;;  %5779 = vrot.lane.b32.xlu1 %v11962_v23, %s14641_s20  ;;  %v6295_v14 = vcombine.low %v12248_v46, %v12262_v30  ;;  %v6343_v23 = vcombine.low %v12269_v8, %v12281_v20  ;;  %v7875_v27 = vcombine.low %v11941_v10, %v11969_v6  ;;  %vm5190_vm9 = vcmask 523264  }
 0x4c6   : > { %v7755_v22 = vcombine.low %v12003_v15, %v12011_v54  ;;  %v7739_v4 = vcombine.low %v12008_v50, %v12031_v34  ;;  %v12328_v21 = vrot.slane %v6431_v39, %v10135_v19  ;;  %v12331_v40 = vrot.slane %v6479_v63, %v10135_v19 }
 0x4c7   : > { %v12340_v48 = vrot.slane %v6295_v14, %v10135_v19  ;;  %v12343_v61 = vrot.slane %v6343_v23, %v10135_v19  ;;  %v12346_v32 = vrot.slane %v6327_v49, %v10135_v19  ;;  %v12349_v39 = vrot.slane %v7859_v62, %v10135_v19 }
 0x4c8   : > { %14816 = vst [vmem:[#allocation41_spill] sm:$0xff] %v12328_v21  ;;  %14817 = vst [vmem:[#allocation42_spill] sm:$0xff] %v12331_v40  ;;  %v12352_v63 = vrot.slane %v7843_v1, %v10135_v19  ;;  %v12361_v14 = vrot.slane %v7707_v25, %v10135_v19  ;;  %v12368_v23 = vrot.slane %v7875_v27, %v10135_v19  ;;  %vm5192_vm10 = vcmask 654336  }
 0x4c9   : > { %5791 = vrot.lane.b32.xlu0 %v11966_v13, %s14641_s20  ;;  %5787 = vrot.lane.b32.xlu1 %v11992_v53, %s14641_s20  ;;  %v12334_v13 = vrot.slane %v6463_v11, %v10135_v19  ;;  %v12337_v53 = vrot.slane %v6311_v55, %v10135_v19  ;;  %14819 = vst [vmem:[#allocation44_spill] sm:$0xff] %v12349_v39  ;;  %vm5194_vm3 = vcmask 785408   ;;  %vm15166_vm4 = vcmask 130048  }
 0x4ca   : > { %14820 = vst [vmem:[#allocation45_spill] sm:$0xff] %v12352_v63  ;;  %v12355_v11 = vrot.slane %v7891_v17, %v10135_v19  ;;  %v12358_v55 = vrot.slane %v7723_v56, %v10135_v19  ;;  %14823 = vst [vmem:[#allocation48_spill] sm:$0xff] %v12361_v14  ;;  %v12371_v49 = vrot.slane %v7755_v22, %v10135_v19  ;;  %vm5196_vm0 = vcmask 916480  }
 0x4cb   : > { %14818 = vst [vmem:[#allocation43_spill] sm:$0xff] %v12334_v13  ;;  %14824 = vst [vmem:[#allocation49_spill] sm:$0xff] %v12368_v23  ;;  %v12374_v62 = vrot.slane %v7739_v4, %v10135_v19  ;;  %v6359_v1 = vcombine.low %v12340_v48, %v12337_v53  ;;  %v6391_v17 = vcombine.low %v12346_v32, %v12343_v61  ;;  %vm5614_vm7 = vcmask 64512  }
 0x4cc   : > { %14821 = vst [vmem:[#allocation46_spill] sm:$0xff] %v12355_v11  ;;  %14822 = vst [vmem:[#allocation47_spill] sm:$0xff] %v12358_v55  ;;  %v6495_v56 = vcombine.low %v12328_v21, %v12293_v18  ;;  %v6527_v25 = vcombine.low %v12334_v13, %v12331_v40  ;;  %v7771_v27 = vcombine.low %v12361_v14, %v12358_v55 }
 0x4cd   : > { %6721 = vrot.lane.b32.xlu0 %v12052_v0, %s14745_s12  ;;  %6717 = vrot.lane.b32.xlu1 %v12150_v45, %s14745_s12  ;;  %14825 = vst [vmem:[#allocation50_spill] sm:$0xff] %v12371_v49  ;;  %14826 = vst [vmem:[#allocation51_spill] sm:$0xff] %v12374_v62  ;;  %v7803_v22 = vcombine.low %v12374_v62, %v12371_v49  ;;  %v7907_v4 = vcombine.low %v12352_v63, %v12349_v39 }
 0x4ce   : > { %v7939_v21 = vcombine.low %v12368_v23, %v12355_v11  ;;  %v12397_v13 = vrot.slane %v6359_v1, %v10386_v51  ;;  %v12400_v14 = vrot.slane %v6391_v17, %v10386_v51  ;;  %v12403_v55 = vrot.slane %v6495_v56, %v10386_v51  ;;  %v14836_v23 = vld [vmem:[#allocation35_spill] sm:$0xff]  ;;  %vm15170_vm5 = vmmov %vm15166_vm4 }
 0x4cf   : > { %v12406_v40 = vrot.slane %v6527_v25, %v10386_v51  ;;  %v12409_v62 = vrot.slane %v7771_v27, %v10386_v51  ;;  %v12416_v1 = vrot.slane %v7803_v22, %v10386_v51  ;;  %v12419_v17 = vrot.slane %v7907_v4, %v10386_v51  ;;  %v14835_v27 = vld [vmem:[#allocation37_spill] sm:$0xff]  ;;  %vm15175_vm12 = vmmov %vm15166_vm4 }
 0x4d0   : > { %14827 = vst [vmem:[#allocation52_spill] sm:$0xff] %v12397_v13  ;;  %14828 = vst [vmem:[#allocation53_spill] sm:$0xff] %v12400_v14  ;;  %v12422_v56 = vrot.slane %v7939_v21, %v10386_v51 }
 0x4d1   : > { %6729 = vrot.lane.b32.xlu0 %v12157_v2, %s14745_s12  ;;  %6725 = vrot.lane.b32.xlu1 %v12175_v58, %s14745_s12  ;;  %14829 = vst [vmem:[#allocation54_spill] sm:$0xff] %v12403_v55  ;;  %14830 = vst [vmem:[#allocation55_spill] sm:$0xff] %v12406_v40 }
 0x4d2   : > { %14831 = vst [vmem:[#allocation56_spill] sm:$0xff] %v12409_v62  ;;  %14832 = vst [vmem:[#allocation57_spill] sm:$0xff] %v12416_v1 }
 0x4d3   : > { %14833 = vst [vmem:[#allocation58_spill] sm:$0xff] %v12419_v17  ;;  %14834 = vst [vmem:[#allocation59_spill] sm:$0xff] %v12422_v56 }
 0x4d4   : > { %vm15180_vm6 = vmmov %vm15166_vm4 }
 0x4d5   : > { %6737 = vrot.lane.b32.xlu0 %v12199_v28, %s14745_s12  ;;  %6733 = vrot.lane.b32.xlu1 %v12215_v35, %s14745_s12  ;;  %vm15186_vm11 = vmmov %vm15166_vm4 }
 0x4d6   : > { %vm15190_vm13 = vmmov %vm15166_vm4 }
 0x4d7   : > { %vm15194_vm8 = vmmov %vm15166_vm4 }
 0x4d9   : > { %6745 = vrot.lane.b32.xlu0 %v12225_v38, %s14745_s12  ;;  %6741 = vrot.lane.b32.xlu1 %v12230_v42, %s14745_s12 }
 0x4dd   : > { %6719 = vrot.lane.b32.xlu0 %v12241_v16, %s14745_s12  ;;  %6715 = vrot.lane.b32.xlu1 %v12248_v46, %s14745_s12 }
 0x4e1   : > { %6727 = vrot.lane.b32.xlu0 %v12255_v59, %s14745_s12  ;;  %6723 = vrot.lane.b32.xlu1 %v12262_v30, %s14745_s12 }
 0x4e5   : > { %6735 = vrot.lane.b32.xlu0 %v12269_v8, %s14745_s12  ;;  %6731 = vrot.lane.b32.xlu1 %v12276_v5, %s14745_s12 }
 0x4e9   : > { %6743 = vrot.lane.b32.xlu0 %v12281_v20, %s14745_s12  ;;  %6739 = vrot.lane.b32.xlu1 %v12284_v36, %s14745_s12 }
 0x4ed   : > { %7189 = vrot.lane.b32.xlu0 %v12052_v0, %s14641_s20  ;;  %7185 = vrot.lane.b32.xlu1 %v12150_v45, %s14641_s20 }
 0x4f1   : > { %7197 = vrot.lane.b32.xlu0 %v12157_v2, %s14641_s20  ;;  %7193 = vrot.lane.b32.xlu1 %v12175_v58, %s14641_s20 }
 0x4f5   : > { %7205 = vrot.lane.b32.xlu0 %v12199_v28, %s14641_s20  ;;  %7201 = vrot.lane.b32.xlu1 %v12215_v35, %s14641_s20 }
 0x4f9   : > { %7213 = vrot.lane.b32.xlu0 %v12225_v38, %s14641_s20  ;;  %7209 = vrot.lane.b32.xlu1 %v12230_v42, %s14641_s20 }
 0x4fd   : > { %7187 = vrot.lane.b32.xlu0 %v12241_v16, %s14641_s20  ;;  %7183 = vrot.lane.b32.xlu1 %v12248_v46, %s14641_s20 }
 0x4ff   : > { %v12476_v21 = vpop.permute.xlu0 %5228  ;;  %v12478_v4 = vpop.permute.xlu1 %5224 }
 0x500   : > { %14837 = vst [vmem:[#allocation60_spill] sm:$0xff] %v12476_v21  ;;  %14838 = vst [vmem:[#allocation61_spill] sm:$0xff] %v12478_v4 }
 0x501   : > { %7195 = vrot.lane.b32.xlu0 %v12255_v59, %s14641_s20  ;;  %7191 = vrot.lane.b32.xlu1 %v12262_v30, %s14641_s20 }
 0x503   : > { %v12484_v63 = vpop.permute.xlu0 %5236  ;;  %v12486_v22 = vpop.permute.xlu1 %5232 }
 0x504   : > { %14839 = vst [vmem:[#allocation62_spill] sm:$0xff] %v12484_v63  ;;  %14840 = vst [vmem:[#allocation63_spill] sm:$0xff] %v12486_v22  ;;  %v5422_v17 = vcombine.low %v12476_v21, %v12484_v63  ;;  %v5406_v56 = vcombine.low %v12478_v4, %v12486_v22 }
 0x505   : > { %7203 = vrot.lane.b32.xlu0 %v12269_v8, %s14641_s20  ;;  %7199 = vrot.lane.b32.xlu1 %v12276_v5, %s14641_s20 }
 0x506   : > { %v12523_v22 = vrot.slane %v5422_v17, %v10135_v19  ;;  %v12526_v63 = vrot.slane %v5406_v56, %v10135_v19 }
 0x507   : > { %v12492_v11 = vpop.permute.xlu0 %5244  ;;  %v12494_v25 = vpop.permute.xlu1 %5240 }
 0x508   : > { %14841 = vst [vmem:[#allocation64_spill] sm:$0xff] %v12492_v11  ;;  %14842 = vst [vmem:[#allocation65_spill] sm:$0xff] %v12494_v25 }
 0x509   : > { %7211 = vrot.lane.b32.xlu0 %v12281_v20, %s14641_s20  ;;  %7207 = vrot.lane.b32.xlu1 %v12284_v36, %s14641_s20  ;;  %14847 = vst [vmem:[#allocation70_spill] sm:$0xff] %v12523_v22  ;;  %14848 = vst [vmem:[#allocation71_spill] sm:$0xff] %v12526_v63 }
 0x50b   : > { %v12504_v62 = vpop.permute.xlu0 %5252  ;;  %v12506_v1 = vpop.permute.xlu1 %5248 }
 0x50c   : > { %14843 = vst [vmem:[#allocation66_spill] sm:$0xff] %v12504_v62  ;;  %14844 = vst [vmem:[#allocation67_spill] sm:$0xff] %v12506_v1  ;;  %v5454_v39 = vcombine.low %v12492_v11, %v12504_v62  ;;  %v5438_v49 = vcombine.low %v12494_v25, %v12506_v1 }
 0x50d   : > { %8133 = vrot.lane.b32.xlu0 %v11898_v31, %s14745_s12  ;;  %8129 = vrot.lane.b32.xlu1 %v11901_v12, %s14745_s12 }
 0x50e   : > { %v12517_v21 = vrot.slane %v5454_v39, %v10135_v19  ;;  %v12520_v4 = vrot.slane %v5438_v49, %v10135_v19  ;;  %v5470_v39 = vcombine.low %v12526_v63, %v12523_v22 }
 0x50f   : > { %v12528_v11 = vpop.permute.xlu0 %5226  ;;  %v12530_v25 = vpop.permute.xlu1 %5222 }
 0x510   : > { %14845 = vst [vmem:[#allocation68_spill] sm:$0xff] %v12517_v21  ;;  %14846 = vst [vmem:[#allocation69_spill] sm:$0xff] %v12520_v4  ;;  %v5502_v1 = vcombine.low %v12520_v4, %v12517_v21  ;;  %v12556_v62 = vrot.slane %v5470_v39, %v10386_v51 }
 0x511   : > { %14849 = vst [vmem:[#allocation72_spill] sm:$0xff] %v12528_v11  ;;  %14850 = vst [vmem:[#allocation73_spill] sm:$0xff] %v12530_v25  ;;  %8141 = vrot.lane.b32.xlu0 %v11904_v44, %s14745_s12  ;;  %8137 = vrot.lane.b32.xlu1 %v11931_v33, %s14745_s12 }
 0x512   : > { %v12549_v56 = vrot.slane %v5502_v1, %v10386_v51  ;;  %14856 = vst [vmem:[#allocation79_spill] sm:$0xff] %v12556_v62 }
 0x513   : > { %v12540_v49 = vpop.permute.xlu0 %5234  ;;  %v12542_v17 = vpop.permute.xlu1 %5230 }
 0x514   : > { %14851 = vst [vmem:[#allocation74_spill] sm:$0xff] %v12540_v49  ;;  %14852 = vst [vmem:[#allocation75_spill] sm:$0xff] %v12542_v17  ;;  %v5286_v1 = vcombine.low %v12528_v11, %v12540_v49  ;;  %v5270_v22 = vcombine.low %v12530_v25, %v12542_v17 }
 0x515   : > { %8149 = vrot.lane.b32.xlu0 %v11934_v41, %s14745_s12  ;;  %8145 = vrot.lane.b32.xlu1 %v11941_v10, %s14745_s12  ;;  %14853 = vst [vmem:[#allocation76_spill] sm:$0xff] %v12549_v56 }
 0x516   : > { %v12587_v56 = vrot.slane %v5286_v1, %v10135_v19  ;;  %v12590_v25 = vrot.slane %v5270_v22, %v10135_v19 }
 0x517   : > { %v12551_v4 = vpop.permute.xlu0 %5242  ;;  %v12553_v21 = vpop.permute.xlu1 %5238 }
 0x518   : > { %14854 = vst [vmem:[#allocation77_spill] sm:$0xff] %v12551_v4  ;;  %14855 = vst [vmem:[#allocation78_spill] sm:$0xff] %v12553_v21 }
 0x519   : > { %8157 = vrot.lane.b32.xlu0 %v11944_v52, %s14745_s12  ;;  %8153 = vrot.lane.b32.xlu1 %v11969_v6, %s14745_s12  ;;  %14861 = vst [vmem:[#allocation84_spill] sm:$0xff] %v12587_v56  ;;  %14862 = vst [vmem:[#allocation85_spill] sm:$0xff] %v12590_v25 }
 0x51b   : > { %v12568_v55 = vpop.permute.xlu0 %5250  ;;  %v12570_v40 = vpop.permute.xlu1 %5246 }
 0x51c   : > { %14857 = vst [vmem:[#allocation80_spill] sm:$0xff] %v12568_v55  ;;  %14858 = vst [vmem:[#allocation81_spill] sm:$0xff] %v12570_v40  ;;  %v5318_v39 = vcombine.low %v12551_v4, %v12568_v55  ;;  %v5302_v13 = vcombine.low %v12553_v21, %v12570_v40 }
 0x51d   : > { %8131 = vrot.lane.b32.xlu0 %v11972_v9, %s14745_s12  ;;  %8127 = vrot.lane.b32.xlu1 %v11977_v60, %s14745_s12 }
 0x51e   : > { %v12581_v63 = vrot.slane %v5318_v39, %v10135_v19  ;;  %v12584_v62 = vrot.slane %v5302_v13, %v10135_v19  ;;  %v5334_v13 = vcombine.low %v12590_v25, %v12587_v56 }
 0x51f   : > { %v12592_v17 = vpop.permute.xlu0 %5769  ;;  %v12594_v11 = vpop.permute.xlu1 %5765 }
 0x520   : > { %14859 = vst [vmem:[#allocation82_spill] sm:$0xff] %v12581_v63  ;;  %14860 = vst [vmem:[#allocation83_spill] sm:$0xff] %v12584_v62  ;;  %v5366_v49 = vcombine.low %v12584_v62, %v12581_v63  ;;  %v12620_v21 = vrot.slane %v5334_v13, %v10386_v51 }
 0x521   : > { %14863 = vst [vmem:[#allocation86_spill] sm:$0xff] %v12592_v17  ;;  %14864 = vst [vmem:[#allocation87_spill] sm:$0xff] %v12594_v11  ;;  %8139 = vrot.lane.b32.xlu0 %v11980_v47, %s14745_s12  ;;  %8135 = vrot.lane.b32.xlu1 %v12000_v43, %s14745_s12 }
 0x522   : > { %v12613_v39 = vrot.slane %v5366_v49, %v10386_v51  ;;  %14870 = vst [vmem:[#allocation93_spill] sm:$0xff] %v12620_v21 }
 0x523   : > { %v12604_v1 = vpop.permute.xlu0 %5777  ;;  %v12606_v22 = vpop.permute.xlu1 %5773 }
 0x524   : > { %14865 = vst [vmem:[#allocation88_spill] sm:$0xff] %v12604_v1  ;;  %14866 = vst [vmem:[#allocation89_spill] sm:$0xff] %v12606_v22  ;;  %v5963_v49 = vcombine.low %v12592_v17, %v12604_v1  ;;  %v5947_v56 = vcombine.low %v12594_v11, %v12606_v22 }
 0x525   : > { %8147 = vrot.lane.b32.xlu0 %v12003_v15, %s14745_s12  ;;  %8143 = vrot.lane.b32.xlu1 %v12008_v50, %s14745_s12  ;;  %14867 = vst [vmem:[#allocation90_spill] sm:$0xff] %v12613_v39 }
 0x526   : > { %v12651_v22 = vrot.slane %v5963_v49, %v10135_v19 }
 0x527   : > { %v12615_v62 = vpop.permute.xlu0 %5785  ;;  %v12617_v63 = vpop.permute.xlu1 %5781 }
 0x528   : > { %14868 = vst [vmem:[#allocation91_spill] sm:$0xff] %v12615_v62  ;;  %14869 = vst [vmem:[#allocation92_spill] sm:$0xff] %v12617_v63 }
 0x529   : > { %8155 = vrot.lane.b32.xlu0 %v12011_v54, %s14745_s12  ;;  %8151 = vrot.lane.b32.xlu1 %v12031_v34, %s14745_s12  ;;  %14875 = vst [vmem:[#allocation98_spill] sm:$0xff] %v12651_v22 }
 0x52b   : > { %v12632_v40 = vpop.permute.xlu0 %5793  ;;  %v12634_v4 = vpop.permute.xlu1 %5789 }
 0x52c   : > { %14871 = vst [vmem:[#allocation94_spill] sm:$0xff] %v12632_v40  ;;  %14872 = vst [vmem:[#allocation95_spill] sm:$0xff] %v12634_v4  ;;  %v5995_v13 = vcombine.low %v12615_v62, %v12632_v40  ;;  %v5979_v55 = vcombine.low %v12617_v63, %v12634_v4  ;;  %v12654_v62 = vrot.slane %v5947_v56, %v10135_v19 }
 0x52d   : > { %8601 = vrot.lane.b32.xlu0 %v11898_v31, %s14641_s20  ;;  %8597 = vrot.lane.b32.xlu1 %v11901_v12, %s14641_s20 }
 0x52e   : > { %v12645_v25 = vrot.slane %v5995_v13, %v10135_v19  ;;  %v12648_v11 = vrot.slane %v5979_v55, %v10135_v19  ;;  %14876 = vst [vmem:[#allocation99_spill] sm:$0xff] %v12654_v62  ;;  %v6011_v55 = vcombine.low %v12654_v62, %v12651_v22 }
 0x52f   : > { %v12656_v40 = vpop.permute.xlu0 %5767  ;;  %v12658_v63 = vpop.permute.xlu1 %5763 }
 0x530   : > { %14873 = vst [vmem:[#allocation96_spill] sm:$0xff] %v12645_v25  ;;  %14874 = vst [vmem:[#allocation97_spill] sm:$0xff] %v12648_v11  ;;  %v6043_v4 = vcombine.low %v12648_v11, %v12645_v25  ;;  %v12684_v17 = vrot.slane %v6011_v55, %v10386_v51 }
 0x531   : > { %14877 = vst [vmem:[#allocation100_spill] sm:$0xff] %v12656_v40  ;;  %14878 = vst [vmem:[#allocation101_spill] sm:$0xff] %v12658_v63  ;;  %8609 = vrot.lane.b32.xlu0 %v11904_v44, %s14641_s20  ;;  %8605 = vrot.lane.b32.xlu1 %v11931_v33, %s14641_s20 }
 0x532   : > { %v12677_v13 = vrot.slane %v6043_v4, %v10386_v51  ;;  %14884 = vst [vmem:[#allocation107_spill] sm:$0xff] %v12684_v17 }
 0x533   : > { %v12668_v49 = vpop.permute.xlu0 %5775  ;;  %v12670_v56 = vpop.permute.xlu1 %5771 }
 0x534   : > { %14879 = vst [vmem:[#allocation102_spill] sm:$0xff] %v12668_v49  ;;  %14880 = vst [vmem:[#allocation103_spill] sm:$0xff] %v12670_v56  ;;  %v5827_v4 = vcombine.low %v12656_v40, %v12668_v49  ;;  %v5811_v22 = vcombine.low %v12658_v63, %v12670_v56 }
 0x535   : > { %8617 = vrot.lane.b32.xlu0 %v11934_v41, %s14641_s20  ;;  %8613 = vrot.lane.b32.xlu1 %v11941_v10, %s14641_s20  ;;  %14881 = vst [vmem:[#allocation104_spill] sm:$0xff] %v12677_v13 }
 0x536   : > { %v12715_v13 = vrot.slane %v5827_v4, %v10135_v19  ;;  %v12718_v63 = vrot.slane %v5811_v22, %v10135_v19 }
 0x537   : > { %v12679_v11 = vpop.permute.xlu0 %5783  ;;  %v12681_v25 = vpop.permute.xlu1 %5779 }
 0x538   : > { %14882 = vst [vmem:[#allocation105_spill] sm:$0xff] %v12679_v11  ;;  %14883 = vst [vmem:[#allocation106_spill] sm:$0xff] %v12681_v25 }
 0x539   : > { %8625 = vrot.lane.b32.xlu0 %v11944_v52, %s14641_s20  ;;  %8621 = vrot.lane.b32.xlu1 %v11969_v6, %s14641_s20  ;;  %14889 = vst [vmem:[#allocation112_spill] sm:$0xff] %v12715_v13  ;;  %14890 = vst [vmem:[#allocation113_spill] sm:$0xff] %v12718_v63 }
 0x53b   : > { %v12696_v1 = vpop.permute.xlu0 %5791  ;;  %v12698_v21 = vpop.permute.xlu1 %5787 }
 0x53c   : > { %14885 = vst [vmem:[#allocation108_spill] sm:$0xff] %v12696_v1  ;;  %14886 = vst [vmem:[#allocation109_spill] sm:$0xff] %v12698_v21  ;;  %v5859_v55 = vcombine.low %v12679_v11, %v12696_v1  ;;  %v5843_v39 = vcombine.low %v12681_v25, %v12698_v21 }
 0x53d   : > { %8599 = vrot.lane.b32.xlu0 %v11972_v9, %s14641_s20  ;;  %8595 = vrot.lane.b32.xlu1 %v11977_v60, %s14641_s20 }
 0x53e   : > { %v12709_v62 = vrot.slane %v5859_v55, %v10135_v19  ;;  %v12712_v17 = vrot.slane %v5843_v39, %v10135_v19  ;;  %v5875_v39 = vcombine.low %v12718_v63, %v12715_v13  ;;  %v14900_v63 = vcombine.high %v12063_v24, %v12079_v29  ;;  %v14911_v29 = vld [vmem:[#allocation14_spill] sm:$0xff] }
 0x53f   : > { %v12720_v56 = vpop.permute.xlu0 %6721  ;;  %v12722_v40 = vpop.permute.xlu1 %6717 }
 0x540   : > { %14887 = vst [vmem:[#allocation110_spill] sm:$0xff] %v12709_v62  ;;  %14888 = vst [vmem:[#allocation111_spill] sm:$0xff] %v12712_v17  ;;  %v5907_v49 = vcombine.low %v12712_v17, %v12709_v62  ;;  %v12748_v25 = vrot.slane %v5875_v39, %v10386_v51 }
 0x541   : > { %14891 = vst [vmem:[#allocation114_spill] sm:$0xff] %v12720_v56  ;;  %14892 = vst [vmem:[#allocation115_spill] sm:$0xff] %v12722_v40  ;;  %8607 = vrot.lane.b32.xlu0 %v11980_v47, %s14641_s20  ;;  %8603 = vrot.lane.b32.xlu1 %v12000_v43, %s14641_s20 }
 0x542   : > { %v12741_v55 = vrot.slane %v5907_v49, %v10386_v51  ;;  %14898 = vst [vmem:[#allocation121_spill] sm:$0xff] %v12748_v25 }
 0x543   : > { %v12732_v4 = vpop.permute.xlu0 %6729  ;;  %v12734_v22 = vpop.permute.xlu1 %6725 }
 0x544   : > { %14893 = vst [vmem:[#allocation116_spill] sm:$0xff] %v12732_v4  ;;  %14894 = vst [vmem:[#allocation117_spill] sm:$0xff] %v12734_v22  ;;  %v6915_v49 = vcombine.low %v12720_v56, %v12732_v4  ;;  %v6899_v13 = vcombine.low %v12722_v40, %v12734_v22  ;;  %v14901_v56 = vcombine.high %v14836_v23, %v14835_v27 }
 0x545   : > { %8615 = vrot.lane.b32.xlu0 %v12003_v15, %s14641_s20  ;;  %8611 = vrot.lane.b32.xlu1 %v12008_v50, %s14641_s20  ;;  %14895 = vst [vmem:[#allocation118_spill] sm:$0xff] %v12741_v55 }
 0x546   : > { %v12783_v4 = vrot.slane %v6915_v49, %v10135_v19 }
 0x547   : > { %v12743_v17 = vpop.permute.xlu0 %6737  ;;  %v12745_v62 = vpop.permute.xlu1 %6733 }
 0x548   : > { %14896 = vst [vmem:[#allocation119_spill] sm:$0xff] %v12743_v17  ;;  %14897 = vst [vmem:[#allocation120_spill] sm:$0xff] %v12745_v62 }
 0x549   : > { %8623 = vrot.lane.b32.xlu0 %v12011_v54, %s14641_s20  ;;  %8619 = vrot.lane.b32.xlu1 %v12031_v34, %s14641_s20  ;;  %14904 = vst [vmem:[#allocation125_spill] sm:$0xff] %v12783_v4  ;;  %s9962_s20 = smov 48  }
 0x54b   : > { %v12760_v21 = vpop.permute.xlu0 %6745  ;;  %v12762_v11 = vpop.permute.xlu1 %6741 }
 0x54c   : > { %14899 = vst [vmem:[#allocation122_spill] sm:$0xff] %v12762_v11  ;;  %v6947_v39 = vcombine.low %v12743_v17, %v12760_v21  ;;  %v6931_v1 = vcombine.low %v12745_v62, %v12762_v11  ;;  %v12786_v62 = vrot.slane %v6899_v13, %v10135_v19 }
 0x54d   : > { %5131 = vrot.lane.b32.xlu0 %v14900_v63, %s14642_s27  ;;  %5159 = vrot.lane.b32.xlu1 %v14901_v56, %s14642_s27  ;;  %v14907_v56 = vld [vmem:[#allocation32_spill] sm:$0xff] }
 0x54e   : > { %v12777_v40 = vrot.slane %v6947_v39, %v10135_v19  ;;  %v12780_v22 = vrot.slane %v6931_v1, %v10135_v19  ;;  %14905 = vst [vmem:[#allocation126_spill] sm:$0xff] %v12786_v62  ;;  %v14908_v39 = vld [vmem:[#allocation18_spill] sm:$0xff]  ;;  %v14910_v1 = vld [vmem:[#allocation36_spill] sm:$0xff]  ;;  %v6963_v13 = vcombine.low %v12786_v62, %v12783_v4 }
 0x54f   : > { %v12788_v11 = vpop.permute.xlu0 %6719  ;;  %v12790_v63 = vpop.permute.xlu1 %6715  ;;  %v14909_v23 = vcombine.low %v14907_v56, %v14908_v39  ;;  %v14912_v49 = vcombine.low %v14910_v1, %v14911_v29 }
 0x550   : > { %14902 = vst [vmem:[#allocation123_spill] sm:$0xff] %v12777_v40  ;;  %14903 = vst [vmem:[#allocation124_spill] sm:$0xff] %v12780_v22  ;;  %v6995_v27 = vcombine.low %v12780_v22, %v12777_v40  ;;  %v14914_v22 = vcombine.high %v14907_v56, %v14908_v39  ;;  %v12824_v4 = vrot.slane %v6963_v13, %v10386_v51 }
 0x551   : > { %14906 = vst [vmem:[#allocation127_spill] sm:$0xff] %v12790_v63  ;;  %5135 = vrot.lane.b32.xlu0 %v14909_v23, %s14676_s13  ;;  %5163 = vrot.lane.b32.xlu1 %v14912_v49, %s14676_s13  ;;  %v14915_v23 = vcombine.high %v14910_v1, %v14911_v29  ;;  %v14919_v29 = vcombine.low %v12178_v26, %v12186_v7 }
 0x552   : > { %v12817_v49 = vrot.slane %v6995_v27, %v10386_v51  ;;  %14917 = vst [vmem:[#allocation36_spill] sm:$0xff] %v12824_v4  ;;  %v14921_v27 = vcombine.high %v12178_v26, %v12186_v7  ;;  %v6432_v26 = vcombine.high %v12150_v45, %v12175_v58  ;;  %v6480_v7 = vcombine.high %v12199_v28, %v12225_v38  ;;  %v14924_v45 = vld [vmem:[#allocation38_spill] sm:$0xff]  ;;  %v14926_v28 = vld [vmem:[#allocation39_spill] sm:$0xff]  ;;  %v14927_v38 = vld [vmem:[#allocation40_spill] sm:$0xff] }
 0x553   : > { %v12804_v24 = vpop.permute.xlu0 %6727  ;;  %v12806_v17 = vpop.permute.xlu1 %6723  ;;  %v14925_v58 = vcombine.low %v12143_v3, %v14924_v45 }
 0x554   : > { %14913 = vst [vmem:[#allocation32_spill] sm:$0xff] %v12806_v17  ;;  %14916 = vst [vmem:[#allocation18_spill] sm:$0xff] %v12817_v49  ;;  %v6779_v56 = vcombine.low %v12788_v11, %v12804_v24  ;;  %v6763_v39 = vcombine.low %v12790_v63, %v12806_v17  ;;  %v6448_v63 = vcombine.high %v12052_v0, %v12157_v2 }
 0x555   : > { %5139 = vrot.lane.b32.xlu0 %v14914_v22, %s9962_s20  ;;  %5167 = vrot.lane.b32.xlu1 %v14915_v23, %s9962_s20  ;;  %v14918_v22 = vcombine.low %v12136_v57, %v12165_v37  ;;  %v6296_v0 = vcombine.high %v12248_v46, %v12262_v30  ;;  %v6344_v2 = vcombine.high %v12269_v8, %v12281_v20 }
 0x556   : > { %v12865_v17 = vrot.slane %v6779_v56, %v10135_v19  ;;  %v6328_v56 = vcombine.high %v12276_v5, %v12284_v36  ;;  %v6360_v46 = vcombine.high %v12340_v48, %v12337_v53  ;;  %v6392_v30 = vcombine.high %v12346_v32, %v12343_v61 }
 0x557   : > { %v12819_v40 = vpop.permute.xlu0 %6735  ;;  %v12821_v62 = vpop.permute.xlu1 %6731  ;;  %v12903_v8 = vrot.slane %v6448_v63, %v10135_v19  ;;  %v12916_v48 = vrot.slane %v6432_v26, %v10135_v19  ;;  %v12919_v32 = vrot.slane %v6480_v7, %v10135_v19  ;;  %v12925_v53 = vrot.slane %v6296_v0, %v10135_v19 }
 0x558   : > { %v12928_v63 = vrot.slane %v6344_v2, %v10135_v19  ;;  %v14934_v26 = vcombine.high %v12143_v3, %v14924_v45  ;;  %v14935_v7 = vcombine.high %v14926_v28, %v14927_v38  ;;  %v14937_v2 = vld [vmem:[#allocation52_spill] sm:$0xff] }
 0x559   : > { %5143 = vrot.lane.b32.xlu0 %v14918_v22, %s9963_s25  ;;  %5171 = vrot.lane.b32.xlu1 %v14919_v29, %s9963_s25  ;;  %v14920_v29 = vcombine.high %v12136_v57, %v12165_v37  ;;  %v12868_v57 = vrot.slane %v6763_v39, %v10135_v19 }
 0x55b   : > { %v12840_v1 = vpop.permute.xlu0 %6743  ;;  %v12842_v13 = vpop.permute.xlu1 %6739  ;;  %v6827_v5 = vcombine.low %v12868_v57, %v12865_v17 }
 0x55c   : > { %v6811_v23 = vcombine.low %v12819_v40, %v12840_v1  ;;  %v6795_v22 = vcombine.low %v12821_v62, %v12842_v13 }
 0x55d   : > { %5147 = vrot.lane.b32.xlu0 %v14920_v29, %s9964_s23  ;;  %5175 = vrot.lane.b32.xlu1 %v14921_v27, %s9964_s23  ;;  %v6312_v27 = vcombine.high %v12241_v16, %v12255_v59  ;;  %v14928_v59 = vcombine.low %v14926_v28, %v14927_v38  ;;  %v6464_v16 = vcombine.high %v12215_v35, %v12230_v42  ;;  %v14932_v42 = vld [vmem:[#allocation42_spill] sm:$0xff]  ;;  %v14933_v35 = vld [vmem:[#allocation43_spill] sm:$0xff] }
 0x55e   : > { %v12857_v4 = vrot.slane %v6811_v23, %v10135_v19  ;;  %v12860_v49 = vrot.slane %v6795_v22, %v10135_v19  ;;  %v14931_v23 = vld [vmem:[#allocation41_spill] sm:$0xff]  ;;  %v14940_v28 = vld [vmem:[#allocation54_spill] sm:$0xff] }
 0x55f   : > { %v12870_v37 = vpop.permute.xlu0 %7189  ;;  %v12872_v29 = vpop.permute.xlu1 %7185  ;;  %v6496_v22 = vcombine.high %v14931_v23, %v12293_v18  ;;  %v12922_v61 = vrot.slane %v6312_v27, %v10135_v19  ;;  %v12931_v18 = vrot.slane %v6328_v56, %v10135_v19  ;;  %v12945_v0 = vrot.slane %v6464_v16, %v10135_v19 }
 0x560   : > { %14922 = vst [vmem:[#allocation14_spill] sm:$0xff] %v12870_v37  ;;  %14923 = vst [vmem:[#allocation128_spill] sm:$0xff] %v12872_v29  ;;  %v6859_v39 = vcombine.low %v12860_v49, %v12857_v4  ;;  %v6424_v56 = vcombine.high %v14937_v2, %v12400_v14  ;;  %v6406_v23 = vrot.slane %v6392_v30, %v10386_v51 }
 0x561   : > { %5151 = vrot.lane.b32.xlu0 %v14925_v58, %s9948_s29  ;;  %5179 = vrot.lane.b32.xlu1 %v14928_v59, %s9948_s29  ;;  %v6528_v58 = vcombine.high %v14933_v35, %v14932_v42  ;;  %v6374_v59 = vrot.slane %v6360_v46, %v10386_v51  ;;  %v14939_v42 = vld [vmem:[#allocation55_spill] sm:$0xff]  ;;  %v12960_v16 = vrot.slane %v6827_v5, %v10386_v51 }
 0x562   : > { %v12942_v27 = vrot.slane %v6859_v39, %v10386_v51  ;;  %v6560_v38 = vcombine.high %v14940_v28, %v14939_v42  ;;  %v6510_v39 = vrot.slane %v6496_v22, %v10386_v51  ;;  %v6375_v46 = vcombine.low %v12925_v53, %v12922_v61 }
 0x563   : > { %v12907_v20 = vpop.permute.xlu0 %7197  ;;  %v12909_v36 = vpop.permute.xlu1 %7193  ;;  %v6542_v35 = vrot.slane %v6528_v58, %v10386_v51  ;;  %14941 = vst [vmem:[#allocation42_spill] sm:$0xff] %v12960_v16  ;;  %v6407_v30 = vcombine.low %v12931_v18, %v12928_v63  ;;  %v6511_v22 = vcombine.low %v12916_v48, %v12903_v8  ;;  %v6543_v2 = vcombine.low %v12945_v0, %v12919_v32 }
 0x564   : > { %14929 = vst [vmem:[#allocation38_spill] sm:$0xff] %v12907_v20  ;;  %14930 = vst [vmem:[#allocation39_spill] sm:$0xff] %v12909_v36  ;;  %v7383_v5 = vcombine.low %v12870_v37, %v12907_v20  ;;  %v7367_v58 = vcombine.low %v12872_v29, %v12909_v36  ;;  %v6383_v28 = vrot.slane %v6375_v46, %v10386_v51 }
 0x565   : > { %5155 = vrot.lane.b32.xlu0 %v14934_v26, %s9956_s17  ;;  %5183 = vrot.lane.b32.xlu1 %v14935_v7, %s9956_s17  ;;  %14936 = vst [vmem:[#allocation40_spill] sm:$0xff] %v12942_v27  ;;  %v6425_v7 = vcombine.low %v6374_v59, %v6406_v23  ;;  %v6561_v14 = vcombine.low %v6510_v39, %v6542_v35 }
 0x566   : > { %v6415_v29 = vrot.slane %v6407_v30, %v10386_v51  ;;  %v6426_v20 = vcombine.high %v6374_v59, %v6406_v23  ;;  %v6562_v30 = vcombine.high %v6510_v39, %v6542_v35  ;;  %v6376_v23 = vcombine.high %v12925_v53, %v12922_v61 }
 0x567   : > { %v12951_v3 = vpop.permute.xlu0 %7205  ;;  %v12953_v45 = vpop.permute.xlu1 %7201  ;;  %v7860_v61 = vcombine.high %v11898_v31, %v11904_v44 }
 0x568   : > { %14938 = vst [vmem:[#allocation41_spill] sm:$0xff] %v12951_v3  ;;  %v6427_v59 = vcombine.low %v6383_v28, %v6415_v29 }
 0x569   : > { %6568 = vrot.lane.b32.xlu0 %v6424_v56, %s14642_s27  ;;  %6596 = vrot.lane.b32.xlu1 %v6560_v38, %s14642_s27 }
 0x56b   : > { %v12976_v56 = vpop.permute.xlu0 %7213  ;;  %v12978_v38 = vpop.permute.xlu1 %7209 }
 0x56c   : > { %14942 = vst [vmem:[#allocation43_spill] sm:$0xff] %v12976_v56  ;;  %v7415_v26 = vcombine.low %v12951_v3, %v12976_v56  ;;  %v7399_v42 = vcombine.low %v12953_v45, %v12978_v38  ;;  %v6519_v3 = vrot.slane %v6511_v22, %v10386_v51  ;;  %v12998_v56 = vrot.slane %v7383_v5, %v10135_v19 }
 0x56d   : > { %6572 = vrot.lane.b32.xlu0 %v6425_v7, %s14676_s13  ;;  %6600 = vrot.lane.b32.xlu1 %v6561_v14, %s14676_s13  ;;  %v13001_v7 = vrot.slane %v7367_v58, %v10135_v19  ;;  %v6408_v22 = vcombine.high %v12931_v18, %v12928_v63  ;;  %v6544_v58 = vcombine.high %v12945_v0, %v12919_v32 }
 0x56e   : > { %v12991_v36 = vrot.slane %v7415_v26, %v10135_v19  ;;  %v12994_v37 = vrot.slane %v7399_v42, %v10135_v19  ;;  %v6551_v26 = vrot.slane %v6543_v2, %v10386_v51  ;;  %v6428_v63 = vcombine.high %v6383_v28, %v6415_v29 }
 0x56f   : > { %14943 = vst [vmem:[#allocation129_spill] sm:$0xff] %v13001_v7  ;;  %v13003_v14 = vpop.permute.xlu0 %7187  ;;  %v13005_v46 = vpop.permute.xlu1 %7183  ;;  %v7431_v5 = vcombine.low %v13001_v7, %v12998_v56  ;;  %v6558_v31 = vrot.slane %v6544_v58, %v10386_v51  ;;  %v13045_v0 = vrot.slane %v7860_v61, %v10135_v19  ;;  %v7892_v28 = vcombine.high %v11934_v41, %v11944_v52  ;;  %v14950_v58 = vld [vmem:[#allocation50_spill] sm:$0xff]  ;;  %v14951_v61 = vld [vmem:[#allocation51_spill] sm:$0xff] }
 0x570   : > { %14944 = vst [vmem:[#allocation130_spill] sm:$0xff] %v13005_v46  ;;  %v7463_v42 = vcombine.low %v12994_v37, %v12991_v36  ;;  %v6563_v35 = vcombine.low %v6519_v3, %v6551_v26  ;;  %v6564_v18 = vcombine.high %v6519_v3, %v6551_v26  ;;  %v7844_v3 = vcombine.high %v11901_v12, %v11931_v33 }
 0x571   : > { %6576 = vrot.lane.b32.xlu0 %v6426_v20, %s9962_s20  ;;  %6604 = vrot.lane.b32.xlu1 %v6562_v30, %s9962_s20  ;;  %v6512_v20 = vcombine.high %v12916_v48, %v12903_v8  ;;  %v6390_v30 = vrot.slane %v6376_v23, %v10386_v51  ;;  %v6422_v48 = vrot.slane %v6408_v22, %v10386_v51 }
 0x572   : > { %v13031_v53 = vrot.slane %v7463_v42, %v10386_v51  ;;  %v13042_v44 = vrot.slane %v7431_v5, %v10386_v51  ;;  %v7876_v26 = vcombine.high %v11941_v10, %v11969_v6  ;;  %v7724_v42 = vcombine.high %v11972_v9, %v11980_v47 }
 0x573   : > { %v13018_v39 = vpop.permute.xlu0 %7195  ;;  %v13020_v2 = vpop.permute.xlu1 %7191  ;;  %v6526_v32 = vrot.slane %v6512_v20, %v10386_v51  ;;  %v6429_v12 = vcombine.low %v6390_v30, %v6422_v48  ;;  %v7708_v52 = vcombine.high %v11977_v60, %v12000_v43  ;;  %v7756_v6 = vcombine.high %v12003_v15, %v12011_v54  ;;  %v14948_v15 = vld [vmem:[#allocation47_spill] sm:$0xff]  ;;  %v14949_v43 = vld [vmem:[#allocation48_spill] sm:$0xff] }
 0x574   : > { %14945 = vst [vmem:[#allocation131_spill] sm:$0xff] %v13020_v2  ;;  %14946 = vst [vmem:[#allocation132_spill] sm:$0xff] %v13031_v53  ;;  %v7231_v23 = vcombine.low %v13005_v46, %v13020_v2  ;;  %v7740_v9 = vcombine.high %v12008_v50, %v12031_v34  ;;  %v6430_v47 = vcombine.high %v6390_v30, %v6422_v48  ;;  %v14956_v48 = vld [vmem:[#allocation44_spill] sm:$0xff] }
 0x575   : > { %6580 = vrot.lane.b32.xlu0 %v6427_v59, %s9963_s25  ;;  %6608 = vrot.lane.b32.xlu1 %v6563_v35, %s9963_s25  ;;  %14947 = vst [vmem:[#allocation133_spill] sm:$0xff] %v13042_v44  ;;  %v7247_v59 = vcombine.low %v13003_v14, %v13018_v39  ;;  %v6565_v33 = vcombine.low %v6526_v32, %v6558_v31 }
 0x576   : > { %v6566_v35 = vcombine.high %v6526_v32, %v6558_v31  ;;  %v7772_v20 = vcombine.high %v14949_v43, %v14948_v15  ;;  %v13093_v34 = vrot.slane %v7231_v23, %v10135_v19  ;;  %v14957_v32 = vld [vmem:[#allocation45_spill] sm:$0xff]  ;;  %v13107_v15 = vrot.slane %v7892_v28, %v10135_v19 }
 0x577   : > { %v13034_v7 = vpop.permute.xlu0 %7203  ;;  %v13036_v8 = vpop.permute.xlu1 %7199  ;;  %v13090_v50 = vrot.slane %v7247_v59, %v10135_v19  ;;  %v7908_v31 = vcombine.high %v14957_v32, %v14956_v48  ;;  %v13110_v59 = vrot.slane %v7724_v42, %v10135_v19  ;;  %v13113_v23 = vrot.slane %v7708_v52, %v10135_v19  ;;  %v14960_v28 = vld [vmem:[#allocation57_spill] sm:$0xff]  ;;  %v14961_v42 = vld [vmem:[#allocation56_spill] sm:$0xff] }
 0x578   : > { %14953 = vst [vmem:[#allocation48_spill] sm:$0xff] %v13093_v34  ;;  %v13116_v43 = vrot.slane %v7756_v6, %v10135_v19  ;;  %v7836_v52 = vcombine.high %v14961_v42, %v14960_v28  ;;  %v7786_v48 = vrot.slane %v7772_v20, %v10386_v51 }
 0x579   : > { %6584 = vrot.lane.b32.xlu0 %v6428_v63, %s9964_s23  ;;  %6612 = vrot.lane.b32.xlu1 %v6564_v18, %s9964_s23  ;;  %v7804_v63 = vcombine.high %v14951_v61, %v14950_v58  ;;  %14952 = vst [vmem:[#allocation47_spill] sm:$0xff] %v13090_v50  ;;  %v13119_v58 = vrot.slane %v7740_v9, %v10135_v19 }
 0x57a   : > { %v7295_v9 = vcombine.low %v13093_v34, %v13090_v50  ;;  %v7787_v20 = vcombine.low %v13113_v23, %v13110_v59 }
 0x57b   : > { %v13063_v22 = vpop.permute.xlu0 %7211  ;;  %v13065_v5 = vpop.permute.xlu1 %7207  ;;  %v7818_v6 = vrot.slane %v7804_v63, %v10386_v51  ;;  %v7819_v63 = vcombine.low %v13119_v58, %v13116_v43 }
 0x57c   : > { %v7279_v41 = vcombine.low %v13034_v7, %v13063_v22  ;;  %v7263_v10 = vcombine.low %v13036_v8, %v13065_v5 }
 0x57d   : > { %6588 = vrot.lane.b32.xlu0 %v6429_v12, %s9948_s29  ;;  %6616 = vrot.lane.b32.xlu1 %v6565_v33, %s9948_s29  ;;  %v14958_v12 = vld [vmem:[#allocation46_spill] sm:$0xff]  ;;  %v14959_v33 = vld [vmem:[#allocation49_spill] sm:$0xff]  ;;  %v7837_v42 = vcombine.low %v7786_v48, %v7818_v6  ;;  %v7838_v34 = vcombine.high %v7786_v48, %v7818_v6  ;;  %v7788_v6 = vcombine.high %v13113_v23, %v13110_v59 }
 0x57e   : > { %v13080_v60 = vrot.slane %v7279_v41, %v10135_v19  ;;  %v13083_v54 = vrot.slane %v7263_v10, %v10135_v19  ;;  %v7940_v41 = vcombine.high %v14959_v33, %v14958_v12  ;;  %v13104_v10 = vrot.slane %v7844_v3, %v10135_v19  ;;  %v14965_v33 = vld [vmem:[#allocation58_spill] sm:$0xff] }
 0x57f   : > { %v13095_v18 = vpop.permute.xlu0 %8133  ;;  %v13097_v30 = vpop.permute.xlu1 %8129  ;;  %v13126_v3 = vrot.slane %v7876_v26, %v10135_v19  ;;  %v7922_v26 = vrot.slane %v7908_v31, %v10386_v51 }
 0x580   : > { %14954 = vst [vmem:[#allocation50_spill] sm:$0xff] %v13095_v18  ;;  %14955 = vst [vmem:[#allocation51_spill] sm:$0xff] %v13097_v30  ;;  %v7327_v61 = vcombine.low %v13083_v54, %v13080_v60  ;;  %v7954_v29 = vrot.slane %v7940_v41, %v10386_v51  ;;  %v7923_v41 = vcombine.low %v13104_v10, %v13045_v0 }
 0x581   : > { %6592 = vrot.lane.b32.xlu0 %v6430_v47, %s9956_s17  ;;  %6620 = vrot.lane.b32.xlu1 %v6566_v35, %s9956_s17  ;;  %v14964_v47 = vld [vmem:[#allocation59_spill] sm:$0xff]  ;;  %v7924_v53 = vcombine.high %v13104_v10, %v13045_v0  ;;  %v7802_v10 = vrot.slane %v7788_v6, %v10386_v51  ;;  %v14984_v6 = vld [vmem:[#allocation65_spill] sm:$0xff] }
 0x582   : > { %v7972_v35 = vcombine.high %v14965_v33, %v14964_v47  ;;  %v13149_v28 = vrot.slane %v7327_v61, %v10386_v51  ;;  %v7973_v31 = vcombine.low %v7922_v26, %v7954_v29  ;;  %v7795_v61 = vrot.slane %v7787_v20, %v10386_v51 }
 0x583   : > { %v13134_v32 = vpop.permute.xlu0 %8141  ;;  %v13136_v12 = vpop.permute.xlu1 %8137  ;;  %v7827_v33 = vrot.slane %v7819_v63, %v10386_v51  ;;  %v7974_v50 = vcombine.high %v7922_v26, %v7954_v29 }
 0x584   : > { %14962 = vst [vmem:[#allocation44_spill] sm:$0xff] %v13134_v32  ;;  %14963 = vst [vmem:[#allocation45_spill] sm:$0xff] %v13136_v12  ;;  %v8327_v46 = vcombine.low %v13095_v18, %v13134_v32 }
 0x585   : > { %7980 = vrot.lane.b32.xlu0 %v7836_v52, %s14642_s27  ;;  %8008 = vrot.lane.b32.xlu1 %v7972_v35, %s14642_s27  ;;  %14966 = vst [vmem:[#allocation46_spill] sm:$0xff] %v13149_v28  ;;  %v7955_v52 = vcombine.low %v13126_v3, %v13107_v15  ;;  %v13160_v35 = vrot.slane %v7295_v9, %v10386_v51 }
 0x586   : > { %v8311_v9 = vcombine.low %v13097_v30, %v13136_v12  ;;  %v7839_v48 = vcombine.low %v7795_v61, %v7827_v33 }
 0x587   : > { %v13151_v44 = vpop.permute.xlu0 %8149  ;;  %v13153_v47 = vpop.permute.xlu1 %8145  ;;  %14969 = vst [vmem:[#allocation135_spill] sm:$0xff] %v13160_v35  ;;  %v7963_v20 = vrot.slane %v7955_v52, %v10386_v51  ;;  %v7820_v52 = vcombine.high %v13119_v58, %v13116_v43 }
 0x588   : > { %14967 = vst [vmem:[#allocation49_spill] sm:$0xff] %v13151_v44  ;;  %14968 = vst [vmem:[#allocation134_spill] sm:$0xff] %v13153_v47 }
 0x589   : > { %7984 = vrot.lane.b32.xlu0 %v7837_v42, %s14676_s13  ;;  %8012 = vrot.lane.b32.xlu1 %v7973_v31, %s14676_s13  ;;  %v7931_v31 = vrot.slane %v7923_v41, %v10386_v51 }
 0x58b   : > { %v13172_v2 = vpop.permute.xlu0 %8157  ;;  %v13174_v42 = vpop.permute.xlu1 %8153  ;;  %v7975_v23 = vcombine.low %v7931_v31, %v7963_v20  ;;  %v7976_v0 = vcombine.high %v7931_v31, %v7963_v20  ;;  %v14982_v31 = vld [vmem:[#allocation64_spill] sm:$0xff] }
 0x58c   : > { %14970 = vst [vmem:[#allocation136_spill] sm:$0xff] %v13172_v2  ;;  %14971 = vst [vmem:[#allocation137_spill] sm:$0xff] %v13174_v42  ;;  %v8359_v63 = vcombine.low %v13151_v44, %v13172_v2  ;;  %v8343_v29 = vcombine.low %v13153_v47, %v13174_v42  ;;  %v14993_v47 = vld [vmem:[#allocation61_spill] sm:$0xff]  ;;  %v14995_v42 = vld [vmem:[#allocation71_spill] sm:$0xff] }
 0x58d   : > { %7988 = vrot.lane.b32.xlu0 %v7838_v34, %s9962_s20  ;;  %8016 = vrot.lane.b32.xlu1 %v7974_v50, %s9962_s20  ;;  %v13197_v34 = vrot.slane %v8327_v46, %v10135_v19  ;;  %v13200_v50 = vrot.slane %v8311_v9, %v10135_v19  ;;  %v7840_v46 = vcombine.high %v7795_v61, %v7827_v33  ;;  %v14981_v61 = vld [vmem:[#allocation66_spill] sm:$0xff] }
 0x58e   : > { %v13187_v26 = vrot.slane %v8359_v63, %v10135_v19  ;;  %v13190_v41 = vrot.slane %v8343_v29, %v10135_v19  ;;  %v7956_v63 = vcombine.high %v13126_v3, %v13107_v15  ;;  %v7834_v15 = vrot.slane %v7820_v52, %v10386_v51 }
 0x58f   : > { %14974 = vst [vmem:[#allocation140_spill] sm:$0xff] %v13197_v34  ;;  %14975 = vst [vmem:[#allocation141_spill] sm:$0xff] %v13200_v50  ;;  %v13202_v30 = vpop.permute.xlu0 %8131  ;;  %v13204_v59 = vpop.permute.xlu1 %8127  ;;  %v8375_v58 = vcombine.low %v13200_v50, %v13197_v34  ;;  %v7938_v3 = vrot.slane %v7924_v53, %v10386_v51  ;;  %v5455_v20 = vcombine.high %v14982_v31, %v14981_v61  ;;  %v14992_v31 = vld [vmem:[#allocation63_spill] sm:$0xff] }
 0x590   : > { %14972 = vst [vmem:[#allocation138_spill] sm:$0xff] %v13187_v26  ;;  %14973 = vst [vmem:[#allocation139_spill] sm:$0xff] %v13190_v41  ;;  %v8407_v43 = vcombine.low %v13190_v41, %v13187_v26  ;;  %v7970_v12 = vrot.slane %v7956_v63, %v10386_v51  ;;  %v7841_v53 = vcombine.low %v7802_v10, %v7834_v15  ;;  %v14990_v41 = vld [vmem:[#allocation62_spill] sm:$0xff]  ;;  %v14991_v26 = vld [vmem:[#allocation60_spill] sm:$0xff] }
 0x591   : > { %14976 = vst [vmem:[#allocation142_spill] sm:$0xff] %v13202_v30  ;;  %14977 = vst [vmem:[#allocation143_spill] sm:$0xff] %v13204_v59  ;;  %7992 = vrot.lane.b32.xlu0 %v7839_v48, %s9963_s25  ;;  %8020 = vrot.lane.b32.xlu1 %v7975_v23, %s9963_s25  ;;  %v14983_v48 = vld [vmem:[#allocation67_spill] sm:$0xff]  ;;  %v13236_v63 = vrot.slane %v8375_v58, %v10386_v51  ;;  %v5423_v61 = vcombine.high %v14991_v26, %v14990_v41  ;;  %v14994_v58 = vld [vmem:[#allocation70_spill] sm:$0xff] }
 0x592   : > { %v13225_v33 = vrot.slane %v8407_v43, %v10386_v51  ;;  %v5439_v23 = vcombine.high %v14984_v6, %v14983_v48  ;;  %v7977_v34 = vcombine.low %v7938_v3, %v7970_v12  ;;  %v7842_v43 = vcombine.high %v7802_v10, %v7834_v15  ;;  %v14997_v10 = vld [vmem:[#allocation77_spill] sm:$0xff]  ;;  %v14999_v41 = vld [vmem:[#allocation78_spill] sm:$0xff] }
 0x593   : > { %v13215_v9 = vpop.permute.xlu0 %8139  ;;  %v13217_v29 = vpop.permute.xlu1 %8135  ;;  %14987 = vst [vmem:[#allocation67_spill] sm:$0xff] %v13236_v63  ;;  %v7978_v32 = vcombine.high %v7938_v3, %v7970_v12  ;;  %v5407_v48 = vcombine.high %v14993_v47, %v14992_v31  ;;  %v5471_v44 = vcombine.high %v14995_v42, %v14994_v58  ;;  %v14996_v12 = vld [vmem:[#allocation80_spill] sm:$0xff]  ;;  %v14998_v26 = vld [vmem:[#allocation81_spill] sm:$0xff] }
 0x594   : > { %14978 = vst [vmem:[#allocation144_spill] sm:$0xff] %v13215_v9  ;;  %14979 = vst [vmem:[#allocation145_spill] sm:$0xff] %v13217_v29  ;;  %v5319_v15 = vcombine.high %v14997_v10, %v14996_v12  ;;  %v5303_v3 = vcombine.high %v14999_v41, %v14998_v26  ;;  %v13258_v47 = vrot.slane %v5439_v23, %v10135_v19  ;;  %v15004_v12 = vld [vmem:[#allocation74_spill] sm:$0xff]  ;;  %v15005_v10 = vld [vmem:[#allocation72_spill] sm:$0xff] }
 0x595   : > { %7996 = vrot.lane.b32.xlu0 %v7840_v46, %s9964_s23  ;;  %8024 = vrot.lane.b32.xlu1 %v7976_v0, %s9964_s23  ;;  %14980 = vst [vmem:[#allocation146_spill] sm:$0xff] %v13225_v33  ;;  %v14988_v46 = vld [vmem:[#allocation68_spill] sm:$0xff]  ;;  %v14989_v0 = vld [vmem:[#allocation69_spill] sm:$0xff]  ;;  %v8191_v31 = vcombine.low %v13202_v30, %v13215_v9  ;;  %v8175_v42 = vcombine.low %v13204_v59, %v13217_v29 }
 0x596   : > { %v5503_v18 = vcombine.high %v14989_v0, %v14988_v46  ;;  %v13251_v46 = vrot.slane %v5455_v20, %v10135_v19  ;;  %v5287_v6 = vcombine.high %v15005_v10, %v15004_v12  ;;  %v15008_v33 = vld [vmem:[#allocation84_spill] sm:$0xff]  ;;  %v15009_v59 = vld [vmem:[#allocation85_spill] sm:$0xff]  ;;  %v15011_v12 = vld [vmem:[#allocation79_spill] sm:$0xff]  ;;  %v13286_v9 = vrot.slane %v5319_v15, %v10135_v19 }
 0x597   : > { %v13231_v50 = vpop.permute.xlu0 %8147  ;;  %v13233_v52 = vpop.permute.xlu1 %8143  ;;  %v5335_v29 = vcombine.high %v15009_v59, %v15008_v33  ;;  %v15010_v30 = vld [vmem:[#allocation76_spill] sm:$0xff]  ;;  %v13298_v59 = vrot.slane %v8191_v31, %v10135_v19  ;;  %v15018_v15 = vld [vmem:[#allocation90_spill] sm:$0xff]  ;;  %v5485_v31 = vrot.slane %v5471_v44, %v10386_v51 }
 0x598   : > { %14985 = vst [vmem:[#allocation66_spill] sm:$0xff] %v13231_v50  ;;  %14986 = vst [vmem:[#allocation64_spill] sm:$0xff] %v13233_v52  ;;  %v5517_v41 = vrot.slane %v5503_v18, %v10386_v51  ;;  %v5535_v10 = vcombine.high %v15011_v12, %v15010_v30  ;;  %v5301_v12 = vrot.slane %v5287_v6, %v10135_v19 }
 0x599   : > { %8000 = vrot.lane.b32.xlu0 %v7841_v53, %s9948_s29  ;;  %8028 = vrot.lane.b32.xlu1 %v7977_v34, %s9948_s29  ;;  %v15000_v53 = vld [vmem:[#allocation82_spill] sm:$0xff]  ;;  %v15001_v34 = vld [vmem:[#allocation83_spill] sm:$0xff]  ;;  %15014 = vst [vmem:[#allocation60_spill] sm:$0xff] %v13298_v59 }
 0x59a   : > { %v5367_v0 = vcombine.high %v15001_v34, %v15000_v53  ;;  %v15006_v53 = vld [vmem:[#allocation75_spill] sm:$0xff]  ;;  %v15007_v34 = vld [vmem:[#allocation73_spill] sm:$0xff] }
 0x59b   : > { %v13266_v20 = vpop.permute.xlu0 %8155  ;;  %v13268_v58 = vpop.permute.xlu1 %8151  ;;  %v5271_v63 = vcombine.high %v15007_v34, %v15006_v53  ;;  %v15019_v34 = vld [vmem:[#allocation93_spill] sm:$0xff] }
 0x59c   : > { %15002 = vst [vmem:[#allocation65_spill] sm:$0xff] %v13266_v20  ;;  %15003 = vst [vmem:[#allocation68_spill] sm:$0xff] %v13268_v58  ;;  %v8223_v23 = vcombine.low %v13231_v50, %v13266_v20  ;;  %v8207_v26 = vcombine.low %v13233_v52, %v13268_v58  ;;  %v13289_v52 = vrot.slane %v5303_v3, %v10135_v19 }
 0x59d   : > { %8004 = vrot.lane.b32.xlu0 %v7842_v43, %s9956_s17  ;;  %8032 = vrot.lane.b32.xlu1 %v7978_v32, %s9956_s17  ;;  %v13301_v32 = vrot.slane %v8175_v42, %v10135_v19  ;;  %v5399_v3 = vcombine.high %v15019_v34, %v15018_v15  ;;  %v5381_v30 = vrot.slane %v5367_v0, %v10386_v51 }
 0x59e   : > { %v13292_v18 = vrot.slane %v8223_v23, %v10135_v19  ;;  %v13295_v53 = vrot.slane %v8207_v26, %v10135_v19  ;;  %v5437_v23 = vrot.slane %v5423_v61, %v10135_v19  ;;  %v5421_v26 = vrot.slane %v5407_v48, %v10135_v19 }
 0x59f   : > { %15015 = vst [vmem:[#allocation63_spill] sm:$0xff] %v13301_v32  ;;  %v13303_v33 = vpop.permute.xlu0 %8601  ;;  %v13305_v43 = vpop.permute.xlu1 %8597  ;;  %v5285_v42 = vrot.slane %v5271_v63, %v10135_v19  ;;  %v5349_v15 = vrot.slane %v5335_v29, %v10386_v51  ;;  %v5518_v61 = vcombine.low %v13258_v47, %v13251_v46  ;;  %v5382_v48 = vcombine.low %v13289_v52, %v13286_v9 }
 0x5a0   : > { %15012 = vst [vmem:[#allocation69_spill] sm:$0xff] %v13292_v18  ;;  %15013 = vst [vmem:[#allocation62_spill] sm:$0xff] %v13295_v53  ;;  %v8271_v58 = vcombine.low %v13295_v53, %v13292_v18  ;;  %v8239_v44 = vcombine.low %v13301_v32, %v13298_v59  ;;  %v5536_v34 = vcombine.low %v5485_v31, %v5517_v41 }
 0x5a1   : > { %15016 = vst [vmem:[#allocation61_spill] sm:$0xff] %v13303_v33  ;;  %15017 = vst [vmem:[#allocation70_spill] sm:$0xff] %v13305_v43  ;;  %5543 = vrot.lane.b32.xlu0 %v5399_v3, %s14642_s27  ;;  %5571 = vrot.lane.b32.xlu1 %v5535_v10, %s14642_s27  ;;  %v5400_v0 = vcombine.low %v5349_v15, %v5381_v30  ;;  %v5486_v3 = vcombine.low %v5421_v26, %v5437_v23 }
 0x5a2   : > { %v5350_v53 = vcombine.low %v5285_v42, %v5301_v12  ;;  %v13333_v29 = vrot.slane %v8271_v58, %v10386_v51  ;;  %v5526_v10 = vrot.slane %v5518_v61, %v10386_v51  ;;  %v5401_v59 = vcombine.high %v5349_v15, %v5381_v30 }
 0x5a3   : > { %v13326_v6 = vpop.permute.xlu0 %8609  ;;  %v13328_v63 = vpop.permute.xlu1 %8605  ;;  %v5537_v50 = vcombine.high %v5485_v31, %v5517_v41  ;;  %v5390_v20 = vrot.slane %v5382_v48, %v10386_v51  ;;  %v13342_v2 = vrot.slane %v8239_v44, %v10386_v51  ;;  %v5519_v30 = vcombine.high %v13258_v47, %v13251_v46 }
 0x5a4   : > { %15020 = vst [vmem:[#allocation71_spill] sm:$0xff] %v13326_v6  ;;  %15021 = vst [vmem:[#allocation80_spill] sm:$0xff] %v13328_v63  ;;  %v5358_v58 = vrot.slane %v5350_v53, %v10386_v51  ;;  %v5383_v15 = vcombine.high %v13289_v52, %v13286_v9  ;;  %v8795_v31 = vcombine.low %v13303_v33, %v13326_v6  ;;  %v15049_v33 = vld [vmem:[#allocation109_spill] sm:$0xff] }
 0x5a5   : > { %5547 = vrot.lane.b32.xlu0 %v5400_v0, %s14676_s13  ;;  %5575 = vrot.lane.b32.xlu1 %v5536_v34, %s14676_s13  ;;  %15022 = vst [vmem:[#allocation77_spill] sm:$0xff] %v13333_v29  ;;  %15025 = vst [vmem:[#allocation82_spill] sm:$0xff] %v13342_v2  ;;  %v5494_v0 = vrot.slane %v5486_v3, %v10386_v51  ;;  %v5487_v48 = vcombine.high %v5421_v26, %v5437_v23  ;;  %v15052_v2 = vld [vmem:[#allocation111_spill] sm:$0xff] }
 0x5a6   : > { %v5402_v53 = vcombine.low %v5358_v58, %v5390_v20  ;;  %v5351_v44 = vcombine.high %v5285_v42, %v5301_v12  ;;  %v5533_v23 = vrot.slane %v5519_v30, %v10386_v51  ;;  %v13376_v12 = vrot.slane %v8795_v31, %v10135_v19  ;;  %v15036_v31 = vld [vmem:[#allocation87_spill] sm:$0xff] }
 0x5a7   : > { %v13336_v18 = vpop.permute.xlu0 %8617  ;;  %v13338_v32 = vpop.permute.xlu1 %8613  ;;  %v5538_v41 = vcombine.low %v5494_v0, %v5526_v10  ;;  %v5539_v3 = vcombine.high %v5494_v0, %v5526_v10  ;;  %v15033_v10 = vld [vmem:[#allocation88_spill] sm:$0xff]  ;;  %v15034_v0 = vld [vmem:[#allocation86_spill] sm:$0xff] }
 0x5a8   : > { %15023 = vst [vmem:[#allocation81_spill] sm:$0xff] %v13336_v18  ;;  %15024 = vst [vmem:[#allocation78_spill] sm:$0xff] %v13338_v32  ;;  %v5365_v34 = vrot.slane %v5351_v44, %v10386_v51  ;;  %v5964_v30 = vcombine.high %v15034_v0, %v15033_v10  ;;  %v15038_v10 = vld [vmem:[#allocation98_spill] sm:$0xff]  ;;  %v15039_v0 = vld [vmem:[#allocation99_spill] sm:$0xff] }
 0x5a9   : > { %5551 = vrot.lane.b32.xlu0 %v5401_v59, %s9962_s20  ;;  %5579 = vrot.lane.b32.xlu1 %v5537_v50, %s9962_s20  ;;  %v8779_v59 = vcombine.low %v13305_v43, %v13328_v63  ;;  %15030 = vst [vmem:[#allocation73_spill] sm:$0xff] %v13376_v12  ;;  %v15035_v43 = vld [vmem:[#allocation89_spill] sm:$0xff] }
 0x5aa   : > { %v5948_v63 = vcombine.high %v15036_v31, %v15035_v43  ;;  %v13405_v31 = vrot.slane %v5964_v30, %v10135_v19 }
 0x5ab   : > { %v13358_v61 = vpop.permute.xlu0 %8625  ;;  %v13360_v50 = vpop.permute.xlu1 %8621  ;;  %v13379_v26 = vrot.slane %v8779_v59, %v10135_v19 }
 0x5ac   : > { %15026 = vst [vmem:[#allocation83_spill] sm:$0xff] %v13358_v61  ;;  %15027 = vst [vmem:[#allocation74_spill] sm:$0xff] %v13360_v50  ;;  %v8827_v46 = vcombine.low %v13336_v18, %v13358_v61  ;;  %v8811_v47 = vcombine.low %v13338_v32, %v13360_v50  ;;  %v6012_v32 = vcombine.high %v15039_v0, %v15038_v10  ;;  %v15044_v50 = vld [vmem:[#allocation92_spill] sm:$0xff] }
 0x5ad   : > { %5555 = vrot.lane.b32.xlu0 %v5402_v53, %s9963_s25  ;;  %5583 = vrot.lane.b32.xlu1 %v5538_v41, %s9963_s25  ;;  %15031 = vst [vmem:[#allocation84_spill] sm:$0xff] %v13379_v26  ;;  %v5403_v41 = vcombine.high %v5358_v58, %v5390_v20  ;;  %v8843_v20 = vcombine.low %v13379_v26, %v13376_v12  ;;  %v15041_v26 = vld [vmem:[#allocation94_spill] sm:$0xff]  ;;  %v15042_v12 = vld [vmem:[#allocation91_spill] sm:$0xff]  ;;  %v15047_v18 = vld [vmem:[#allocation108_spill] sm:$0xff] }
 0x5ae   : > { %v13369_v9 = vrot.slane %v8827_v46, %v10135_v19  ;;  %v13372_v52 = vrot.slane %v8811_v47, %v10135_v19  ;;  %v5397_v46 = vrot.slane %v5383_v15, %v10386_v51  ;;  %v5501_v47 = vrot.slane %v5487_v48, %v10386_v51 }
 0x5af   : > { %v13381_v42 = vpop.permute.xlu0 %8599  ;;  %v13383_v53 = vpop.permute.xlu1 %8595 }
 0x5b0   : > { %15028 = vst [vmem:[#allocation72_spill] sm:$0xff] %v13369_v9  ;;  %15029 = vst [vmem:[#allocation75_spill] sm:$0xff] %v13372_v52  ;;  %v8875_v59 = vcombine.low %v13372_v52, %v13369_v9  ;;  %v5404_v48 = vcombine.low %v5365_v34, %v5397_v46  ;;  %v5540_v44 = vcombine.low %v5501_v47, %v5533_v23  ;;  %v15043_v9 = vld [vmem:[#allocation95_spill] sm:$0xff] }
 0x5b1   : > { %15032 = vst [vmem:[#allocation85_spill] sm:$0xff] %v13383_v53  ;;  %5559 = vrot.lane.b32.xlu0 %v5403_v41, %s9964_s23  ;;  %5587 = vrot.lane.b32.xlu1 %v5539_v3, %s9964_s23  ;;  %v5541_v43 = vcombine.high %v5501_v47, %v5533_v23  ;;  %v13408_v41 = vrot.slane %v5948_v63, %v10135_v19  ;;  %v15045_v23 = vld [vmem:[#allocation96_spill] sm:$0xff]  ;;  %v15046_v47 = vld [vmem:[#allocation97_spill] sm:$0xff] }
 0x5b2   : > { %v13413_v3 = vrot.slane %v8875_v59, %v10386_v51  ;;  %v5996_v52 = vcombine.high %v15042_v12, %v15041_v26  ;;  %v5980_v10 = vcombine.high %v15044_v50, %v15043_v9  ;;  %v6044_v30 = vcombine.high %v15046_v47, %v15045_v23  ;;  %v15048_v63 = vld [vmem:[#allocation105_spill] sm:$0xff]  ;;  %v15054_v50 = vld [vmem:[#allocation102_spill] sm:$0xff]  ;;  %v15055_v9 = vld [vmem:[#allocation100_spill] sm:$0xff] }
 0x5b3   : > { %v13398_v58 = vpop.permute.xlu0 %8607  ;;  %v13400_v15 = vpop.permute.xlu1 %8603  ;;  %v5405_v0 = vcombine.high %v5365_v34, %v5397_v46  ;;  %v5860_v61 = vcombine.high %v15048_v63, %v15047_v18  ;;  %v13432_v12 = vrot.slane %v8843_v20, %v10386_v51  ;;  %v5828_v26 = vcombine.high %v15055_v9, %v15054_v50  ;;  %v15056_v46 = vld [vmem:[#allocation103_spill] sm:$0xff]  ;;  %v15058_v47 = vld [vmem:[#allocation112_spill] sm:$0xff]  ;;  %v15059_v63 = vld [vmem:[#allocation113_spill] sm:$0xff] }
 0x5b4   : > { %15037 = vst [vmem:[#allocation88_spill] sm:$0xff] %v13400_v15  ;;  %15040 = vst [vmem:[#allocation86_spill] sm:$0xff] %v13413_v3  ;;  %v8659_v34 = vcombine.low %v13381_v42, %v13398_v58  ;;  %v8643_v18 = vcombine.low %v13383_v53, %v13400_v15  ;;  %v5994_v50 = vrot.slane %v5980_v10, %v10135_v19  ;;  %v15060_v9 = vld [vmem:[#allocation104_spill] sm:$0xff]  ;;  %v15061_v53 = vld [vmem:[#allocation107_spill] sm:$0xff] }
 0x5b5   : > { %5563 = vrot.lane.b32.xlu0 %v5404_v48, %s9948_s29  ;;  %5591 = vrot.lane.b32.xlu1 %v5540_v44, %s9948_s29  ;;  %v15050_v48 = vld [vmem:[#allocation106_spill] sm:$0xff]  ;;  %15053 = vst [vmem:[#allocation89_spill] sm:$0xff] %v13432_v12  ;;  %v6058_v15 = vrot.slane %v6044_v30, %v10386_v51  ;;  %v5842_v30 = vrot.slane %v5828_v26, %v10135_v19 }
 0x5b6   : > { %v5844_v6 = vcombine.high %v15050_v48, %v15049_v33  ;;  %v15051_v44 = vld [vmem:[#allocation110_spill] sm:$0xff]  ;;  %v6026_v33 = vrot.slane %v6012_v32, %v10386_v51  ;;  %v5876_v48 = vcombine.high %v15059_v63, %v15058_v47  ;;  %v6076_v32 = vcombine.high %v15061_v53, %v15060_v9 }
 0x5b7   : > { %v5908_v59 = vcombine.high %v15052_v2, %v15051_v44  ;;  %v13427_v29 = vpop.permute.xlu0 %8615  ;;  %v13429_v35 = vpop.permute.xlu1 %8611  ;;  %v15057_v2 = vld [vmem:[#allocation101_spill] sm:$0xff]  ;;  %v6010_v44 = vrot.slane %v5996_v52, %v10135_v19  ;;  %v13464_v10 = vrot.slane %v8659_v34, %v10135_v19  ;;  %v13467_v63 = vrot.slane %v8643_v18, %v10135_v19 }
 0x5b8   : > { %v5812_v23 = vcombine.high %v15057_v2, %v15056_v46  ;;  %v5874_v46 = vrot.slane %v5860_v61, %v10135_v19  ;;  %v5858_v2 = vrot.slane %v5844_v6, %v10135_v19 }
 0x5b9   : > { %5567 = vrot.lane.b32.xlu0 %v5405_v0, %s9956_s17  ;;  %5595 = vrot.lane.b32.xlu1 %v5541_v43, %s9956_s17  ;;  %v5940_v43 = vcombine.high %v12748_v25, %v12741_v55  ;;  %v5922_v52 = vrot.slane %v5908_v59, %v10386_v51  ;;  %15062 = vst [vmem:[#allocation87_spill] sm:$0xff] %v13464_v10  ;;  %15063 = vst [vmem:[#allocation98_spill] sm:$0xff] %v13467_v63 }
 0x5ba   : > { %v5826_v20 = vrot.slane %v5812_v23, %v10135_v19  ;;  %v5890_v59 = vrot.slane %v5876_v48, %v10386_v51  ;;  %v6059_v9 = vcombine.low %v5994_v50, %v6010_v44  ;;  %v5923_v53 = vcombine.low %v5858_v2, %v5874_v46 }
 0x5bb   : > { %v13456_v47 = vpop.permute.xlu0 %8623  ;;  %v13458_v0 = vpop.permute.xlu1 %8619  ;;  %v6077_v23 = vcombine.low %v6026_v33, %v6058_v15 }
 0x5bc   : > { %v8691_v61 = vcombine.low %v13427_v29, %v13456_v47  ;;  %v8675_v6 = vcombine.low %v13429_v35, %v13458_v0  ;;  %v5941_v26 = vcombine.low %v5890_v59, %v5922_v52  ;;  %v5942_v12 = vcombine.high %v5890_v59, %v5922_v52 }
 0x5bd   : > { %6084 = vrot.lane.b32.xlu0 %v5940_v43, %s14642_s27  ;;  %6112 = vrot.lane.b32.xlu1 %v6076_v32, %s14642_s27  ;;  %v8707_v43 = vcombine.low %v13467_v63, %v13464_v10  ;;  %v6027_v32 = vcombine.low %v13408_v41, %v13405_v31  ;;  %v6078_v63 = vcombine.high %v6026_v33, %v6058_v15 }
 0x5be   : > { %v13479_v34 = vrot.slane %v8691_v61, %v10135_v19  ;;  %v13482_v18 = vrot.slane %v8675_v6, %v10135_v19  ;;  %v5891_v61 = vcombine.low %v5826_v20, %v5842_v30  ;;  %v5931_v10 = vrot.slane %v5923_v53, %v10386_v51 }
 0x5bf   : > { %v13484_v55 = vpop.permute.xlu0 %5131  ;;  %v13486_v25 = vpop.permute.xlu1 %5159  ;;  %v6067_v3 = vrot.slane %v6059_v9, %v10386_v51  ;;  %v6060_v52 = vcombine.high %v5994_v50, %v6010_v44  ;;  %v5924_v15 = vcombine.high %v5858_v2, %v5874_v46 }
 0x5c0   : > { %15064 = vst [vmem:[#allocation99_spill] sm:$0xff] %v13482_v18  ;;  %15065 = vst [vmem:[#allocation94_spill] sm:$0xff] %v13484_v55  ;;  %v8739_v48 = vcombine.low %v13482_v18, %v13479_v34  ;;  %v13506_v18 = vrot.slane %v8707_v43, %v10386_v51  ;;  %v5892_v43 = vcombine.high %v5826_v20, %v5842_v30 }
 0x5c1   : > { %15066 = vst [vmem:[#allocation91_spill] sm:$0xff] %v13486_v25  ;;  %6088 = vrot.lane.b32.xlu0 %v5941_v26, %s14676_s13  ;;  %6116 = vrot.lane.b32.xlu1 %v6077_v23, %s14676_s13  ;;  %v5899_v26 = vrot.slane %v5891_v61, %v10386_v51  ;;  %v6035_v23 = vrot.slane %v6027_v32, %v10386_v51 }
 0x5c2   : > { %v13497_v6 = vrot.slane %v8739_v48, %v10386_v51  ;;  %v5938_v46 = vrot.slane %v5924_v15, %v10386_v51  ;;  %v6074_v2 = vrot.slane %v6060_v52, %v10386_v51  ;;  %v15071_v15 = vld [vmem:[#allocation123_spill] sm:$0xff] }
 0x5c3   : > { %v13499_v25 = vpop.permute.xlu0 %5135  ;;  %v13501_v55 = vpop.permute.xlu1 %5163  ;;  %v5943_v9 = vcombine.low %v5899_v26, %v5931_v10  ;;  %v6079_v59 = vcombine.low %v6035_v23, %v6067_v3  ;;  %v5944_v44 = vcombine.high %v5899_v26, %v5931_v10  ;;  %v6080_v50 = vcombine.high %v6035_v23, %v6067_v3  ;;  %v15068_v3 = vld [vmem:[#allocation119_spill] sm:$0xff]  ;;  %v15069_v26 = vld [vmem:[#allocation122_spill] sm:$0xff]  ;;  %v15070_v23 = vld [vmem:[#allocation120_spill] sm:$0xff] }
 0x5c4   : > { %v6948_v10 = vcombine.high %v15068_v3, %v12760_v21  ;;  %v6932_v52 = vcombine.high %v15070_v23, %v15069_v26  ;;  %v15073_v3 = vld [vmem:[#allocation116_spill] sm:$0xff]  ;;  %v15074_v26 = vld [vmem:[#allocation114_spill] sm:$0xff] }
 0x5c5   : > { %6092 = vrot.lane.b32.xlu0 %v5942_v12, %s9962_s20  ;;  %6120 = vrot.lane.b32.xlu1 %v6078_v63, %s9962_s20  ;;  %v6028_v12 = vcombine.high %v13408_v41, %v13405_v31  ;;  %v5906_v31 = vrot.slane %v5892_v43, %v10386_v51  ;;  %v6916_v23 = vcombine.high %v15074_v26, %v15073_v3  ;;  %v15082_v3 = vld [vmem:[#allocation36_spill] sm:$0xff] }
 0x5c7   : > { %v13514_v33 = vpop.permute.xlu0 %5139  ;;  %v13516_v53 = vpop.permute.xlu1 %5167  ;;  %v6042_v41 = vrot.slane %v6028_v12, %v10386_v51  ;;  %v5945_v61 = vcombine.low %v5906_v31, %v5938_v46  ;;  %v5946_v21 = vcombine.high %v5906_v31, %v5938_v46  ;;  %v6962_v46 = vrot.slane %v6948_v10, %v10135_v19 }
 0x5c8   : > { %v6946_v31 = vrot.slane %v6932_v52, %v10135_v19  ;;  %v6930_v52 = vrot.slane %v6916_v23, %v10135_v19 }
 0x5c9   : > { %6096 = vrot.lane.b32.xlu0 %v5943_v9, %s9963_s25  ;;  %6124 = vrot.lane.b32.xlu1 %v6079_v59, %s9963_s25  ;;  %v6081_v9 = vcombine.low %v6042_v41, %v6074_v2  ;;  %v15072_v59 = vld [vmem:[#allocation124_spill] sm:$0xff]  ;;  %v6082_v12 = vcombine.high %v6042_v41, %v6074_v2  ;;  %v15077_v41 = vld [vmem:[#allocation125_spill] sm:$0xff] }
 0x5ca   : > { %v6996_v43 = vcombine.high %v15072_v59, %v15071_v15  ;;  %v15076_v15 = vld [vmem:[#allocation115_spill] sm:$0xff]  ;;  %v15078_v59 = vld [vmem:[#allocation126_spill] sm:$0xff] }
 0x5cb   : > { %v13522_v63 = vpop.permute.xlu0 %5143  ;;  %v13524_v32 = vpop.permute.xlu1 %5171 }
 0x5cd   : > { %6100 = vrot.lane.b32.xlu0 %v5944_v44, %s9964_s23  ;;  %6128 = vrot.lane.b32.xlu1 %v6080_v50, %s9964_s23  ;;  %v6812_v44 = vcombine.high %v12819_v40, %v12840_v1  ;;  %v6796_v50 = vcombine.high %v12821_v62, %v12842_v13  ;;  %v6964_v40 = vcombine.high %v15078_v59, %v15077_v41  ;;  %v15079_v1 = vld [vmem:[#allocation32_spill] sm:$0xff]  ;;  %v15080_v13 = vld [vmem:[#allocation127_spill] sm:$0xff] }
 0x5ce   : > { %v6780_v62 = vcombine.high %v12788_v11, %v12804_v24  ;;  %v7011_v59 = vcombine.low %v6946_v31, %v6962_v46 }
 0x5cf   : > { %v13532_v20 = vpop.permute.xlu0 %5147  ;;  %v13534_v30 = vpop.permute.xlu1 %5175  ;;  %v6826_v24 = vrot.slane %v6812_v44, %v10135_v19  ;;  %v6810_v11 = vrot.slane %v6796_v50, %v10135_v19 }
 0x5d0   : > { %15067 = vst [vmem:[#allocation95_spill] sm:$0xff] %v13532_v20  ;;  %v15075_v20 = vld [vmem:[#allocation117_spill] sm:$0xff] }
 0x5d1   : > { %6104 = vrot.lane.b32.xlu0 %v5945_v61, %s9948_s29  ;;  %6132 = vrot.lane.b32.xlu1 %v6081_v9, %s9948_s29  ;;  %v6860_v61 = vcombine.high %v12860_v49, %v12857_v4  ;;  %v6900_v2 = vcombine.high %v15076_v15, %v15075_v20  ;;  %v6764_v4 = vcombine.high %v15080_v13, %v15079_v1  ;;  %v15081_v20 = vld [vmem:[#allocation18_spill] sm:$0xff] }
 0x5d2   : > { %v6828_v49 = vcombine.high %v12868_v57, %v12865_v17  ;;  %v7028_v26 = vcombine.high %v15082_v3, %v15081_v20  ;;  %v7010_v15 = vrot.slane %v6996_v43, %v10386_v51  ;;  %v6892_v57 = vcombine.high %v12960_v16, %v12942_v27 }
 0x5d3   : > { %v13550_v9 = vpop.permute.xlu0 %5151  ;;  %v13552_v48 = vpop.permute.xlu1 %5179  ;;  %v6874_v10 = vrot.slane %v6860_v61, %v10386_v51  ;;  %v6794_v43 = vrot.slane %v6780_v62, %v10135_v19  ;;  %v6778_v44 = vrot.slane %v6764_v4, %v10135_v19  ;;  %v6875_v1 = vcombine.low %v6810_v11, %v6826_v24 }
 0x5d4   : > { %v6842_v50 = vrot.slane %v6828_v49, %v10386_v51  ;;  %v7019_v3 = vrot.slane %v7011_v59, %v10386_v51  ;;  %v7012_v16 = vcombine.high %v6946_v31, %v6962_v46 }
 0x5d5   : > { %6108 = vrot.lane.b32.xlu0 %v5946_v21, %s9956_s17  ;;  %6136 = vrot.lane.b32.xlu1 %v6082_v12, %s9956_s17  ;;  %v6914_v12 = vrot.slane %v6900_v2, %v10135_v19  ;;  %v6978_v21 = vrot.slane %v6964_v40, %v10386_v51  ;;  %v6843_v40 = vcombine.low %v6778_v44, %v6794_v43 }
 0x5d6   : > { %v6893_v23 = vcombine.low %v6842_v50, %v6874_v10  ;;  %v7026_v31 = vrot.slane %v7012_v16, %v10386_v51  ;;  %v15086_v16 = vld [vmem:[#allocation41_spill] sm:$0xff] }
 0x5d7   : > { %v13575_v41 = vpop.permute.xlu0 %5155  ;;  %v13577_v17 = vpop.permute.xlu1 %5183  ;;  %v7029_v2 = vcombine.low %v6978_v21, %v7010_v15  ;;  %v6979_v20 = vcombine.low %v6914_v12, %v6930_v52  ;;  %v7030_v49 = vcombine.high %v6978_v21, %v7010_v15  ;;  %v6851_v27 = vrot.slane %v6843_v40, %v10386_v51 }
 0x5d8   : > { %v6980_v21 = vcombine.high %v6914_v12, %v6930_v52 }
 0x5d9   : > { %7036 = vrot.lane.b32.xlu0 %v6892_v57, %s14642_s27  ;;  %7064 = vrot.lane.b32.xlu1 %v7028_v26, %s14642_s27  ;;  %v6894_v26 = vcombine.high %v6842_v50, %v6874_v10  ;;  %v6883_v57 = vrot.slane %v6875_v1, %v10386_v51  ;;  %v6844_v50 = vcombine.high %v6778_v44, %v6794_v43 }
 0x5db   : > { %v13590_v13 = vpop.permute.xlu0 %6568  ;;  %v13592_v61 = vpop.permute.xlu1 %6596  ;;  %v6895_v10 = vcombine.low %v6851_v27, %v6883_v57  ;;  %v6896_v40 = vcombine.high %v6851_v27, %v6883_v57  ;;  %v15085_v27 = vld [vmem:[#allocation43_spill] sm:$0xff] }
 0x5dc   : > { %15083 = vst [vmem:[#allocation92_spill] sm:$0xff] %v13590_v13 }
 0x5dd   : > { %7040 = vrot.lane.b32.xlu0 %v6893_v23, %s14676_s13  ;;  %7068 = vrot.lane.b32.xlu1 %v7029_v2, %s14676_s13  ;;  %v6987_v23 = vrot.slane %v6979_v20, %v10386_v51  ;;  %v6876_v2 = vcombine.high %v6810_v11, %v6826_v24  ;;  %v6858_v24 = vrot.slane %v6844_v50, %v10386_v51 }
 0x5de   : > { %v6994_v11 = vrot.slane %v6980_v21, %v10386_v51 }
 0x5df   : > { %v13596_v62 = vpop.permute.xlu0 %6572  ;;  %v13598_v4 = vpop.permute.xlu1 %6600  ;;  %v7031_v15 = vcombine.low %v6987_v23, %v7019_v3  ;;  %v7032_v20 = vcombine.high %v6987_v23, %v7019_v3  ;;  %v6890_v46 = vrot.slane %v6876_v2, %v10386_v51  ;;  %v7416_v3 = vcombine.high %v15086_v16, %v15085_v27  ;;  %v15098_v27 = vld [vmem:[#allocation133_spill] sm:$0xff] }
 0x5e0   : > { %15084 = vst [vmem:[#allocation96_spill] sm:$0xff] %v13596_v62  ;;  %v7033_v44 = vcombine.low %v6994_v11, %v7026_v31  ;;  %v7034_v57 = vcombine.high %v6994_v11, %v7026_v31  ;;  %v7280_v23 = vcombine.high %v13034_v7, %v13063_v22  ;;  %v7264_v2 = vcombine.high %v13036_v8, %v13065_v5  ;;  %v15092_v31 = vld [vmem:[#allocation129_spill] sm:$0xff]  ;;  %v15093_v22 = vld [vmem:[#allocation131_spill] sm:$0xff]  ;;  %v15094_v5 = vld [vmem:[#allocation130_spill] sm:$0xff] }
 0x5e1   : > { %7044 = vrot.lane.b32.xlu0 %v6894_v26, %s9962_s20  ;;  %7072 = vrot.lane.b32.xlu1 %v7030_v49, %s9962_s20  ;;  %v6897_v43 = vcombine.low %v6858_v24, %v6890_v46  ;;  %v7400_v26 = vcombine.high %v12953_v45, %v12978_v38  ;;  %v7464_v49 = vcombine.high %v12994_v37, %v12991_v36  ;;  %v15089_v45 = vld [vmem:[#allocation14_spill] sm:$0xff]  ;;  %v15091_v37 = vld [vmem:[#allocation128_spill] sm:$0xff] }
 0x5e2   : > { %v6898_v50 = vcombine.high %v6858_v24, %v6890_v46  ;;  %v7432_v7 = vcombine.high %v15092_v31, %v12998_v56  ;;  %v7248_v8 = vcombine.high %v13003_v14, %v13018_v39  ;;  %v15096_v11 = vld [vmem:[#allocation48_spill] sm:$0xff]  ;;  %v7430_v46 = vrot.slane %v7416_v3, %v10135_v19 }
 0x5e3   : > { %v13606_v13 = vpop.permute.xlu0 %6576  ;;  %v13608_v62 = vpop.permute.xlu1 %6604  ;;  %v7414_v24 = vrot.slane %v7400_v26, %v10135_v19  ;;  %v7478_v16 = vrot.slane %v7464_v49, %v10386_v51  ;;  %v7294_v14 = vrot.slane %v7280_v23, %v10135_v19  ;;  %v7278_v39 = vrot.slane %v7264_v2, %v10135_v19 }
 0x5e4   : > { %v7262_v49 = vrot.slane %v7248_v8, %v10135_v19 }
 0x5e5   : > { %7048 = vrot.lane.b32.xlu0 %v6895_v10, %s9963_s25  ;;  %7076 = vrot.lane.b32.xlu1 %v7031_v15, %s9963_s25  ;;  %v7328_v10 = vcombine.high %v13083_v54, %v13080_v60  ;;  %v7232_v60 = vcombine.high %v15094_v5, %v15093_v22  ;;  %v15095_v54 = vld [vmem:[#allocation47_spill] sm:$0xff]  ;;  %v7479_v31 = vcombine.low %v7414_v24, %v7430_v46 }
 0x5e6   : > { %v7343_v22 = vcombine.low %v7278_v39, %v7294_v14 }
 0x5e7   : > { %v13612_v59 = vpop.permute.xlu0 %6580  ;;  %v13614_v1 = vpop.permute.xlu1 %6608  ;;  %v7342_v3 = vrot.slane %v7328_v10, %v10386_v51  ;;  %v7246_v23 = vrot.slane %v7232_v60, %v10135_v19 }
 0x5e9   : > { %7052 = vrot.lane.b32.xlu0 %v6896_v40, %s9964_s23  ;;  %7080 = vrot.lane.b32.xlu1 %v7032_v20, %s9964_s23  ;;  %v15088_v40 = vld [vmem:[#allocation38_spill] sm:$0xff]  ;;  %v15090_v20 = vld [vmem:[#allocation39_spill] sm:$0xff] }
 0x5ea   : > { %v7384_v38 = vcombine.high %v15089_v45, %v15088_v40  ;;  %v7368_v36 = vcombine.high %v15091_v37, %v15090_v20  ;;  %v7446_v37 = vrot.slane %v7432_v7, %v10386_v51  ;;  %v7311_v7 = vcombine.low %v7246_v23, %v7262_v49 }
 0x5eb   : > { %v13622_v52 = vpop.permute.xlu0 %6584  ;;  %v13624_v12 = vpop.permute.xlu1 %6612 }
 0x5ec   : > { %v7398_v26 = vrot.slane %v7384_v38, %v10135_v19  ;;  %v7382_v20 = vrot.slane %v7368_v36, %v10135_v19  ;;  %v7497_v36 = vcombine.low %v7446_v37, %v7478_v16 }
 0x5ed   : > { %7056 = vrot.lane.b32.xlu0 %v6897_v43, %s9948_s29  ;;  %7084 = vrot.lane.b32.xlu1 %v7033_v44, %s9948_s29  ;;  %v7296_v43 = vcombine.high %v15096_v11, %v15095_v54  ;;  %v15097_v44 = vld [vmem:[#allocation132_spill] sm:$0xff] }
 0x5ee   : > { %v7496_v56 = vcombine.high %v15098_v27, %v15097_v44  ;;  %v7447_v54 = vcombine.low %v7382_v20, %v7398_v26  ;;  %v15135_v27 = vld [vmem:[#allocation143_spill] sm:$0xff] }
 0x5ef   : > { %v13640_v15 = vpop.permute.xlu0 %6588  ;;  %v13642_v21 = vpop.permute.xlu1 %6616  ;;  %v7310_v2 = vrot.slane %v7296_v43, %v10386_v51  ;;  %v7498_v43 = vcombine.high %v7446_v37, %v7478_v16  ;;  %v7448_v37 = vcombine.high %v7382_v20, %v7398_v26 }
 0x5f0   : > { %15087 = vst [vmem:[#allocation97_spill] sm:$0xff] %v13640_v15 }
 0x5f1   : > { %7060 = vrot.lane.b32.xlu0 %v6898_v50, %s9956_s17  ;;  %7088 = vrot.lane.b32.xlu1 %v7034_v57, %s9956_s17  ;;  %v15101_v50 = vld [vmem:[#allocation135_spill] sm:$0xff]  ;;  %v7361_v38 = vcombine.low %v7310_v2, %v7342_v3  ;;  %v7362_v11 = vcombine.high %v7310_v2, %v7342_v3  ;;  %v7312_v2 = vcombine.high %v7246_v23, %v7262_v49 }
 0x5f2   : > { %v7360_v57 = vcombine.high %v15101_v50, %v13149_v28 }
 0x5f3   : > { %v13665_v40 = vpop.permute.xlu0 %6592  ;;  %v13667_v45 = vpop.permute.xlu1 %6620 }
 0x5f4   : > { %15099 = vst [vmem:[#allocation108_spill] sm:$0xff] %v13665_v40  ;;  %15100 = vst [vmem:[#allocation105_spill] sm:$0xff] %v13667_v45 }
 0x5f5   : > { %7504 = vrot.lane.b32.xlu0 %v7360_v57, %s14642_s27  ;;  %7532 = vrot.lane.b32.xlu1 %v7496_v56, %s14642_s27  ;;  %v7351_v56 = vrot.slane %v7343_v22, %v10386_v51  ;;  %v7487_v57 = vrot.slane %v7479_v31, %v10386_v51 }
 0x5f7   : > { %v13680_v5 = vpop.permute.xlu0 %7980  ;;  %v13682_v10 = vpop.permute.xlu1 %8008 }
 0x5f8   : > { %15102 = vst [vmem:[#allocation109_spill] sm:$0xff] %v13680_v5  ;;  %15103 = vst [vmem:[#allocation106_spill] sm:$0xff] %v13682_v10  ;;  %v7319_v5 = vrot.slane %v7311_v7, %v10386_v51  ;;  %v7480_v10 = vcombine.high %v7414_v24, %v7430_v46 }
 0x5f9   : > { %7508 = vrot.lane.b32.xlu0 %v7361_v38, %s14676_s13  ;;  %7536 = vrot.lane.b32.xlu1 %v7497_v36, %s14676_s13  ;;  %v7455_v38 = vrot.slane %v7447_v54, %v10386_v51  ;;  %v7344_v36 = vcombine.high %v7278_v39, %v7294_v14  ;;  %v7326_v14 = vrot.slane %v7312_v2, %v10386_v51  ;;  %v15119_v2 = vld [vmem:[#allocation66_spill] sm:$0xff] }
 0x5fa   : > { %v7363_v3 = vcombine.low %v7319_v5, %v7351_v56  ;;  %v7364_v7 = vcombine.high %v7319_v5, %v7351_v56  ;;  %v7494_v24 = vrot.slane %v7480_v10, %v10386_v51  ;;  %v7462_v39 = vrot.slane %v7448_v37, %v10386_v51  ;;  %v15112_v5 = vld [vmem:[#allocation136_spill] sm:$0xff]  ;;  %v15113_v10 = vld [vmem:[#allocation49_spill] sm:$0xff]  ;;  %v15115_v56 = vld [vmem:[#allocation134_spill] sm:$0xff] }
 0x5fb   : > { %v13686_v8 = vpop.permute.xlu0 %7984  ;;  %v13688_v60 = vpop.permute.xlu1 %8012  ;;  %v7499_v16 = vcombine.low %v7455_v38, %v7487_v57  ;;  %v7500_v54 = vcombine.high %v7455_v38, %v7487_v57  ;;  %v7358_v46 = vrot.slane %v7344_v36, %v10386_v51  ;;  %v15116_v38 = vld [vmem:[#allocation138_spill] sm:$0xff]  ;;  %v15117_v36 = vld [vmem:[#allocation139_spill] sm:$0xff]  ;;  %v15118_v37 = vld [vmem:[#allocation65_spill] sm:$0xff] }
 0x5fc   : > { %15104 = vst [vmem:[#allocation110_spill] sm:$0xff] %v13686_v8  ;;  %15105 = vst [vmem:[#allocation111_spill] sm:$0xff] %v13688_v60  ;;  %v7501_v23 = vcombine.low %v7462_v39, %v7494_v24  ;;  %v15133_v60 = vld [vmem:[#allocation142_spill] sm:$0xff] }
 0x5fd   : > { %7512 = vrot.lane.b32.xlu0 %v7362_v11, %s9962_s20  ;;  %7540 = vrot.lane.b32.xlu1 %v7498_v43, %s9962_s20  ;;  %v7365_v49 = vcombine.low %v7326_v14, %v7358_v46  ;;  %v8360_v11 = vcombine.high %v15113_v10, %v15112_v5  ;;  %v15114_v43 = vld [vmem:[#allocation137_spill] sm:$0xff]  ;;  %v7366_v5 = vcombine.high %v7326_v14, %v7358_v46  ;;  %v15126_v10 = vld [vmem:[#allocation44_spill] sm:$0xff]  ;;  %v15138_v14 = vld [vmem:[#allocation146_spill] sm:$0xff] }
 0x5fe   : > { %v8344_v57 = vcombine.high %v15115_v56, %v15114_v43  ;;  %v15127_v43 = vld [vmem:[#allocation50_spill] sm:$0xff] }
 0x5ff   : > { %v13696_v44 = vpop.permute.xlu0 %7988  ;;  %v13698_v8 = vpop.permute.xlu1 %8016  ;;  %v8328_v56 = vcombine.high %v15127_v43, %v15126_v10  ;;  %v8374_v46 = vrot.slane %v8360_v11, %v10135_v19  ;;  %v15139_v10 = vld [vmem:[#allocation67_spill] sm:$0xff] }
 0x600   : > { %15106 = vst [vmem:[#allocation102_spill] sm:$0xff] %v13696_v44  ;;  %15107 = vst [vmem:[#allocation100_spill] sm:$0xff] %v13698_v8  ;;  %v15128_v8 = vld [vmem:[#allocation45_spill] sm:$0xff]  ;;  %v8440_v43 = vcombine.high %v15139_v10, %v15138_v14 }
 0x601   : > { %7516 = vrot.lane.b32.xlu0 %v7363_v3, %s9963_s25  ;;  %7544 = vrot.lane.b32.xlu1 %v7499_v16, %s9963_s25  ;;  %v8408_v3 = vcombine.high %v15117_v36, %v15116_v38  ;;  %v7502_v16 = vcombine.high %v7462_v39, %v7494_v24  ;;  %v15129_v38 = vld [vmem:[#allocation51_spill] sm:$0xff]  ;;  %v15130_v39 = vld [vmem:[#allocation140_spill] sm:$0xff]  ;;  %v15131_v36 = vld [vmem:[#allocation141_spill] sm:$0xff] }
 0x602   : > { %v8312_v24 = vcombine.high %v15129_v38, %v15128_v8  ;;  %v8358_v8 = vrot.slane %v8344_v57, %v10135_v19  ;;  %v8342_v57 = vrot.slane %v8328_v56, %v10135_v19 }
 0x603   : > { %v13702_v31 = vpop.permute.xlu0 %7992  ;;  %v13704_v22 = vpop.permute.xlu1 %8020  ;;  %v8422_v38 = vrot.slane %v8408_v3, %v10386_v51 }
 0x604   : > { %15108 = vst [vmem:[#allocation103_spill] sm:$0xff] %v13702_v31  ;;  %15109 = vst [vmem:[#allocation101_spill] sm:$0xff] %v13704_v22  ;;  %v15122_v31 = vld [vmem:[#allocation69_spill] sm:$0xff] }
 0x605   : > { %7520 = vrot.lane.b32.xlu0 %v7364_v7, %s9964_s23  ;;  %7548 = vrot.lane.b32.xlu1 %v7500_v54, %s9964_s23  ;;  %v8224_v7 = vcombine.high %v15119_v2, %v15118_v37  ;;  %v15120_v54 = vld [vmem:[#allocation68_spill] sm:$0xff]  ;;  %v8376_v37 = vcombine.high %v15131_v36, %v15130_v39  ;;  %v15143_v36 = vld [vmem:[#allocation82_spill] sm:$0xff] }
 0x606   : > { %v15132_v2 = vld [vmem:[#allocation144_spill] sm:$0xff] }
 0x607   : > { %v13712_v26 = vpop.permute.xlu0 %7996  ;;  %v13714_v20 = vpop.permute.xlu1 %8024 }
 0x608   : > { %15110 = vst [vmem:[#allocation112_spill] sm:$0xff] %v13712_v26  ;;  %15111 = vst [vmem:[#allocation113_spill] sm:$0xff] %v13714_v20  ;;  %v15121_v26 = vld [vmem:[#allocation64_spill] sm:$0xff] }
 0x609   : > { %7524 = vrot.lane.b32.xlu0 %v7365_v49, %s9948_s29  ;;  %7552 = vrot.lane.b32.xlu1 %v7501_v23, %s9948_s29  ;;  %v8208_v20 = vcombine.high %v15121_v26, %v15120_v54  ;;  %v15123_v49 = vld [vmem:[#allocation62_spill] sm:$0xff]  ;;  %v8192_v26 = vcombine.high %v15133_v60, %v15132_v2  ;;  %v15134_v54 = vld [vmem:[#allocation145_spill] sm:$0xff]  ;;  %v8238_v60 = vrot.slane %v8224_v7, %v10135_v19 }
 0x60a   : > { %v8272_v22 = vcombine.high %v15123_v49, %v15122_v31  ;;  %v8176_v31 = vcombine.high %v15135_v27, %v15134_v54  ;;  %v15136_v49 = vld [vmem:[#allocation60_spill] sm:$0xff]  ;;  %v8326_v2 = vrot.slane %v8312_v24, %v10135_v19  ;;  %v8390_v54 = vrot.slane %v8376_v37, %v10386_v51 }
 0x60b   : > { %v13730_v23 = vpop.permute.xlu0 %8000  ;;  %v13732_v44 = vpop.permute.xlu1 %8028  ;;  %v8222_v27 = vrot.slane %v8208_v20, %v10135_v19  ;;  %v8206_v3 = vrot.slane %v8192_v26, %v10135_v19 }
 0x60c   : > { %15124 = vst [vmem:[#allocation119_spill] sm:$0xff] %v13730_v23  ;;  %15125 = vst [vmem:[#allocation122_spill] sm:$0xff] %v13732_v44  ;;  %v15137_v23 = vld [vmem:[#allocation63_spill] sm:$0xff]  ;;  %v8286_v11 = vrot.slane %v8272_v22, %v10386_v51  ;;  %v8190_v7 = vrot.slane %v8176_v31, %v10135_v19  ;;  %v8441_v24 = vcombine.low %v8390_v54, %v8422_v38 }
 0x60d   : > { %v8240_v28 = vcombine.high %v15137_v23, %v15136_v49  ;;  %7528 = vrot.lane.b32.xlu0 %v7366_v5, %s9956_s17  ;;  %7556 = vrot.lane.b32.xlu1 %v7502_v16, %s9956_s17  ;;  %v15142_v5 = vld [vmem:[#allocation77_spill] sm:$0xff]  ;;  %v8423_v49 = vcombine.low %v8358_v8, %v8374_v46  ;;  %v8287_v14 = vcombine.low %v8222_v27, %v8238_v60 }
 0x60e   : > { %v8304_v16 = vcombine.high %v15143_v36, %v15142_v5  ;;  %v8391_v5 = vcombine.low %v8326_v2, %v8342_v57  ;;  %v8255_v37 = vcombine.low %v8190_v7, %v8206_v3  ;;  %v8288_v44 = vcombine.high %v8222_v27, %v8238_v60 }
 0x60f   : > { %v13755_v39 = vpop.permute.xlu0 %8004  ;;  %v13757_v23 = vpop.permute.xlu1 %8032  ;;  %v8254_v20 = vrot.slane %v8240_v28, %v10386_v51  ;;  %v8442_v28 = vcombine.high %v8390_v54, %v8422_v38  ;;  %v8431_v36 = vrot.slane %v8423_v49, %v10386_v51  ;;  %v8256_v38 = vcombine.high %v8190_v7, %v8206_v3  ;;  %v15147_v3 = vld [vmem:[#allocation81_spill] sm:$0xff] }
 0x610   : > { %15140 = vst [vmem:[#allocation120_spill] sm:$0xff] %v13755_v39  ;;  %15141 = vst [vmem:[#allocation123_spill] sm:$0xff] %v13757_v23  ;;  %v8424_v39 = vcombine.high %v8358_v8, %v8374_v46  ;;  %v8263_v23 = vrot.slane %v8255_v37, %v10386_v51  ;;  %v15144_v8 = vld [vmem:[#allocation71_spill] sm:$0xff]  ;;  %v8302_v60 = vrot.slane %v8288_v44, %v10386_v51  ;;  %v15149_v37 = vld [vmem:[#allocation78_spill] sm:$0xff] }
 0x611   : > { %8448 = vrot.lane.b32.xlu0 %v8304_v16, %s14642_s27  ;;  %8476 = vrot.lane.b32.xlu1 %v8440_v43, %s14642_s27  ;;  %v8305_v56 = vcombine.low %v8254_v20, %v8286_v11  ;;  %v8306_v43 = vcombine.high %v8254_v20, %v8286_v11  ;;  %v8295_v16 = vrot.slane %v8287_v14, %v10386_v51  ;;  %v15145_v14 = vld [vmem:[#allocation61_spill] sm:$0xff] }
 0x612   : > { %v8438_v46 = vrot.slane %v8424_v39, %v10386_v51  ;;  %v8796_v54 = vcombine.high %v15145_v14, %v15144_v8  ;;  %v15151_v39 = vld [vmem:[#allocation75_spill] sm:$0xff]  ;;  %v8660_v8 = vcombine.high %v13381_v42, %v13398_v58  ;;  %v8270_v44 = vrot.slane %v8256_v38, %v10386_v51  ;;  %v15154_v14 = vld [vmem:[#allocation88_spill] sm:$0xff] }
 0x613   : > { %v13770_v10 = vpop.permute.xlu0 %5543  ;;  %v13772_v22 = vpop.permute.xlu1 %5571  ;;  %v8307_v45 = vcombine.low %v8263_v23, %v8295_v16  ;;  %v8692_v42 = vcombine.high %v13427_v29, %v13456_v47  ;;  %v8676_v58 = vcombine.high %v13429_v35, %v13458_v0  ;;  %v15158_v35 = vld [vmem:[#allocation99_spill] sm:$0xff]  ;;  %v15159_v0 = vld [vmem:[#allocation86_spill] sm:$0xff] }
 0x614   : > { %v8309_v38 = vcombine.low %v8270_v44, %v8302_v60  ;;  %v13827_v29 = vrot.slane %v8660_v8, %v10135_v19  ;;  %v8740_v47 = vcombine.high %v15158_v35, %v13479_v34  ;;  %v15163_v8 = vld [vmem:[#allocation93_spill] sm:$0xff] }
 0x615   : > { %8452 = vrot.lane.b32.xlu0 %v8305_v56, %s14676_s13  ;;  %8480 = vrot.lane.b32.xlu1 %v8441_v24, %s14676_s13  ;;  %v8399_v56 = vrot.slane %v8391_v5, %v10386_v51  ;;  %v8392_v24 = vcombine.high %v8326_v2, %v8342_v57  ;;  %v8308_v5 = vcombine.high %v8263_v23, %v8295_v16  ;;  %v15146_v2 = vld [vmem:[#allocation83_spill] sm:$0xff]  ;;  %v15152_v16 = vld [vmem:[#allocation80_spill] sm:$0xff] }
 0x616   : > { %v8828_v7 = vcombine.high %v15147_v3, %v15146_v2  ;;  %v15155_v2 = vld [vmem:[#allocation85_spill] sm:$0xff] }
 0x617   : > { %v13776_v26 = vpop.permute.xlu0 %5547  ;;  %v13778_v31 = vpop.permute.xlu1 %5575  ;;  %v8443_v11 = vcombine.low %v8399_v56, %v8431_v36  ;;  %v8444_v57 = vcombine.high %v8399_v56, %v8431_v36  ;;  %v8406_v27 = vrot.slane %v8392_v24, %v10386_v51  ;;  %v13805_v36 = vrot.slane %v8796_v54, %v10135_v19  ;;  %v15153_v56 = vld [vmem:[#allocation70_spill] sm:$0xff]  ;;  %v15157_v54 = vld [vmem:[#allocation84_spill] sm:$0xff] }
 0x618   : > { %v8780_v24 = vcombine.high %v15153_v56, %v15152_v16  ;;  %v8644_v3 = vcombine.high %v15155_v2, %v15154_v14  ;;  %v13818_v15 = vrot.slane %v8828_v7, %v10135_v19  ;;  %v15164_v56 = vld [vmem:[#allocation90_spill] sm:$0xff]  ;;  %v15167_v2 = vld [vmem:[#allocation79_spill] sm:$0xff] }
 0x619   : > { %8456 = vrot.lane.b32.xlu0 %v8306_v43, %s9962_s20  ;;  %8484 = vrot.lane.b32.xlu1 %v8442_v28, %s9962_s20  ;;  %v15150_v28 = vld [vmem:[#allocation72_spill] sm:$0xff]  ;;  %v8445_v23 = vcombine.low %v8406_v27, %v8438_v46  ;;  %v15165_v14 = vcombine.low %v15163_v8, %v15164_v56  ;;  %v15171_v8 = vld [vmem:[#allocation94_spill] sm:$0xff] }
 0x61a   : > { %v13836_v7 = vrot.slane %v8644_v3, %v10135_v19  ;;  %v13854_v3 = vrot.slane %v8676_v58, %v10135_v19  ;;  %v15172_v56 = vld [vmem:[#allocation16_spill] sm:$0xff] }
 0x61b   : > { %v5552_v50 = vpop.permute.xlu0 %5551  ;;  %v5580_v40 = vpop.permute.xlu1 %5579  ;;  %v5598_v34 = vsel %vm15166_vm4, %v15165_v14, %v13770_v10  ;;  %v15173_v14 = vld [vmem:[#allocation31_spill] sm:$0xff] }
 0x61c   : > { %v5599_v35 = vsel %vm692_vm14, %v5598_v34, %v13776_v26 }
 0x61d   : > { %8460 = vrot.lane.b32.xlu0 %v8307_v45, %s9963_s25  ;;  %8488 = vrot.lane.b32.xlu1 %v8443_v11, %s9963_s25  ;;  %v15148_v45 = vld [vmem:[#allocation74_spill] sm:$0xff]  ;;  %v8876_v11 = vcombine.high %v15151_v39, %v15150_v28  ;;  %v15156_v28 = vld [vmem:[#allocation73_spill] sm:$0xff] }
 0x61e   : > { %v8812_v43 = vcombine.high %v15149_v37, %v15148_v45  ;;  %v8446_v45 = vcombine.high %v8406_v27, %v8438_v46  ;;  %v8310_v37 = vcombine.high %v8270_v44, %v8302_v60  ;;  %v8844_v39 = vcombine.high %v15157_v54, %v15156_v28  ;;  %v15160_v60 = vld [vmem:[#allocation89_spill] sm:$0xff] }
 0x61f   : > { %v5556_v20 = vpop.permute.xlu0 %5555  ;;  %v5584_v49 = vpop.permute.xlu1 %5583  ;;  %v13824_v46 = vrot.slane %v8876_v11, %v10386_v51  ;;  %v8908_v27 = vcombine.high %v15160_v60, %v15159_v0  ;;  %v15162_v11 = vld [vmem:[#allocation98_spill] sm:$0xff]  ;;  %v13851_v54 = vrot.slane %v8692_v42, %v10135_v19  ;;  %v15177_v42 = vld [vmem:[#allocation35_spill] sm:$0xff]  ;;  %v5600_v60 = vsel %vm5188_vm2, %v5599_v35, %v5552_v50 }
 0x620   : > { %v13821_v16 = vrot.slane %v8812_v43, %v10135_v19  ;;  %v15161_v43 = vld [vmem:[#allocation87_spill] sm:$0xff] }
 0x621   : > { %8464 = vrot.lane.b32.xlu0 %v8308_v5, %s9964_s23  ;;  %8492 = vrot.lane.b32.xlu1 %v8444_v57, %s9964_s23  ;;  %v8708_v44 = vcombine.high %v15162_v11, %v15161_v43 }
 0x623   : > { %v5560_v5 = vpop.permute.xlu0 %5559  ;;  %v5588_v57 = vpop.permute.xlu1 %5587 }
 0x625   : > { %8468 = vrot.lane.b32.xlu0 %v8309_v38, %s9948_s29  ;;  %8496 = vrot.lane.b32.xlu1 %v8445_v23, %s9948_s29  ;;  %v15168_v38 = vld [vmem:[#allocation76_spill] sm:$0xff] }
 0x626   : > { %v15169_v28 = vcombine.low %v15167_v2, %v15168_v38  ;;  %v15174_v2 = vcombine.low %v15172_v56, %v15173_v14  ;;  %v15176_v38 = vld [vmem:[#allocation91_spill] sm:$0xff] }
 0x627   : > { %v5564_v11 = vpop.permute.xlu0 %5563  ;;  %v5592_v10 = vpop.permute.xlu1 %5591 }
 0x628   : > { %v5605_v23 = vsel %vm15170_vm5, %v15169_v28, %v13772_v22  ;;  %v5186_v22 = vsel %vm15175_vm12, %v15174_v2, %v15171_v8  ;;  %v15178_v28 = vld [vmem:[#allocation37_spill] sm:$0xff]  ;;  %v8891_v2 = vcombine.low %v13821_v16, %v13818_v15  ;;  %vm15214_vm5 = vmmov %vm15166_vm4 }
 0x629   : > { %v5606_v43 = vsel %vm692_vm14, %v5605_v23, %v13778_v31  ;;  %v15179_v0 = vcombine.low %v15177_v42, %v15178_v28  ;;  %v5601_v31 = vsel %vm5190_vm9, %v5600_v60, %v5556_v20  ;;  %8472 = vrot.lane.b32.xlu0 %v8310_v37, %s9956_s17  ;;  %8500 = vrot.lane.b32.xlu1 %v8446_v45, %s9956_s17  ;;  %vm15218_vm12 = vmmov %vm15166_vm4 }
 0x62a   : > { %v5607_v26 = vsel %vm5188_vm2, %v5606_v43, %v5580_v40  ;;  %v8754_v23 = vrot.slane %v8740_v47, %v10386_v51  ;;  %v5187_v8 = vsel %vm692_vm14, %v5186_v22, %v13499_v25  ;;  %v5602_v50 = vsel %vm5192_vm10, %v5601_v31, %v5560_v5 }
 0x62b   : > { %v5198_v58 = vsel %vm15180_vm6, %v15179_v0, %v15176_v38  ;;  %v5608_v34 = vsel %vm5190_vm9, %v5607_v26, %v5584_v49  ;;  %v5603_v49 = vsel %vm5194_vm3, %v5602_v50, %v5564_v11  ;;  %v5568_v45 = vpop.permute.xlu0 %5567  ;;  %v5596_v60 = vpop.permute.xlu1 %5595  ;;  %v8772_v47 = vcombine.high %v13506_v18, %v13497_v6  ;;  %v15181_v11 = vld [vmem:[#allocation95_spill] sm:$0xff]  ;;  %vm15228_vm6 = vmmov %vm15166_vm4 }
 0x62c   : > { %v5199_v0 = vsel %vm692_vm14, %v5198_v58, %v13501_v55  ;;  %v5609_v40 = vsel %vm5192_vm10, %v5608_v34, %v5588_v57  ;;  %v5189_v25 = vsel %vm5188_vm2, %v5187_v8, %v13514_v33  ;;  %v5604_v5 = vsel %vm5196_vm0, %v5603_v49, %v5568_v45  ;;  %v9589_v33 = vld [vmem:[%s14311_s5 + $0x8] sm:$0xff]  ;;  %v5205_v34 = vld [vmem:[%s14311_s5] sm:$0xff] }
 0x62d   : > { %v5200_v20 = vsel %vm5188_vm2, %v5199_v0, %v13516_v53  ;;  %v5610_v37 = vsel %vm5194_vm3, %v5609_v40, %v5592_v10  ;;  %v5191_v53 = vsel %vm5190_vm9, %v5189_v25, %v13522_v63  ;;  %8916 = vrot.lane.b32.xlu0 %v8772_v47, %s14642_s27  ;;  %8944 = vrot.lane.b32.xlu1 %v8908_v27, %s14642_s27  ;;  %v15182_v22 = vmov 0.0  }
 0x62e   : > { %v5201_v55 = vsel %vm5190_vm9, %v5200_v20, %v13524_v32  ;;  %v5611_v57 = vsel %vm5196_vm0, %v5610_v37, %v5596_v60  ;;  %v8722_v32 = vrot.slane %v8708_v44, %v10386_v51  ;;  %v8794_v43 = vrot.slane %v8780_v24, %v10135_v19 }
 0x62f   : > { %v5202_v35 = vsel %vm5192_vm10, %v5201_v55, %v13534_v30  ;;  %v5193_v10 = vsel %vm5192_vm10, %v5191_v53, %v15181_v11  ;;  %5618 = vmatprep.subr.mxu0 %v5611_v57  ;;  %v8858_v30 = vrot.slane %v8844_v39, %v10386_v51  ;;  %v8755_v27 = vcombine.low %v13854_v3, %v13851_v54  ;;  %v6085_v14 = vpop.permute.xlu0 %6084  ;;  %v6113_v44 = vpop.permute.xlu1 %6112  ;;  %v15184_v57 = vld [vmem:[#allocation118_spill] sm:$0xff] }
 0x630   : > { %v5203_v63 = vsel %vm5194_vm3, %v5202_v35, %v13552_v48  ;;  %v5195_v56 = vsel %vm5194_vm3, %v5193_v10, %v13550_v9  ;;  %5619 = vmatpush1.msra.mxu0 %v5604_v5  ;;  %v8773_v24 = vcombine.low %v8722_v32, %v8754_v23  ;;  %v8723_v9 = vcombine.low %v13836_v7, %v13827_v29  ;;  %v15183_v5 = vld [vmem:[#allocation121_spill] sm:$0xff] }
 0x631   : > { %v5204_v19 = vsel %vm5196_vm0, %v5203_v63, %v13577_v17  ;;  %v5197_v48 = vsel %vm5196_vm0, %v5195_v56, %v13575_v41  ;;  %9590 = vmatmul.mubr.msk.f32.vlgmr.msra.gmra.mrb[4].mxu0 %vm5614_vm7, %v9589_v33  ;;  %v8909_v39 = vcombine.low %v8858_v30, %v13824_v46  ;;  %v8859_v17 = vcombine.low %v8794_v43, %v13805_v36  ;;  %v15187_v33 = vld [vmem:[#allocation107_spill] sm:$0xff]  ;;  %v15191_v56 = vld [vmem:[#allocation54_spill] sm:$0xff] }
 0x632   : > { %5692 = vmatprep.subr.mxu0 %v5204_v19  ;;  %8920 = vrot.lane.b32.xlu0 %v8773_v24, %s14676_s13  ;;  %v8774_v41 = vcombine.high %v8722_v32, %v8754_v23  ;;  %v8763_v28 = vrot.slane %v8755_v27, %v10386_v51  ;;  %v8910_v58 = vcombine.high %v8858_v30, %v13824_v46  ;;  %v15188_v32 = vld [vmem:[#allocation104_spill] sm:$0xff]  ;;  %v15192_v19 = vld [vmem:[#allocation55_spill] sm:$0xff] }
 0x633   : > { %5693 = vmatpush1.msra.mxu0 %v5197_v48  ;;  %8948 = vrot.lane.b32.xlu1 %v8909_v39, %s14676_s13  ;;  %v6089_v38 = vpop.permute.xlu0 %6088  ;;  %v6117_v42 = vpop.permute.xlu1 %6116  ;;  %v8899_v26 = vrot.slane %v8891_v2, %v10386_v51  ;;  %v8731_v31 = vrot.slane %v8723_v9, %v10386_v51  ;;  %v8867_v8 = vrot.slane %v8859_v17, %v10386_v51  ;;  %v15195_v39 = vld [vmem:[#allocation92_spill] sm:$0xff]  ;;  %v15197_v17 = vld [vmem:[#allocation53_spill] sm:$0xff] }
 0x634   : > { %5756 = vmatprep.mubr.f32.mxu0 %v15182_v22  ;;  %v8756_v23 = vcombine.high %v13854_v3, %v13851_v54  ;;  %v8892_v40 = vcombine.high %v13821_v16, %v13818_v15  ;;  %v8724_v49 = vcombine.high %v13836_v7, %v13827_v29  ;;  %v8860_v37 = vcombine.high %v8794_v43, %v13805_v36  ;;  %v15196_v9 = vld [vmem:[#allocation52_spill] sm:$0xff] }
 0x635   : > { %v8775_v46 = vcombine.low %v8731_v31, %v8763_v28  ;;  %v8911_v20 = vcombine.low %v8867_v8, %v8899_v26  ;;  %v8776_v45 = vcombine.high %v8731_v31, %v8763_v28  ;;  %v8912_v15 = vcombine.high %v8867_v8, %v8899_v26 }
 0x636   : > { %8924 = vrot.lane.b32.xlu0 %v8774_v41, %s9962_s20  ;;  %v8770_v60 = vrot.slane %v8756_v23, %v10386_v51  ;;  %v8906_v16 = vrot.slane %v8892_v40, %v10386_v51  ;;  %v8738_v29 = vrot.slane %v8724_v49, %v10386_v51  ;;  %v8874_v7 = vrot.slane %v8860_v37, %v10386_v51 }
 0x637   : > { %8952 = vrot.lane.b32.xlu1 %v8910_v58, %s9962_s20  ;;  %v6093_v0 = vpop.permute.xlu0 %6092  ;;  %v6121_v50 = vpop.permute.xlu1 %6120  ;;  %v15185_v53 = vcombine.low %v15183_v5, %v15184_v57  ;;  %v15189_v43 = vcombine.low %v15187_v33, %v15188_v32  ;;  %v15193_v24 = vcombine.low %v15191_v56, %v15192_v19  ;;  %v15204_v5 = vld [vmem:[#allocation22_spill] sm:$0xff]  ;;  %v15205_v57 = vld [vmem:[#allocation25_spill] sm:$0xff]  ;;  %v15206_v33 = vld [vmem:[#allocation28_spill] sm:$0xff] }
 0x638   : > { %v8777_v25 = vcombine.low %v8738_v29, %v8770_v60  ;;  %v8913_v55 = vcombine.low %v8874_v7, %v8906_v16  ;;  %v8778_v27 = vcombine.high %v8738_v29, %v8770_v60  ;;  %v15207_v32 = vld [vmem:[#allocation23_spill] sm:$0xff]  ;;  %v15211_v56 = vld [vmem:[#allocation42_spill] sm:$0xff]  ;;  %v15212_v19 = vld [vmem:[#allocation40_spill] sm:$0xff] }
 0x639   : > { %9591 = vmatmul.mubr.msk.f32.vlgmr.msra.gmra.mrb[4].mxu0 %vm5614_vm7, %v5205_v34  ;;  %v6139_v35 = vsel %vm15186_vm11, %v15185_v53, %v6085_v14  ;;  %v6146_v11 = vsel %vm15190_vm13, %v15189_v43, %v6113_v44  ;;  %v6630_v14 = vsel %vm15194_vm8, %v15193_v24, %v13592_v61  ;;  %v8914_v44 = vcombine.high %v8874_v7, %v8906_v16  ;;  %v15199_v61 = vld [vmem:[#allocation96_spill] sm:$0xff]  ;;  %vm15232_vm11 = vmmov %vm15166_vm4 }
 0x63a   : > { %8928 = vrot.lane.b32.xlu0 %v8775_v46, %s9963_s25  ;;  %6222 = vmatprep.mubr.f32.mxu0 %v15182_v22  ;;  %v6140_v51 = vsel %vm692_vm14, %v6139_v35, %v6089_v38  ;;  %v6147_v10 = vsel %vm692_vm14, %v6146_v11, %v6117_v42  ;;  %v15198_v38 = vcombine.low %v15196_v9, %v15197_v17  ;;  %v15202_v16 = vld [vmem:[#allocation108_spill] sm:$0xff]  ;;  %v15219_v9 = vld [vmem:[#allocation29_spill] sm:$0xff]  ;;  %vm15237_vm13 = vmmov %vm15166_vm4 }
 0x63b   : > { %8956 = vrot.lane.b32.xlu1 %v8911_v20, %s9963_s25  ;;  %v6097_v54 = vpop.permute.xlu0 %6096  ;;  %v6125_v3 = vpop.permute.xlu1 %6124  ;;  %v6141_v2 = vsel %vm5188_vm2, %v6140_v51, %v6093_v0  ;;  %v6148_v48 = vsel %vm5188_vm2, %v6147_v10, %v6121_v50  ;;  %v6631_v41 = vsel %vm692_vm14, %v6630_v14, %v13598_v4  ;;  %v9075_v4 = vld [vmem:[%s14314_s8] sm:$0xff]  ;;  %v15208_v51 = vld [vmem:[#allocation27_spill] sm:$0xff]  ;;  %v15213_v24 = vcombine.low %v15211_v56, %v15212_v19  ;;  %v15238_v19 = vld [vmem:[#allocation109_spill] sm:$0xff] }
 0x63c   : > { %v6623_v42 = vsel %vm15166_vm4, %v15198_v38, %v15195_v39  ;;  %v6142_v28 = vsel %vm5190_vm9, %v6141_v2, %v6097_v54  ;;  %v6149_v58 = vsel %vm5190_vm9, %v6148_v48, %v6125_v3  ;;  %v6632_v31 = vsel %vm5188_vm2, %v6631_v41, %v13608_v62  ;;  %v9063_v20 = vld [vmem:[%s14312_s6] sm:$0xff]  ;;  %v9592_v54 = vld [vmem:[%s14311_s5 + $0x10] sm:$0xff]  ;;  %vm15242_vm8 = vmmov %vm15166_vm4 }
 0x63d   : > { %v6624_v26 = vsel %vm692_vm14, %v6623_v42, %v15199_v61  ;;  %v6633_v0 = vsel %vm5190_vm9, %v6632_v31, %v13614_v1  ;;  %v15209_v10 = vld [vmem:[#allocation26_spill] sm:$0xff]  ;;  %v15215_v2 = vld [vmem:[#allocation36_spill] sm:$0xff]  ;;  %v15220_v31 = vld [vmem:[#allocation33_spill] sm:$0xff] }
 0x63e   : > { %8932 = vrot.lane.b32.xlu0 %v8776_v45, %s9964_s23  ;;  %v6625_v23 = vsel %vm5188_vm2, %v6624_v26, %v13606_v13  ;;  %v6634_v37 = vsel %vm5192_vm10, %v6633_v0, %v13624_v12  ;;  %v15201_v12 = vld [vmem:[#allocation105_spill] sm:$0xff]  ;;  %v15216_v48 = vld [vmem:[#allocation18_spill] sm:$0xff] }
 0x63f   : > { %8960 = vrot.lane.b32.xlu1 %v8912_v15, %s9964_s23  ;;  %v6101_v47 = vpop.permute.xlu0 %6100  ;;  %v6129_v36 = vpop.permute.xlu1 %6128  ;;  %v6626_v49 = vsel %vm5190_vm9, %v6625_v23, %v13612_v59  ;;  %v6635_v45 = vsel %vm5194_vm3, %v6634_v37, %v13642_v21  ;;  %v15200_v59 = vld [vmem:[#allocation97_spill] sm:$0xff]  ;;  %v15203_v21 = vld [vmem:[#allocation24_spill] sm:$0xff]  ;;  %v15223_v37 = vld [vmem:[#allocation15_spill] sm:$0xff] }
 0x640   : > { %v6143_v34 = vsel %vm5192_vm10, %v6142_v28, %v6101_v47  ;;  %v6150_v8 = vsel %vm5192_vm10, %v6149_v58, %v6129_v36  ;;  %v6627_v3 = vsel %vm5192_vm10, %v6626_v49, %v13622_v52  ;;  %v6636_v15 = vsel %vm5196_vm0, %v6635_v45, %v15201_v12  ;;  %v9076_v52 = vld [vmem:[%s14314_s8 + $0x8] sm:$0x1f]  ;;  %v15222_v49 = vld [vmem:[#allocation17_spill] sm:$0xff] }
 0x641   : > { %v6628_v60 = vsel %vm5194_vm3, %v6627_v3, %v15200_v59  ;;  %v15224_v3 = vld [vmem:[#allocation20_spill] sm:$0xff] }
 0x642   : > { %8936 = vrot.lane.b32.xlu0 %v8777_v25, %s9948_s29  ;;  %v6629_v29 = vsel %vm5196_vm0, %v6628_v60, %v15202_v16  ;;  %v9415_v60 = vld [vmem:[%s14317_s11 + $0x8] sm:$0xff] }
 0x643   : > { %8964 = vrot.lane.b32.xlu1 %v8913_v55, %s9948_s29  ;;  %v6105_v63 = vpop.permute.xlu0 %6104  ;;  %v6133_v30 = vpop.permute.xlu1 %6132  ;;  %v9594_v55 = vld [vmem:[%s14311_s5 + $0x18] sm:$0xff] }
 0x644   : > { %v6144_v50 = vsel %vm5194_vm3, %v6143_v34, %v6105_v63  ;;  %v6151_v62 = vsel %vm5194_vm3, %v6150_v8, %v6133_v30 }
 0x646   : > { %8940 = vrot.lane.b32.xlu0 %v8778_v27, %s9956_s17  ;;  %v15210_v27 = vld [vmem:[#allocation34_spill] sm:$0xff] }
 0x647   : > { %8968 = vrot.lane.b32.xlu1 %v8914_v44, %s9956_s17  ;;  %v6109_v46 = vpop.permute.xlu0 %6108  ;;  %v6137_v40 = vpop.permute.xlu1 %6136  ;;  %v15217_v44 = vcombine.low %v15215_v2, %v15216_v48 }
 0x648   : > { %v6145_v13 = vsel %vm5196_vm0, %v6144_v50, %v6109_v46  ;;  %v6152_v1 = vsel %vm5196_vm0, %v6151_v62, %v6137_v40 }
 0x649   : > { %6158 = vmatprep.subr.mxu0 %v6152_v1 }
 0x64a   : > { %9079 = vperm.xlu0 %9836, %v9075_v4   ;;  %6159 = vmatpush1.msra.mxu0 %v6145_v13  ;;  %v15221_v4 = vld [vmem:[#allocation30_spill] sm:$0xff] }
 0x64b   : > { %9066 = vperm.xlu1 %9835, %v9063_v20   ;;  %v7037_v7 = vpop.permute.xlu0 %7036  ;;  %v7065_v47 = vpop.permute.xlu1 %7064  ;;  %6642 = vmatprep.subr.mxu0 %v6636_v15  ;;  %v9596_v20 = vld [vmem:[%s14311_s5 + $0x20] sm:$0xff] }
 0x64c   : > { %9593 = vmatmul.mubr.msk.f32.vlgmr.msra.gmra.mrb[4].mxu0 %vm5614_vm7, %v9592_v54  ;;  %v7091_v14 = vsel %vm15214_vm5, %v15213_v24, %v7037_v7  ;;  %v7098_v39 = vsel %vm15218_vm12, %v15217_v44, %v7065_v47  ;;  %v9414_v13 = vld [vmem:[%s14317_s11] sm:$0xff]  ;;  %v15239_v24 = vld [vmem:[#allocation56_spill] sm:$0xff]  ;;  %v15243_v44 = vld [vmem:[#allocation111_spill] sm:$0xff] }
 0x64d   : > { %6643 = vmatpush1.msra.mxu0 %v6629_v29  ;;  %6706 = vmatprep.mubr.f32.mxu0 %v15182_v22  ;;  %vm15261_vm5 = vmmov %vm15166_vm4 }
 0x64e   : > { %9195 = vrot.lane.b32.xlu0 %v15203_v21, %s14642_s27  ;;  %v15226_v21 = vld [vmem:[#allocation46_spill] sm:$0xff]  ;;  %vm15263_vm12 = vmmov %vm15166_vm4 }
 0x64f   : > { %9084 = vperm.xlu1 %9835, %v9076_v52   ;;  %v7041_v36 = vpop.permute.xlu0 %7040  ;;  %v7069_v25 = vpop.permute.xlu1 %7068  ;;  %v15225_v52 = vld [vmem:[#allocation135_spill] sm:$0xff] }
 0x650   : > { %v7092_v17 = vsel %vm692_vm14, %v7091_v14, %v7041_v36  ;;  %v7099_v38 = vsel %vm692_vm14, %v7098_v39, %v7069_v25  ;;  %v15227_v36 = vcombine.low %v15225_v52, %v15226_v21  ;;  %v15240_v14 = vld [vmem:[#allocation57_spill] sm:$0xff] }
 0x651   : > { %v15241_v2 = vcombine.low %v15239_v24, %v15240_v14 }
 0x652   : > { %9198 = vrot.lane.b32.xlu0 %v15204_v5, %s14676_s13  ;;  %v15230_v5 = vld [vmem:[#allocation132_spill] sm:$0xff] }
 0x653   : > { %9174 = vrot.lane.b32.xlu1 %v15205_v57, %s14642_s27  ;;  %v7045_v53 = vpop.permute.xlu0 %7044  ;;  %v7073_v35 = vpop.permute.xlu1 %7072  ;;  %v8035_v48 = vsel %vm15242_vm8, %v15241_v2, %v15238_v19 }
 0x654   : > { %9595 = vmatmul.mubr.msk.f32.vlgmr.msra.gmra.mrb[4].mxu0 %vm5614_vm7, %v9594_v55  ;;  %v7093_v28 = vsel %vm5188_vm2, %v7092_v17, %v7045_v53  ;;  %v7100_v58 = vsel %vm5188_vm2, %v7099_v38, %v7073_v35  ;;  %v15229_v55 = vld [vmem:[#allocation133_spill] sm:$0xff]  ;;  %v15244_v38 = vld [vmem:[#allocation110_spill] sm:$0xff] }
 0x655   : > { %7174 = vmatprep.mubr.f32.mxu0 %v15182_v22  ;;  %v15231_v57 = vcombine.low %v15229_v55, %v15230_v5 }
 0x656   : > { %9201 = vrot.lane.b32.xlu0 %v15206_v33, %s9962_s20 }
 0x657   : > { %9177 = vrot.lane.b32.xlu1 %v15207_v32, %s14676_s13  ;;  %v7049_v43 = vpop.permute.xlu0 %7048  ;;  %v7077_v11 = vpop.permute.xlu1 %7076 }
 0x658   : > { %v7094_v61 = vsel %vm5190_vm9, %v7093_v28, %v7049_v43  ;;  %v7101_v26 = vsel %vm5190_vm9, %v7100_v58, %v7077_v11  ;;  %v15233_v11 = vld [vmem:[#allocation106_spill] sm:$0xff] }
 0x65a   : > { %9204 = vrot.lane.b32.xlu0 %v15208_v51, %s9963_s25  ;;  %v15234_v51 = vld [vmem:[#allocation58_spill] sm:$0xff] }
 0x65b   : > { %9180 = vrot.lane.b32.xlu1 %v15209_v10, %s9962_s20  ;;  %v7053_v63 = vpop.permute.xlu0 %7052  ;;  %v7081_v30 = vpop.permute.xlu1 %7080  ;;  %v15235_v10 = vld [vmem:[#allocation59_spill] sm:$0xff]  ;;  %s14259_s20 = scalar_lea.sflag [#allocation3], %s423_s14 }
 0x65c   : > { %v7095_v34 = vsel %vm5192_vm10, %v7094_v61, %v7053_v63  ;;  %v7102_v8 = vsel %vm5192_vm10, %v7101_v26, %v7081_v30  ;;  %v15236_v63 = vcombine.low %v15234_v51, %v15235_v10  ;;  %v15246_v26 = vld [vmem:[#allocation102_spill] sm:$0xff]  ;;  %v15258_v51 = vld [vmem:[#allocation67_spill] sm:$0xff] }
 0x65d   : > { %v15259_v10 = vld [vmem:[#allocation146_spill] sm:$0xff] }
 0x65e   : > { %9207 = vrot.lane.b32.xlu0 %v15210_v27, %s9964_s23  ;;  %v8042_v30 = vsel %vm15237_vm13, %v15236_v63, %v15233_v11  ;;  %v15260_v63 = vcombine.low %v15258_v51, %v15259_v10  ;;  %vm9965_vm13 = vmmov 1  }
 0x65f   : > { %9183 = vrot.lane.b32.xlu1 %v15219_v9, %s9963_s25  ;;  %v7057_v42 = vpop.permute.xlu0 %7056  ;;  %v7085_v41 = vpop.permute.xlu1 %7084  ;;  %v8043_v39 = vsel %vm692_vm14, %v8042_v30, %v15243_v44  ;;  %s9842_s25 = scalar_lea.vmem %s14252_s21, 512 }
 0x660   : > { %v7096_v23 = vsel %vm5194_vm3, %v7095_v34, %v7057_v42  ;;  %v7103_v0 = vsel %vm5194_vm3, %v7102_v8, %v7085_v41  ;;  %v8036_v42 = vsel %vm692_vm14, %v8035_v48, %v15244_v38  ;;  %v15245_v41 = vld [vmem:[#allocation100_spill] sm:$0xff]  ;;  %v15247_v34 = vld [vmem:[#allocation101_spill] sm:$0xff]  ;;  %p9843_p12 = scmp.ne.s32.totalorder %s14252_s21, %s9842_s25 }
 0x661   : > { %v8044_v28 = vsel %vm5188_vm2, %v8043_v39, %v15245_v41 }
 0x662   : > { %9210 = vrot.lane.b32.xlu0 %v15220_v31, %s9948_s29  ;;  %v8037_v31 = vsel %vm5188_vm2, %v8036_v42, %v15246_v26  ;;  %v8045_v8 = vsel %vm5190_vm9, %v8044_v28, %v15247_v34  ;;  %p9844_p13 = pnand %p9843_p12, %p10073_p4 }
 0x663   : > { %9186 = vrot.lane.b32.xlu1 %v15221_v4, %s9964_s23  ;;  %v7061_v50 = vpop.permute.xlu0 %7060  ;;  %v7089_v62 = vpop.permute.xlu1 %7088  ;;  %s9966_s23 = smov [#allocation2]  }
 0x664   : > { %v7097_v46 = vsel %vm5196_vm0, %v7096_v23, %v7061_v50  ;;  %v7104_v40 = vsel %vm5196_vm0, %v7103_v0, %v7089_v62  ;;  %v15248_v62 = vld [vmem:[#allocation103_spill] sm:$0xff]  ;;  %p9845_p0 = pneg %p9844_p13  ;;  %s9846_s16 = sshll.u32 %s9966_s23, 4  ;;  %s9847_s16 = int_to_ptr.vmem [resolvable:$false] %s9846_s16 }
 0x665   : > { %7110 = vmatprep.subr.mxu0 %v7104_v40  ;;  %v15249_v40 = vld [vmem:[#allocation113_spill] sm:$0xff]  ;;  %s9848_s28 = scalar_lea.vmem %s9847_s16, 1024  ;;  %p9849_p1 = scmp.lt.s32.totalorder %s14252_s21, %s9847_s16 }
 0x666   : > { %9213 = vrot.lane.b32.xlu0 %v15222_v49, %s9956_s17  ;;  %7111 = vmatpush1.msra.mxu0 %v7097_v46  ;;  %v8038_v46 = vsel %vm5190_vm9, %v8037_v31, %v15248_v62  ;;  %p9850_p2 = scmp.lt.s32.totalorder %s9848_s28, %s9842_s25 }
 0x667   : > { %9189 = vrot.lane.b32.xlu1 %v15223_v37, %s9948_s29  ;;  %v7505_v1 = vpop.permute.xlu0 %7504  ;;  %v7533_v54 = vpop.permute.xlu1 %7532  ;;  %9597 = vmatmul.mubr.msk.f32.vlgmr.msra.gmra.mrb[4].mxu0 %vm5614_vm7, %v9596_v20  ;;  %v8046_v20 = vsel %vm5192_vm10, %v8045_v8, %v15249_v40  ;;  %v15262_v40 = vcombine.low %v13506_v18, %v13497_v6  ;;  %s15271_s29 = sld [smem:[#allocation7_spill]] }
 0x668   : > { %7642 = vmatprep.mubr.f32.mxu0 %v15182_v22  ;;  %v7559_v25 = vsel %vm15228_vm6, %v15227_v36, %v7505_v1  ;;  %v7566_v53 = vsel %vm15232_vm11, %v15231_v57, %v7533_v54  ;;  %v15250_v1 = vld [vmem:[#allocation112_spill] sm:$0xff]  ;;  %vm15267_vm6 = vmmov %vm15166_vm4  ;;  %p9851_p3 = por %p9850_p2, %p9849_p1 }
 0x669   : > { %v8039_v54 = vsel %vm5192_vm10, %v8038_v46, %v15250_v1  ;;  %v9600_v36 = vld [vmem:[%s14311_s5 + $0x30] sm:$0xff]  ;;  %vm15269_vm11 = vmmov %vm15166_vm4 }
 0x66a   : > { %9418 = vperm.xlu0 %9836, %v9414_v13   ;;  %v9598_v13 = vld [vmem:[%s14311_s5 + $0x28] sm:$0xff]  ;;  %p9852_p5 = pnand %p9851_p3, %p9845_p0 }
 0x66b   : > { %9192 = vrot.lane.b32.xlu1 %v15224_v3, %s9956_s17  ;;  %v7509_v45 = vpop.permute.xlu0 %7508  ;;  %v7537_v59 = vpop.permute.xlu1 %7536  ;;  %v15251_v3 = vld [vmem:[#allocation122_spill] sm:$0xff] }
 0x66c   : > { %v7560_v35 = vsel %vm692_vm14, %v7559_v25, %v7509_v45  ;;  %v7567_v33 = vsel %vm692_vm14, %v7566_v53, %v7537_v59  ;;  %v8047_v45 = vsel %vm5194_vm3, %v8046_v20, %v15251_v3  ;;  %v15252_v59 = vld [vmem:[#allocation119_spill] sm:$0xff] }
 0x66d   : > { %s9621_s24 = sshll.u32 %s15271_s29, 9 }
 0x66e   : > { %s14257_s13 = scalar_lea.hbm %s15273_s0, %s9621_s24 }
 0x66f   : > { %9423 = vperm.xlu1 %9835, %v9415_v60   ;;  %v7513_v12 = vpop.permute.xlu0 %7512  ;;  %v7541_v15 = vpop.permute.xlu1 %7540  ;;  %v8040_v60 = vsel %vm5194_vm3, %v8039_v54, %v15252_v59 }
 0x670   : > { %v7561_v27 = vsel %vm5188_vm2, %v7560_v35, %v7513_v12  ;;  %v7568_v56 = vsel %vm5188_vm2, %v7567_v33, %v7541_v15  ;;  %v15253_v12 = vld [vmem:[#allocation123_spill] sm:$0xff]  ;;  %v15255_v33 = vld [vmem:[#allocation82_spill] sm:$0xff] }
 0x671   : > { %v8048_v15 = vsel %vm5196_vm0, %v8047_v45, %v15253_v12 }
 0x673   : > { %v7517_v16 = vpop.permute.xlu0 %7516  ;;  %v7545_v29 = vpop.permute.xlu1 %7544 }
 0x674   : > { %v7562_v9 = vsel %vm5190_vm9, %v7561_v27, %v7517_v16  ;;  %v7569_v17 = vsel %vm5190_vm9, %v7568_v56, %v7545_v29  ;;  %v15254_v16 = vld [vmem:[#allocation120_spill] sm:$0xff] }
 0x675   : > { %v8041_v29 = vsel %vm5196_vm0, %v8040_v60, %v15254_v16 }
 0x677   : > { %v7521_v7 = vpop.permute.xlu0 %7520  ;;  %v7549_v47 = vpop.permute.xlu1 %7548 }
 0x678   : > { %v7563_v58 = vsel %vm5192_vm10, %v7562_v9, %v7521_v7  ;;  %v7570_v61 = vsel %vm5192_vm10, %v7569_v17, %v7549_v47 }
 0x67b   : > { %v7525_v32 = vpop.permute.xlu0 %7524  ;;  %v7553_v43 = vpop.permute.xlu1 %7552 }
 0x67c   : > { %v7564_v4 = vsel %vm5194_vm3, %v7563_v58, %v7525_v32  ;;  %v7571_v23 = vsel %vm5194_vm3, %v7570_v61, %v7553_v43  ;;  %v15256_v32 = vld [vmem:[#allocation77_spill] sm:$0xff] }
 0x67d   : > { %v15257_v43 = vcombine.low %v15255_v33, %v15256_v32  ;;  %v9602_v61 = vld [vmem:[%s14311_s5 + $0x38] sm:$0xff] }
 0x67f   : > { %v7529_v0 = vpop.permute.xlu0 %7528  ;;  %v7557_v50 = vpop.permute.xlu1 %7556 }
 0x680   : > { %v7565_v49 = vsel %vm5196_vm0, %v7564_v4, %v7529_v0  ;;  %v7572_v37 = vsel %vm5196_vm0, %v7571_v23, %v7557_v50 }
 0x681   : > { %7578 = vmatprep.subr.mxu0 %v7572_v37  ;;  %v15265_v37 = vld [vmem:[#allocation86_spill] sm:$0xff] }
 0x682   : > { %7579 = vmatpush1.msra.mxu0 %v7565_v49  ;;  %v15264_v49 = vld [vmem:[#allocation89_spill] sm:$0xff] }
 0x683   : > { %v8449_v7 = vpop.permute.xlu0 %8448  ;;  %v8477_v47 = vpop.permute.xlu1 %8476  ;;  %8054 = vmatprep.subr.mxu0 %v8048_v15  ;;  %9599 = vmatmul.mubr.msk.f32.vlgmr.msra.gmra.mrb[4].mxu0 %vm5614_vm7, %v9598_v13  ;;  %v15266_v13 = vcombine.low %v15264_v49, %v15265_v37 }
 0x684   : > { %8055 = vmatpush1.msra.mxu0 %v8041_v29  ;;  %8118 = vmatprep.mubr.f32.mxu0 %v15182_v22  ;;  %v8503_v11 = vsel %vm15166_vm4, %v15257_v43, %v8449_v7  ;;  %v8510_v30 = vsel %vm15261_vm5, %v15260_v63, %v8477_v47  ;;  %v9073_v43 = vld [vmem:[%s14313_s7] sm:$0xff]  ;;  %vm9234_vm5 = vcmask 105472  }
 0x687   : > { %v8453_v52 = vpop.permute.xlu0 %8452  ;;  %v8481_v21 = vpop.permute.xlu1 %8480 }
 0x688   : > { %v8504_v27 = vsel %vm692_vm14, %v8503_v11, %v8453_v52  ;;  %v8511_v56 = vsel %vm692_vm14, %v8510_v30, %v8481_v21  ;;  %v9074_v11 = vld [vmem:[%s14313_s7 + $0x8] sm:$0x1f] }
 0x68b   : > { %v8457_v25 = vpop.permute.xlu0 %8456  ;;  %v8485_v55 = vpop.permute.xlu1 %8484  ;;  %9601 = vmatmul.mubr.msk.f32.vlgmr.msra.gmra.mrb[4].mxu0 %vm5614_vm7, %v9600_v36 }
 0x68c   : > { %8586 = vmatprep.mubr.f32.mxu0 %v15182_v22  ;;  %v8505_v14 = vsel %vm5188_vm2, %v8504_v27, %v8457_v25  ;;  %v8512_v2 = vsel %vm5188_vm2, %v8511_v56, %v8485_v55  ;;  %v9604_v25 = vld [vmem:[%s14311_s5 + $0x40] sm:$0xff] }
 0x68f   : > { %v8461_v5 = vpop.permute.xlu0 %8460  ;;  %v8489_v57 = vpop.permute.xlu1 %8488 }
 0x690   : > { %v8506_v48 = vsel %vm5190_vm9, %v8505_v14, %v8461_v5  ;;  %v8513_v44 = vsel %vm5190_vm9, %v8512_v2, %v8489_v57 }
 0x693   : > { %v8465_v53 = vpop.permute.xlu0 %8464  ;;  %v8493_v35 = vpop.permute.xlu1 %8492 }
 0x694   : > { %v8507_v39 = vsel %vm5192_vm10, %v8506_v48, %v8465_v53  ;;  %v8514_v9 = vsel %vm5192_vm10, %v8513_v44, %v8493_v35 }
 0x697   : > { %v8469_v19 = vpop.permute.xlu0 %8468  ;;  %v8497_v24 = vpop.permute.xlu1 %8496 }
 0x698   : > { %v8508_v17 = vsel %vm5194_vm3, %v8507_v39, %v8469_v19  ;;  %v8515_v38 = vsel %vm5194_vm3, %v8514_v9, %v8497_v24 }
 0x69b   : > { %v8473_v42 = vpop.permute.xlu0 %8472  ;;  %v8501_v41 = vpop.permute.xlu1 %8500 }
 0x69c   : > { %v8509_v28 = vsel %vm5196_vm0, %v8508_v17, %v8473_v42  ;;  %v8516_v58 = vsel %vm5196_vm0, %v8515_v38, %v8501_v41 }
 0x69d   : > { %8522 = vmatprep.subr.mxu0 %v8516_v58 }
 0x69e   : > { %8523 = vmatpush1.msra.mxu0 %v8509_v28 }
 0x69f   : > { %v8917_v26 = vpop.permute.xlu0 %8916  ;;  %v8945_v31 = vpop.permute.xlu1 %8944  ;;  %9603 = vmatmul.mubr.msk.f32.vlgmr.msra.gmra.mrb[4].mxu0 %vm5614_vm7, %v9602_v61 }
 0x6a0   : > { %9054 = vmatprep.mubr.f32.mxu0 %v15182_v22  ;;  %v8971_v20 = vsel %vm15263_vm12, %v15262_v40, %v8917_v26  ;;  %v8978_v1 = vsel %vm15267_vm6, %v15266_v13, %v8945_v31  ;;  %v15268_v26 = vld [vmem:[#allocation19_spill] sm:$0xff]  ;;  %v15270_v40 = vld [vmem:[#allocation21_spill] sm:$0xff] }
 0x6a4   : > { %v8921_v34 = vpop.permute.xlu0 %8920 }
 0x6a5   : > { %v8949_v8 = vpop.permute.xlu1 %8948  ;;  %v8972_v54 = vsel %vm692_vm14, %v8971_v20, %v8921_v34 }
 0x6a6   : > { %v8979_v45 = vsel %vm692_vm14, %v8978_v1, %v8949_v8 }
 0x6a8   : > { %v8925_v4 = vpop.permute.xlu0 %8924 }
 0x6a9   : > { %v8953_v23 = vpop.permute.xlu1 %8952  ;;  %v8973_v59 = vsel %vm5188_vm2, %v8972_v54, %v8925_v4 }
 0x6aa   : > { %v8980_v12 = vsel %vm5188_vm2, %v8979_v45, %v8953_v23 }
 0x6ac   : > { %v8929_v0 = vpop.permute.xlu0 %8928 }
 0x6ad   : > { %v8957_v50 = vpop.permute.xlu1 %8956  ;;  %v8974_v15 = vsel %vm5190_vm9, %v8973_v59, %v8929_v0 }
 0x6ae   : > { %v8981_v18 = vsel %vm5190_vm9, %v8980_v12, %v8957_v50 }
 0x6b0   : > { %v8933_v62 = vpop.permute.xlu0 %8932 }
 0x6b1   : > { %v8961_v46 = vpop.permute.xlu1 %8960  ;;  %v8975_v6 = vsel %vm5192_vm10, %v8974_v15, %v8933_v62  ;;  %v9232_v15 = vld [vmem:[%s14316_s10] sm:$0xff] }
 0x6b2   : > { %v8982_v16 = vsel %vm5192_vm10, %v8981_v18, %v8961_v46 }
 0x6b4   : > { %v8937_v3 = vpop.permute.xlu0 %8936 }
 0x6b5   : > { %v8965_v60 = vpop.permute.xlu1 %8964  ;;  %v8976_v29 = vsel %vm5194_vm3, %v8975_v6, %v8937_v3 }
 0x6b6   : > { %v8983_v47 = vsel %vm5194_vm3, %v8982_v16, %v8965_v60 }
 0x6b8   : > { %v8941_v7 = vpop.permute.xlu0 %8940 }
 0x6b9   : > { %v8977_v52 = vsel %vm5196_vm0, %v8976_v29, %v8941_v7  ;;  %v8969_v21 = vpop.permute.xlu1 %8968  ;;  %v9233_v29 = vld [vmem:[%s14316_s10 + $0x8] sm:$0xff]  ;;  %v9230_v7 = vld [vmem:[%s14315_s9] sm:$0xff] }
 0x6ba   : > { %v8984_v36 = vsel %vm5196_vm0, %v8983_v47, %v8969_v21  ;;  %v9231_v47 = vld [vmem:[%s14315_s9 + $0x8] sm:$0xff] }
 0x6bb   : > { %8990 = vmatprep.subr.mxu0 %v8984_v36 }
 0x6bc   : > { %8991 = vmatpush1.msra.mxu0 %v8977_v52 }
 0x6bd   : > { %9605 = vmatmul.mubr.msk.f32.vlgmr.msra.gmra.mrb[4].mxu0 %vm5614_vm7, %v9604_v25 }
 0x6c9   : > { %v9080_v51 = vpop.permute.xlu0 %9079 }
 0x6ca   : > { %v9067_v55 = vpop.permute.xlu1 %9066 }
 0x6cd   : > { %v9196_v63 = vpop.permute.xlu0 %9195 }
 0x6ce   : > { %v9085_v10 = vpop.permute.xlu1 %9084  ;;  %v9223_v31 = vsel %vm15269_vm11, %v15268_v26, %v9196_v63 }
 0x6d1   : > { %v9199_v27 = vpop.permute.xlu0 %9198 }
 0x6d2   : > { %v9175_v30 = vpop.permute.xlu1 %9174  ;;  %v9224_v23 = vsel %vm692_vm14, %v9223_v31, %v9199_v27 }
 0x6d3   : > { %v9216_v20 = vsel %vm15166_vm4, %v15270_v40, %v9175_v30 }
 0x6d5   : > { %v9202_v19 = vpop.permute.xlu0 %9201 }
 0x6d6   : > { %v9178_v56 = vpop.permute.xlu1 %9177  ;;  %v9225_v62 = vsel %vm5188_vm2, %v9224_v23, %v9202_v19 }
 0x6d7   : > { %v9217_v1 = vsel %vm692_vm14, %v9216_v20, %v9178_v56 }
 0x6d9   : > { %v9205_v14 = vpop.permute.xlu0 %9204 }
 0x6da   : > { %v9181_v24 = vpop.permute.xlu1 %9180  ;;  %v9226_v49 = vsel %vm5190_vm9, %v9225_v62, %v9205_v14 }
 0x6db   : > { %v9218_v3 = vsel %vm5188_vm2, %v9217_v1, %v9181_v24 }
 0x6dd   : > { %v9208_v48 = vpop.permute.xlu0 %9207 }
 0x6de   : > { %v9184_v2 = vpop.permute.xlu1 %9183  ;;  %v9227_v54 = vsel %vm5192_vm10, %v9226_v49, %v9208_v48 }
 0x6df   : > { %v9219_v59 = vsel %vm5190_vm9, %v9218_v3, %v9184_v2 }
 0x6e1   : > { %v9211_v38 = vpop.permute.xlu0 %9210 }
 0x6e2   : > { %v9187_v39 = vpop.permute.xlu1 %9186  ;;  %v9228_v45 = vsel %vm5194_vm3, %v9227_v54, %v9211_v38 }
 0x6e3   : > { %v9220_v18 = vsel %vm5192_vm10, %v9219_v59, %v9187_v39 }
 0x6e5   : > { %v9214_v37 = vpop.permute.xlu0 %9213 }
 0x6e6   : > { %v9190_v34 = vpop.permute.xlu1 %9189  ;;  %v9229_v60 = vsel %vm5196_vm0, %v9228_v45, %v9214_v37 }
 0x6e7   : > { %v9221_v6 = vsel %vm5194_vm3, %v9220_v18, %v9190_v34 }
 0x6e9   : > { %v9419_v52 = vpop.permute.xlu0 %9418 }
 0x6ea   : > { %v9193_v12 = vpop.permute.xlu1 %9192 }
 0x6eb   : > { %v9222_v16 = vsel %vm5196_vm0, %v9221_v6, %v9193_v12 }
 0x790   : > { %v9056_v5 = vpop.f32.mrb[4].mxu0 }
 0x791   : > { %v9069_v57 = vadd.f32 %v9067_v55, %v9056_v5  ;;  %v9058_v53 = vpop.f32.mrb[5].mxu0  ;;  %v9424_v5 = vpop.permute.xlu1 %9423 }
 0x792   : > { %v9070_v35 = vadd.f32 %v9067_v55, %v9058_v53 }
 0x793   : > { %v9071_v32 = vmax.f32 %v9069_v57, 0.0 }
 0x794   : > { %v9072_v33 = vmax.f32 %v9070_v35, 0.0 }
 0x796   : > { %9093 = vmatprep.subr.mxu1 %v9072_v33 }
 0x797   : > { %9094 = vmatpush1.msra.mxu1 %v9071_v32 }
 0x798   : > { %9606 = vmatmul.mubr.msk.f32.vlgmr.msra.gmra.mrb[22].mxu1 %vm5614_vm7, %v9073_v43 }
 0x799   : > { %9163 = vmatprep.mubr.f32.mxu1 %v15182_v22 }
 0x79c   : > { %9607 = vmatmul.mubr.msk.f32.gmra.mrb[24].mxu1 %vm5614_vm7, %v9074_v11  ;;  %vm9241_vm7 = vcmask 1044480  }
 0x79d   : > { %9312 = vmatprep.mubr.f32.mxu1 %v15182_v22  ;;  %vm9693_vm8 = vmpackc.low %vm9241_vm7, %vm9965_vm13 }
 0x86b   : > { %v9159_v44 = vpop.f32.mrb[22].mxu1 }
 0x86c   : > { %v9161_v9 = vpop.f32.mrb[23].mxu1  ;;  %v9160_v17 = vadd.f32 %v9159_v44, %v9080_v51 }
 0x86d   : > { %v9162_v42 = vadd.f32 %v9161_v9, %v9080_v51 }
 0x86e   : > { %v9170_v8 = vmax.f32 %v9160_v17, 0.0 }
 0x86f   : > { %v9165_v41 = vpop.f32.mrb[24].mxu1  ;;  %v9171_v0 = vmax.f32 %v9162_v42, 0.0 }
 0x870   : > { %v9166_v28 = vadd.f32 %v9165_v41, %v9085_v10  ;;  %v9167_v58 = vpop.f32.mrb[25].mxu1 }
 0x871   : > { %v9168_v61 = vadd.f32 %v9167_v58, %v9085_v10 }
 0x872   : > { %v9172_v4 = vmax.f32 %v9166_v28, 0.0 }
 0x873   : > { %v9173_v50 = vmax.f32 %v9168_v61, 0.0 }
 0x874   : > { %v9695_v46 = vpack.c.bf16 %v9172_v4, %v9170_v8 }
 0x875   : > { %v9692_v13 = vpack.c.bf16 %v9173_v50, %v9171_v0 }
 0x877   : > { %9694 = vmatprep.subr.msk.bf16.mxu1 %vm9693_vm8, %v9692_v13 }
 0x878   : > { %9697 = vmatpush1.bf16.msk.msra.mxu1 %vm9693_vm8, %v9695_v46 }
 0x879   : > { %9612 = vmatprep.subr.msk.mxu1 %vm975_vm15, %v9229_v60 }
 0x87b   : > { %9610 = vmatmul.mubr.msk.f32.vlgmr.msra.gmra.mrb[26].mxu1 %vm9234_vm5, %v9232_v15 }
 0x87c   : > { %9613 = vmatpush1.msk.msra.mxu1 %vm975_vm15, %v9222_v16  ;;  %9318 = vmatprep.mubr.f32.mxu1 %v15182_v22 }
 0x87f   : > { %9611 = vmatmul.mubr.msk.f32.gmra.mrb[28].mxu1 %vm9234_vm5, %v9233_v29 }
 0x880   : > { %9401 = vmatprep.mubr.f32.mxu1 %v15182_v22 }
 0x883   : > { %9614 = vmatmul.mubr.msk.f32.vlgmr.msra.gmra.mrb[26].mxu1 %vm971_vm1, %v9230_v7 }
 0x884   : > { %9407 = vmatprep.mubr.f32.mxu1 %v15182_v22 }
 0x887   : > { %9615 = vmatmul.mubr.msk.f32.gmra.mrb[28].mxu1 %vm971_vm1, %v9231_v47 }
 0x956   : > { %v9403_v21 = vpop.f32.mrb[26].mxu1 }
 0x957   : > { %v9426_v36 = vadd.f32 %v9419_v52, %v9403_v21  ;;  %v9405_v25 = vpop.f32.mrb[27].mxu1 }
 0x958   : > { %v9427_v55 = vadd.f32 %v9419_v52, %v9405_v25 }
 0x959   : > { %9430 = vst [vmem:[%s425_s19] sm:$0xff] %v9426_v36 }
 0x95a   : > { %9431 = vst [vmem:[%s425_s19 + $0x8] sm:$0xff] %v9427_v55  ;;  %v9409_v22 = vpop.f32.mrb[28].mxu1 }
 0x95b   : > { %v9428_v57 = vadd.f32 %v9424_v5, %v9409_v22  ;;  %v9411_v53 = vpop.f32.mrb[29].mxu1 }
 0x95c   : > { %v9429_v35 = vadd.f32 %v9424_v5, %v9411_v53 }
 0x95d   : > { %9432 = vst [vmem:[%s425_s19 + $0x10] sm:$0xff] %v9428_v57 }
 0x95e   : > { %9433 = vst [vmem:[%s425_s19 + $0x18] sm:$0xff] %v9429_v35 }
 0x95f   : > { %9855 = shalt.err (!%p9852_p5)
}
 0x960   : > { %s9856_s29 = scalar_lea.hbm %s14257_s13, 512  ;;  %s9860_s14 = scalar_lea.hbm %s15273_s0, 1024 }
 0x961   : > { %p9857_p6 = scmp.ne.s32.totalorder %s14257_s13, %s9856_s29  ;;  %p9861_p10 = scmp.lt.u32.totalorder %s14257_s13, %s15273_s0 }
 0x962   : > { %p9862_p11 = scmp.lt.u32.totalorder %s9860_s14, %s9856_s29  ;;  %p9864_p13 = scmp.lt.u32.totalorder %s9856_s29, %s14257_s13 }
 0x963   : > { %p9858_p7 = pnand %p9857_p6, %p10073_p4 }
 0x964   : > { %p9863_p12 = por %p9862_p11, %p9861_p10 }
 0x965   : > { %p9859_p9 = pneg %p9858_p7 }
 0x966   : > { %p9865_p0 = por %p9864_p13, %p9863_p12 }
 0x968   : > { %p9866_p1 = pnand %p9865_p0, %p9859_p9 }
 0x96a   : > { %9869 = shalt.err (!%p9866_p1)
}
 0x96b   : > { %s9967_s24 = smov 256  }
 0x96c   : > { %9735 = dma.vmem_to_hbm [thread:$0]  (%p10073_p4), %s14252_s21, 512, %s14257_s13, %s14259_s20, %s9967_s24, %s9967_s24, %s14642_s27  }
 0x96d PF: > { %s15274_s12 = sld [smem:[#allocation9_spill]]  ;;  %s15275_s15 = sld [smem:[#allocation5_spill]] }
 0x973   : > { %p9741_p2 = scmp.ge.s32.totalorder %s15274_s12, 2  ;;  %s9465_s23 = sand.u32 1, %s15275_s15  }
 0x974   : > { %s9466_s16 = scalar_lea.sflag [#allocation3], %s9465_s23 }
 0x975   : > { %p9738_p3 = pnand %p9741_p2, %p10080_p8 }
 0x977   : > { %9895 = dma.done.wait (!%p9738_p3), %s9466_s16, 512  }
 0x978   : > { %9897 = vsyncadd (!%p9738_p3), %s9466_s16, 4294966784  ;;  %s25_s26 = sadd.s32 1, %s15274_s12   ;;  %s15277_s28 = sld [smem:[#allocation6_spill]] }
 0x979   : > { %p22_p5 = scmp.ge.s32.totalorder %s25_s26, 4   ;;  %s15278_s23 = sld [smem:[#allocation13_spill]] }
 0x97a   : > { %s15279_s24 = sld [smem:[#allocation8_spill]]  ;;  %s15280_s25 = sld [smem:[#allocation10_spill]] }
 0x97b   : > { %s15281_s21 = smov %s9904_s22  ;;  %24 = sbr.rel (!%p22_p5) target bundleno = 7 (0x7), region = 119 }
 0x97e   : > { %s15282_s22 = smov %s15277_s28 }
 0x982   :  { %9471 = vsyncpa [#allocation3], 1 }
 0x983   :  { %9473 = vsyncpa [#allocation3 + $0x1], 1 }

</bundles_post_ra>
